<compile_context>
chip_gen: v7x
topology: tpu7x:2x2x1
jax: 0.10.0
libtpu: 0.0.40
codegen_flags: <defaults>
</compile_context>

<pallas_src>
import functools

import jax
import jax.numpy as jnp
from jax.experimental import pallas as pl
from jax.experimental.pallas import tpu as pltpu

BN_EPS = 1e-5
LN_EPS = 1e-5


# ----------------------------------------------------------------------------
# helpers
# ----------------------------------------------------------------------------
def _per_batch_call(kernel, *, batch, batched_args, shared_args, out_shape,
                    scratch_shapes=()):
    """One pallas_call with a grid over the batch dimension.

    Kernel signature: (batched refs..., shared refs..., out_ref, scratch refs...).
    Batched refs have the leading batch dim squeezed away (block dim = None).
    The batch axis is marked "parallel" so v7x can shard it over its 2 TensorCores.
    """
    in_specs = []
    for a in batched_args:
        in_specs.append(
            pl.BlockSpec((None,) + a.shape[1:],
                         lambda b, n=a.ndim - 1: (b,) + (0,) * n))
    for a in shared_args:
        in_specs.append(
            pl.BlockSpec(a.shape, lambda b, n=a.ndim: (0,) * n))
    out_specs = pl.BlockSpec((None,) + out_shape[1:],
                             lambda b, n=len(out_shape) - 1: (b,) + (0,) * n)
    return pl.pallas_call(
        kernel,
        grid=(batch,),
        in_specs=in_specs,
        out_specs=out_specs,
        out_shape=jax.ShapeDtypeStruct(out_shape, jnp.float32),
        scratch_shapes=list(scratch_shapes),
        compiler_params=pltpu.CompilerParams(
            dimension_semantics=("parallel",)),
    )(*batched_args, *shared_args)


def _erf(x):
    # Abramowitz & Stegun 7.1.26 polynomial erf (|err| < 1.5e-7, ~f32 eps).
    # torch.nn.GELU() is the exact (erf-based) formulation.
    # TODO(synk): on v5e, if this stage becomes VALU-bound, switch to a tanh-GELU
    # routed through the EUP (small numeric delta vs exact erf).
    a1, a2, a3, a4, a5 = 0.254829592, -0.284496736, 1.421413741, -1.453152027, 1.061405429
    p = 0.3275911
    ax = jnp.abs(x)
    t = 1.0 / (1.0 + p * ax)
    poly = ((((a5 * t + a4) * t + a3) * t + a2) * t + a1) * t
    y = 1.0 - poly * jnp.exp(-ax * ax)
    return jnp.where(x >= 0, y, -y)


def _gelu_exact(x):
    return 0.5 * x * (1.0 + _erf(x * 0.7071067811865476))


def _softplus(x):
    # numerically stable softplus using only exp/log (no log1p lowering dependency)
    return jnp.maximum(x, 0.0) + jnp.log(1.0 + jnp.exp(-jnp.abs(x)))


# ----------------------------------------------------------------------------
# Pallas kernels
# ----------------------------------------------------------------------------
def enc_block_kernel(x_ref,
                     dw_w_ref, dw_s_ref, dw_b_ref,
                     ca_w1_ref, ca_w2_ref, sa_w_ref,
                     w1_ref, b1_ref, grn_g_ref, grn_b_ref, w2_ref,
                     bn2_s_ref, bn2_b_ref, gamma_ref,
                     o_ref,
                     xpad_ref, apad_ref, mpad_ref,
                     *, K, H, W):
    """Fused EncDilatedBlock forward:
         x + gamma * BN(pwconv2(GRN(GELU(pwconv1(CBAM(norm(dwconv(x))))))))
       In the reference both BNs (DilatedBlock's internal one and self.norm) sit
       BEFORE CBAM, so fusing them into a single per-channel affine right after the
       depthwise conv is order-equivalent (CBAM sees the same scaled input)."""
    C = x_ref.shape[-1]
    pad = K // 2
    x = x_ref[...]                                          # (H, W, C)

    # ---- DilatedBlock main depthwise KxK branch + fused (origin BN o norm BN) affine.
    # TODO(synk): DilatedBlock's dilated re-parameterization side branches are not
    # specified in the prompt; only the main depthwise-conv + BN branch is implemented.
    xpad_ref[...] = jnp.zeros_like(xpad_ref)
    xpad_ref[pad:pad + H, pad:pad + W, :] = x
    xp = xpad_ref[...]                                      # (H+2p, W+2p, C)
    dw_w = dw_w_ref[...]                                    # (K*K, C)
    acc = jnp.zeros((H, W, C), jnp.float32)
    for i in range(K):
        for j in range(K):
            t = i * K + j
            acc = acc + xp[i:i + H, j:j + W, :] * dw_w[t:t + 1, :]
    y1 = acc * dw_s_ref[...] + dw_b_ref[...]                # (H, W, C)

    # ---- CBAM channel attention: shared MLP on stacked [avg; max] pooled rows (one pass).
    y1_tok = y1.reshape(H * W, C)
    pooled = jnp.concatenate(
        [jnp.mean(y1_tok, axis=0, keepdims=True),
         jnp.max(y1_tok, axis=0, keepdims=True)], axis=0)   # (2, C)
    hid = jnp.maximum(
        jnp.dot(pooled, ca_w1_ref[...], preferred_element_type=jnp.float32), 0.0)
    att_c = jax.nn.sigmoid(
        jnp.sum(jnp.dot(hid, ca_w2_ref[...], preferred_element_type=jnp.float32),
                axis=0, keepdims=True))                     # (1, C)
    y2 = y1 * att_c                                         # (H, W, C)

    # ---- CBAM spatial attention: 7x7 conv over [mean_c, max_c] maps -> sigmoid -> scale.
    apad_ref[...] = jnp.zeros_like(apad_ref)
    mpad_ref[...] = jnp.zeros_like(mpad_ref)
    apad_ref[3:3 + H, 3:3 + W] = jnp.mean(y2, axis=-1)
    mpad_ref[3:3 + H, 3:3 + W] = jnp.max(y2, axis=-1)
    ap = apad_ref[...]
    mp = mpad_ref[...]
    sa_w = sa_w_ref[...]                                    # (49, 2)
    sacc = jnp.zeros((H, W), jnp.float32)
    for i in range(7):
        for j in range(7):
            t = i * 7 + j
            sacc = sacc + ap[i:i + H, j:j + W] * sa_w[t:t + 1, 0:1] \
                        + mp[i:i + H, j:j + W] * sa_w[t:t + 1, 1:2]
    y3 = y2 * jax.nn.sigmoid(sacc)[:, :, None]              # (H, W, C)

    # ---- FFN: pwconv1 -> GELU -> GRN(NHWC) -> pwconv2 -> BN affine -> layer scale -> +x.
    # bf16 MXU operands, f32 accumulation.
    # TODO(synk): for production-sized H*W, tile this stage over tokens (two-pass GRN);
    #             at demo shapes one block per batch fits VMEM comfortably.
    tok = y3.reshape(H * W, C)
    h = jnp.dot(tok.astype(jnp.bfloat16), w1_ref[...],
                preferred_element_type=jnp.float32) + b1_ref[...]
    h = _gelu_exact(h)                                      # (HW, F)
    gx = jnp.sqrt(jnp.sum(h * h, axis=0, keepdims=True))    # L2 over H*W -> (1, F)
    nx = gx / (jnp.mean(gx, axis=-1, keepdims=True) + 1e-6)
    h = (grn_g_ref[...] * nx + 1.0) * h + grn_b_ref[...]    # GRNwithNHWC (use_bias)
    yf = jnp.dot(h.astype(jnp.bfloat16), w2_ref[...],
                 preferred_element_type=jnp.float32)
    yf = yf * bn2_s_ref[...] + bn2_b_ref[...]               # BN (inference) affine
    out = x.reshape(H * W, C) + gamma_ref[...] * yf         # layer-scale + residual
    o_ref[...] = out.reshape(H, W, C)


def sepconv_bn_relu_kernel(z_ref, x_ref, dw_w_ref, pw_w_ref, s_ref, b_ref,
                           o_ref, spad_ref, *, H, W):
    """(z + x) -> depthwise 3x3 -> pointwise 1x1 -> BN affine -> ReLU."""
    Cin = z_ref.shape[-1]
    Cout = pw_w_ref.shape[-1]
    s = z_ref[...] + x_ref[...]
    spad_ref[...] = jnp.zeros_like(spad_ref)
    spad_ref[1:1 + H, 1:1 + W, :] = s
    sp = spad_ref[...]
    dw_w = dw_w_ref[...]                                    # (9, Cin)
    acc = jnp.zeros((H, W, Cin), jnp.float32)
    for i in range(3):
        for j in range(3):
            t = i * 3 + j
            acc = acc + sp[i:i + H, j:j + W, :] * dw_w[t:t + 1, :]
    y = jnp.dot(acc.reshape(H * W, Cin).astype(jnp.bfloat16), pw_w_ref[...],
                preferred_element_type=jnp.float32)
    y = jnp.maximum(y * s_ref[...] + b_ref[...], 0.0)
    o_ref[...] = y.reshape(H, W, Cout)


def mamba_kernel(x_ref,
                 ln_w_ref, ln_b_ref, w_in_x_ref, w_in_z_ref,
                 conv_w_ref, conv_b_ref, w_dt_ref, b_dt_ref,
                 w_xb_ref, w_xc_ref, a_ref, d_ref, w_out_ref,
                 o_ref,
                 cpad_ref, u_ref, dl_ref, b_scr, c_scr, y_ref,
                 *, L, Kc, T):
    """Fused MambaLayer: LayerNorm -> in_proj -> causal dwconv+SiLU -> x_proj/dt_proj
       -> chunked selective scan -> D-skip -> SiLU(z) gate -> out_proj."""
    N, Din = a_ref.shape

    # LayerNorm over channels.
    x = x_ref[...]                                          # (L, C)
    mu = jnp.mean(x, axis=-1, keepdims=True)
    xc = x - mu
    var = jnp.mean(xc * xc, axis=-1, keepdims=True)
    xn = xc * jax.lax.rsqrt(var + LN_EPS) * ln_w_ref[...] + ln_b_ref[...]
    xnb = xn.astype(jnp.bfloat16)

    # in_proj split into x / z halves (weights pre-split in the wrapper: no lane slicing).
    xi = jnp.dot(xnb, w_in_x_ref[...], preferred_element_type=jnp.float32)   # (L, Din)
    z = jnp.dot(xnb, w_in_z_ref[...], preferred_element_type=jnp.float32)    # (L, Din)

    # Causal depthwise conv1d over the sequence + bias + SiLU.
    cpad_ref[...] = jnp.zeros_like(cpad_ref)
    cpad_ref[Kc - 1:Kc - 1 + L, :] = xi
    cp = cpad_ref[...]                                      # (L+Kc-1, Din), left-padded
    conv_w = conv_w_ref[...]                                # (Kc, Din)
    acc = jnp.zeros((L, Din), jnp.float32)
    for k in range(Kc):
        acc = acc + cp[k:k + L, :] * conv_w[k:k + 1, :]
    acc = acc + conv_b_ref[...]
    u_ref[...] = acc * jax.nn.sigmoid(acc)                  # SiLU -> u  (L, Din)
    u = u_ref[...]

    # x_proj (B, C) and dt path: w_dt_ref == x_proj[:, :R] @ dt_proj.weight (folded, exact).
    b_scr[...] = jnp.dot(u, w_xb_ref[...], preferred_element_type=jnp.float32)   # (L, N)
    c_scr[...] = jnp.dot(u, w_xc_ref[...], preferred_element_type=jnp.float32)   # (L, N)
    dl_ref[...] = _softplus(
        jnp.dot(u, w_dt_ref[...], preferred_element_type=jnp.float32) + b_dt_ref[...])

    a_log = a_ref[...]                                      # (N, Din)

    # Selective scan, chunked by T timesteps.  State h is a loop-carried VALUE
    # (no per-step VMEM round trip); exp(dt*A) and dt*B*u are formed in-register
    # per step (never materialized as (L, N, Din)); C.h is a broadcast-multiply +
    # sublane (XLU) reduce; y is written back in dense T-row blocks.
    def chunk_body(c, h):
        base = pl.multiple_of(c * T, T)
        dl = dl_ref[pl.ds(base, T), :]                      # (T, Din)
        uc = u_ref[pl.ds(base, T), :]                       # (T, Din)
        dlu = dl * uc                                       # dt*u hoisted out of the step loop
        bt = b_scr[pl.ds(base, T), :].T                     # (N, T)
        ct = c_scr[pl.ds(base, T), :].T                     # (N, T)
        rows = []
        for t in range(T):
            da = jnp.exp(dl[t:t + 1, :] * a_log)            # (N, Din)  (EUP)
            dbu = bt[:, t:t + 1] * dlu[t:t + 1, :]          # (N, Din)
            h = da * h + dbu
            rows.append(jnp.sum(ct[:, t:t + 1] * h, axis=0, keepdims=True))  # (1, Din)
        y_ref[pl.ds(base, T), :] = jnp.concatenate(rows, axis=0)
        return h

    h0 = jnp.zeros((N, Din), jnp.float32)
    jax.lax.fori_loop(0, L // T, chunk_body, h0)

    # D-skip, SiLU(z) gating, out_proj (bf16 MXU operands, f32 accumulation).
    y = y_ref[...] + u * d_ref[...]
    y = y * (z * jax.nn.sigmoid(z))
    o_ref[...] = jnp.dot(y.astype(jnp.bfloat16), w_out_ref[...],
                         preferred_element_type=jnp.float32)


# ----------------------------------------------------------------------------
# module forward (thin glue around the fused kernels)
# ----------------------------------------------------------------------------
def enc_dilated_block(x, p):
    B, H, W, C = x.shape
    K = p["k"]
    pad = K // 2
    # TODO(synk): C (=16 in the demo) is far below the 128-lane width, so stores are
    # masked; production channel counts >=128 make the blocks lane-dense automatically.
    return _per_batch_call(
        functools.partial(enc_block_kernel, K=K, H=H, W=W),
        batch=B, batched_args=[x],
        shared_args=[p["dw_w"], p["dw_scale"], p["dw_bias"],
                     p["ca_w1"], p["ca_w2"], p["sa_w"],
                     p["w1"].astype(jnp.bfloat16), p["b1"],
                     p["grn_g"], p["grn_b"], p["w2"].astype(jnp.bfloat16),
                     p["bn2_scale"], p["bn2_bias"], p["gamma"]],
        out_shape=(B, H, W, C),
        scratch_shapes=[pltpu.VMEM((H + 2 * pad, W + 2 * pad, C), jnp.float32),
                        pltpu.VMEM((H + 6, W + 6), jnp.float32),
                        pltpu.VMEM((H + 6, W + 6), jnp.float32)])


def residual_extract(x, p):
    B, H, W, Cin = x.shape
    y = enc_dilated_block(x, p["enc1"])
    z = enc_dilated_block(y, p["enc2"])
    Cout = p["pw_w"].shape[1]
    # (z + x) -> SeparableConv2d -> BN -> ReLU, fused (residual add done in-kernel).
    return _per_batch_call(
        functools.partial(sepconv_bn_relu_kernel, H=H, W=W),
        batch=B, batched_args=[z, x],
        shared_args=[p["dw3_w"], p["pw_w"].astype(jnp.bfloat16),
                     p["bn_scale"], p["bn_bias"]],
        out_shape=(B, H, W, Cout),
        scratch_shapes=[pltpu.VMEM((H + 2, W + 2, Cin), jnp.float32)])


def mamba_layer(x, p):
    B, H, W, C = x.shape
    L = H * W
    N, Din, R, Kc = p["d_state"], p["d_inner"], p["dt_rank"], p["d_conv"]
    T = 8
    while L % T:
        T //= 2
    # torch: x.reshape(B, C, L).transpose(-1, -2)  ==  NHWC reshape(B, H*W, C)
    xt = x.reshape(B, L, C)
    w_in_x = p["w_in"][:, :Din].astype(jnp.bfloat16)
    w_in_z = p["w_in"][:, Din:].astype(jnp.bfloat16)
    w_xb = p["w_x"][:, R:R + N]
    w_xc = p["w_x"][:, R + N:]
    w_dt_eff = p["w_x"][:, :R] @ p["w_dt"]                  # fold x_proj(dt) into dt_proj (exact)
    return _per_batch_call(
        functools.partial(mamba_kernel, L=L, Kc=Kc, T=T),
        batch=B, batched_args=[xt],
        shared_args=[p["ln_w"], p["ln_b"], w_in_x, w_in_z,
                     p["conv_w"], p["conv_b"], w_dt_eff,
                     p["b_dt"].reshape(1, Din), w_xb, w_xc,
                     p["A_T"], p["D"], p["w_out"].astype(jnp.bfloat16)],
        out_shape=(B, L, C),
        scratch_shapes=[pltpu.VMEM((L + Kc - 1, Din), jnp.float32),  # causal-pad buffer
                        pltpu.VMEM((L, Din), jnp.float32),           # u
                        pltpu.VMEM((L, Din), jnp.float32),           # delta
                        pltpu.VMEM((L, N), jnp.float32),             # B
                        pltpu.VMEM((L, N), jnp.float32),             # C
                        pltpu.VMEM((L, Din), jnp.float32)],          # y
    ).reshape(B, H, W, C)


def umamba_enc_block(x_nchw, params):
    x = jnp.transpose(x_nchw, (0, 2, 3, 1)).astype(jnp.float32)   # NCHW -> NHWC
    r = residual_extract(x, params["residual"])
    y = mamba_layer(r, params["mamba"])
    B, H, W, C = y.shape
    # F.max_pool2d(y, 2, stride=2) kept as plain-JAX glue (trivial reshape-max).
    pooled = jnp.max(y.reshape(B, H // 2, 2, W // 2, 2, C), axis=(2, 4))
    return jnp.transpose(pooled, (0, 3, 1, 2)), jnp.transpose(y, (0, 3, 1, 2))


# ----------------------------------------------------------------------------
# deterministic synthetic parameters
# ----------------------------------------------------------------------------
def _normal(key, shape, std=0.02):
    return std * jax.random.normal(key, shape, jnp.float32)


def init_enc_block(key, C, K, ffn_factor=4):
    keys = jax.random.split(key, 7)
    F = ffn_factor * C
    ch = max(C // 4, 1)                      # CBAM channel-attention hidden width
    s = (1.0 + BN_EPS) ** -0.5               # inference BN with default init
    return dict(
        k=K,
        dw_w=_normal(keys[0], (K * K, C)),
        dw_scale=jnp.full((1, C), s * s, jnp.float32),   # origin BN o norm BN (both pre-CBAM)
        dw_bias=jnp.zeros((1, C), jnp.float32),
        ca_w1=_normal(keys[1], (C, ch)),
        ca_w2=_normal(keys[2], (ch, C)),
        sa_w=_normal(keys[3], (49, 2)),
        w1=_normal(keys[4], (C, F)),
        b1=jnp.zeros((1, F), jnp.float32),
        grn_g=_normal(keys[5], (1, F)),
        grn_b=jnp.zeros((1, F), jnp.float32),
        w2=_normal(keys[6], (F, C)),
        bn2_scale=jnp.full((1, C), s, jnp.float32),
        bn2_bias=jnp.zeros((1, C), jnp.float32),
        gamma=jnp.full((1, C), 1e-6, jnp.float32),       # layer_scale_init_value
    )


def init_residual_extract(key, Cin, Cout, K):
    keys = jax.random.split(key, 4)
    s = (1.0 + BN_EPS) ** -0.5
    return dict(
        enc1=init_enc_block(keys[0], Cin, K),
        enc2=init_enc_block(keys[1], Cin, K),
        dw3_w=_normal(keys[2], (9, Cin)),
        pw_w=_normal(keys[3], (Cin, Cout)),
        bn_scale=jnp.full((1, Cout), s, jnp.float32),
        bn_bias=jnp.zeros((1, Cout), jnp.float32),
    )


def init_mamba(key, C, d_state=16, d_conv=4, expand=2):
    Din = expand * C
    R = max(1, (C + 15) // 16)               # dt_rank = ceil(d_model / 16)
    keys = jax.random.split(key, 6)
    A_T = -jnp.broadcast_to(
        jnp.arange(1, d_state + 1, dtype=jnp.float32)[:, None], (d_state, Din))
    return dict(
        d_state=d_state, d_conv=d_conv, d_inner=Din, dt_rank=R,
        ln_w=jnp.ones((1, C), jnp.float32), ln_b=jnp.zeros((1, C), jnp.float32),
        w_in=_normal(keys[0], (C, 2 * Din)),
        conv_w=_normal(keys[1], (d_conv, Din)),
        conv_b=jnp.zeros((1, Din), jnp.float32),
        w_x=_normal(keys[2], (Din, R + 2 * d_state)),
        w_dt=_normal(keys[3], (R, Din)),
        b_dt=_normal(keys[4], (Din,), std=0.1),
        A_T=A_T,
        D=jnp.ones((1, Din), jnp.float32),
        w_out=_normal(keys[5], (Din, C)),
    )


def init_params(key, Cin, Cout, K):
    k1, k2 = jax.random.split(key)
    return dict(residual=init_residual_extract(k1, Cin, Cout, K),
                mamba=init_mamba(k2, Cout))


# ----------------------------------------------------------------------------
if __name__ == "__main__":
    B, Cin, Cout, H, W, K = 2, 16, 16, 8, 8, 5
    root = jax.random.PRNGKey(0)
    pk, xk = jax.random.split(root)
    params = init_params(pk, Cin, Cout, K)
    x = jax.random.normal(xk, (B, Cin, H, W), jnp.float32)

    pooled, pre_pool = umamba_enc_block(x, params)
    jax.block_until_ready((pooled, pre_pool))
    assert pooled.shape == (B, Cout, H // 2, W // 2)
    assert pre_pool.shape == (B, Cout, H, W)
    print("KERNEL_OK")
</pallas_src>

<mosaic_0001>
module attributes {stable_mosaic.version = 11 : i64} {
  func.func @enc_block_kernel(%arg0: i32, %arg1: memref<1x8x8x16xf32, #tpu.memory_space<vmem>>, %arg2: memref<25x16xf32, #tpu.memory_space<vmem>>, %arg3: memref<1x16xf32, #tpu.memory_space<vmem>>, %arg4: memref<1x16xf32, #tpu.memory_space<vmem>>, %arg5: memref<16x4xf32, #tpu.memory_space<vmem>>, %arg6: memref<4x16xf32, #tpu.memory_space<vmem>>, %arg7: memref<49x2xf32, #tpu.memory_space<vmem>>, %arg8: memref<16x64xbf16, #tpu.memory_space<vmem>>, %arg9: memref<1x64xf32, #tpu.memory_space<vmem>>, %arg10: memref<1x64xf32, #tpu.memory_space<vmem>>, %arg11: memref<1x64xf32, #tpu.memory_space<vmem>>, %arg12: memref<64x16xbf16, #tpu.memory_space<vmem>>, %arg13: memref<1x16xf32, #tpu.memory_space<vmem>>, %arg14: memref<1x16xf32, #tpu.memory_space<vmem>>, %arg15: memref<1x16xf32, #tpu.memory_space<vmem>>, %arg16: memref<1x8x8x16xf32, #tpu.memory_space<vmem>>, %arg17: memref<12x12x16xf32, #tpu.memory_space<vmem>>, %arg18: memref<14x14xf32, #tpu.memory_space<vmem>>, %arg19: memref<14x14xf32, #tpu.memory_space<vmem>>) attributes {dimension_semantics = [#tpu.dimension_semantics<parallel>], iteration_bounds = array<i64: 2>, scalar_prefetch = 0 : i64, scratch_operands = 3 : i64, tpu.core_type = #tpu.core_type<tc>, window_params = [{transform_indices = @transform_0, window_bounds = array<i64: 1, 8, 8, 16>}, {pipeline_mode = #tpu.pipeline_mode<synchronous>, transform_indices = @transform_1, window_bounds = array<i64: 25, 16>}, {pipeline_mode = #tpu.pipeline_mode<synchronous>, transform_indices = @transform_2, window_bounds = array<i64: 1, 16>}, {pipeline_mode = #tpu.pipeline_mode<synchronous>, transform_indices = @transform_3, window_bounds = array<i64: 1, 16>}, {pipeline_mode = #tpu.pipeline_mode<synchronous>, transform_indices = @transform_4, window_bounds = array<i64: 16, 4>}, {pipeline_mode = #tpu.pipeline_mode<synchronous>, transform_indices = @transform_5, window_bounds = array<i64: 4, 16>}, {pipeline_mode = #tpu.pipeline_mode<synchronous>, transform_indices = @transform_6, window_bounds = array<i64: 49, 2>}, {pipeline_mode = #tpu.pipeline_mode<synchronous>, transform_indices = @transform_7, window_bounds = array<i64: 16, 64>}, {pipeline_mode = #tpu.pipeline_mode<synchronous>, transform_indices = @transform_8, window_bounds = array<i64: 1, 64>}, {pipeline_mode = #tpu.pipeline_mode<synchronous>, transform_indices = @transform_9, window_bounds = array<i64: 1, 64>}, {pipeline_mode = #tpu.pipeline_mode<synchronous>, transform_indices = @transform_10, window_bounds = array<i64: 1, 64>}, {pipeline_mode = #tpu.pipeline_mode<synchronous>, transform_indices = @transform_11, window_bounds = array<i64: 64, 16>}, {pipeline_mode = #tpu.pipeline_mode<synchronous>, transform_indices = @transform_12, window_bounds = array<i64: 1, 16>}, {pipeline_mode = #tpu.pipeline_mode<synchronous>, transform_indices = @transform_13, window_bounds = array<i64: 1, 16>}, {pipeline_mode = #tpu.pipeline_mode<synchronous>, transform_indices = @transform_14, window_bounds = array<i64: 1, 16>}, {transform_indices = @transform_15, window_bounds = array<i64: 1, 8, 8, 16>}]} {
    %c0 = arith.constant 0 : index
    %c0_0 = arith.constant 0 : index
    %c0_1 = arith.constant 0 : index
    %c0_2 = arith.constant 0 : index
    %0 = vector.load %arg1[%c0, %c0_0, %c0_1, %c0_2] : memref<1x8x8x16xf32, #tpu.memory_space<vmem>>, vector<1x8x8x16xf32>
    %1 = vector.shape_cast %0 : vector<1x8x8x16xf32> to vector<8x8x16xf32>
    %cst = arith.constant 0.000000e+00 : f32
    %2 = vector.broadcast %cst : f32 to vector<12x12x16xf32>
    %c0_3 = arith.constant 0 : index
    %c0_4 = arith.constant 0 : index
    %c0_5 = arith.constant 0 : index
    %3 = vector.load %arg17[%c0_3, %c0_4, %c0_5] : memref<12x12x16xf32, #tpu.memory_space<vmem>>, vector<12x12x16xf32>
    tpu.vector_store %arg17[%c0_3, %c0_4, %c0_5], %2 {strides = array<i32>} : memref<12x12x16xf32, #tpu.memory_space<vmem>>, vector<12x12x16xf32>,
    %c2 = arith.constant 2 : index
    %c2_6 = arith.constant 2 : index
    %c0_7 = arith.constant 0 : index
    %4 = vector.load %arg17[%c2, %c2_6, %c0_7] : memref<12x12x16xf32, #tpu.memory_space<vmem>>, vector<8x8x16xf32>
    tpu.vector_store %arg17[%c2, %c2_6, %c0_7], %1 {strides = array<i32>} : memref<12x12x16xf32, #tpu.memory_space<vmem>>, vector<8x8x16xf32>,
    %c0_8 = arith.constant 0 : index
    %c0_9 = arith.constant 0 : index
    %c0_10 = arith.constant 0 : index
    %5 = vector.load %arg17[%c0_8, %c0_9, %c0_10] : memref<12x12x16xf32, #tpu.memory_space<vmem>>, vector<12x12x16xf32>
    %c0_11 = arith.constant 0 : index
    %c0_12 = arith.constant 0 : index
    %6 = vector.load %arg2[%c0_11, %c0_12] : memref<25x16xf32, #tpu.memory_space<vmem>>, vector<25x16xf32>
    %cst_13 = arith.constant 0.000000e+00 : f32
    %7 = vector.broadcast %cst_13 : f32 to vector<8x8x16xf32>
    %8 = vector.extract_strided_slice %5 {offsets = [0, 0, 0], sizes = [8, 8, 16], strides = [1, 1, 1]} : vector<12x12x16xf32> to vector<8x8x16xf32>
    %9 = vector.extract_strided_slice %6 {offsets = [0, 0], sizes = [1, 16], strides = [1, 1]} : vector<25x16xf32> to vector<1x16xf32>
    %10 = vector.shape_cast %9 : vector<1x16xf32> to vector<1x1x16xf32>
    %11 = vector.broadcast %10 : vector<1x1x16xf32> to vector<8x8x16xf32>
    %12 = arith.mulf %8, %11 : vector<8x8x16xf32>
    %13 = arith.addf %7, %12 : vector<8x8x16xf32>
    %14 = vector.extract_strided_slice %5 {offsets = [0, 1, 0], sizes = [8, 8, 16], strides = [1, 1, 1]} : vector<12x12x16xf32> to vector<8x8x16xf32>
    %15 = vector.extract_strided_slice %6 {offsets = [1, 0], sizes = [1, 16], strides = [1, 1]} : vector<25x16xf32> to vector<1x16xf32>
    %16 = vector.shape_cast %15 : vector<1x16xf32> to vector<1x1x16xf32>
    %17 = vector.broadcast %16 : vector<1x1x16xf32> to vector<8x8x16xf32>
    %18 = arith.mulf %14, %17 : vector<8x8x16xf32>
    %19 = arith.addf %13, %18 : vector<8x8x16xf32>
    %20 = vector.extract_strided_slice %5 {offsets = [0, 2, 0], sizes = [8, 8, 16], strides = [1, 1, 1]} : vector<12x12x16xf32> to vector<8x8x16xf32>
    %21 = vector.extract_strided_slice %6 {offsets = [2, 0], sizes = [1, 16], strides = [1, 1]} : vector<25x16xf32> to vector<1x16xf32>
    %22 = vector.shape_cast %21 : vector<1x16xf32> to vector<1x1x16xf32>
    %23 = vector.broadcast %22 : vector<1x1x16xf32> to vector<8x8x16xf32>
    %24 = arith.mulf %20, %23 : vector<8x8x16xf32>
    %25 = arith.addf %19, %24 : vector<8x8x16xf32>
    %26 = vector.extract_strided_slice %5 {offsets = [0, 3, 0], sizes = [8, 8, 16], strides = [1, 1, 1]} : vector<12x12x16xf32> to vector<8x8x16xf32>
    %27 = vector.extract_strided_slice %6 {offsets = [3, 0], sizes = [1, 16], strides = [1, 1]} : vector<25x16xf32> to vector<1x16xf32>
    %28 = vector.shape_cast %27 : vector<1x16xf32> to vector<1x1x16xf32>
    %29 = vector.broadcast %28 : vector<1x1x16xf32> to vector<8x8x16xf32>
    %30 = arith.mulf %26, %29 : vector<8x8x16xf32>
    %31 = arith.addf %25, %30 : vector<8x8x16xf32>
    %32 = vector.extract_strided_slice %5 {offsets = [0, 4, 0], sizes = [8, 8, 16], strides = [1, 1, 1]} : vector<12x12x16xf32> to vector<8x8x16xf32>
    %33 = vector.extract_strided_slice %6 {offsets = [4, 0], sizes = [1, 16], strides = [1, 1]} : vector<25x16xf32> to vector<1x16xf32>
    %34 = vector.shape_cast %33 : vector<1x16xf32> to vector<1x1x16xf32>
    %35 = vector.broadcast %34 : vector<1x1x16xf32> to vector<8x8x16xf32>
    %36 = arith.mulf %32, %35 : vector<8x8x16xf32>
    %37 = arith.addf %31, %36 : vector<8x8x16xf32>
    %38 = vector.extract_strided_slice %5 {offsets = [1, 0, 0], sizes = [8, 8, 16], strides = [1, 1, 1]} : vector<12x12x16xf32> to vector<8x8x16xf32>
    %39 = vector.extract_strided_slice %6 {offsets = [5, 0], sizes = [1, 16], strides = [1, 1]} : vector<25x16xf32> to vector<1x16xf32>
    %40 = vector.shape_cast %39 : vector<1x16xf32> to vector<1x1x16xf32>
    %41 = vector.broadcast %40 : vector<1x1x16xf32> to vector<8x8x16xf32>
    %42 = arith.mulf %38, %41 : vector<8x8x16xf32>
    %43 = arith.addf %37, %42 : vector<8x8x16xf32>
    %44 = vector.extract_strided_slice %5 {offsets = [1, 1, 0], sizes = [8, 8, 16], strides = [1, 1, 1]} : vector<12x12x16xf32> to vector<8x8x16xf32>
    %45 = vector.extract_strided_slice %6 {offsets = [6, 0], sizes = [1, 16], strides = [1, 1]} : vector<25x16xf32> to vector<1x16xf32>
    %46 = vector.shape_cast %45 : vector<1x16xf32> to vector<1x1x16xf32>
    %47 = vector.broadcast %46 : vector<1x1x16xf32> to vector<8x8x16xf32>
    %48 = arith.mulf %44, %47 : vector<8x8x16xf32>
    %49 = arith.addf %43, %48 : vector<8x8x16xf32>
    %50 = vector.extract_strided_slice %5 {offsets = [1, 2, 0], sizes = [8, 8, 16], strides = [1, 1, 1]} : vector<12x12x16xf32> to vector<8x8x16xf32>
    %51 = vector.extract_strided_slice %6 {offsets = [7, 0], sizes = [1, 16], strides = [1, 1]} : vector<25x16xf32> to vector<1x16xf32>
    %52 = vector.shape_cast %51 : vector<1x16xf32> to vector<1x1x16xf32>
    %53 = vector.broadcast %52 : vector<1x1x16xf32> to vector<8x8x16xf32>
    %54 = arith.mulf %50, %53 : vector<8x8x16xf32>
    %55 = arith.addf %49, %54 : vector<8x8x16xf32>
    %56 = vector.extract_strided_slice %5 {offsets = [1, 3, 0], sizes = [8, 8, 16], strides = [1, 1, 1]} : vector<12x12x16xf32> to vector<8x8x16xf32>
    %57 = vector.extract_strided_slice %6 {offsets = [8, 0], sizes = [1, 16], strides = [1, 1]} : vector<25x16xf32> to vector<1x16xf32>
    %58 = vector.shape_cast %57 : vector<1x16xf32> to vector<1x1x16xf32>
    %59 = vector.broadcast %58 : vector<1x1x16xf32> to vector<8x8x16xf32>
    %60 = arith.mulf %56, %59 : vector<8x8x16xf32>
    %61 = arith.addf %55, %60 : vector<8x8x16xf32>
    %62 = vector.extract_strided_slice %5 {offsets = [1, 4, 0], sizes = [8, 8, 16], strides = [1, 1, 1]} : vector<12x12x16xf32> to vector<8x8x16xf32>
    %63 = vector.extract_strided_slice %6 {offsets = [9, 0], sizes = [1, 16], strides = [1, 1]} : vector<25x16xf32> to vector<1x16xf32>
    %64 = vector.shape_cast %63 : vector<1x16xf32> to vector<1x1x16xf32>
    %65 = vector.broadcast %64 : vector<1x1x16xf32> to vector<8x8x16xf32>
    %66 = arith.mulf %62, %65 : vector<8x8x16xf32>
    %67 = arith.addf %61, %66 : vector<8x8x16xf32>
    %68 = vector.extract_strided_slice %5 {offsets = [2, 0, 0], sizes = [8, 8, 16], strides = [1, 1, 1]} : vector<12x12x16xf32> to vector<8x8x16xf32>
    %69 = vector.extract_strided_slice %6 {offsets = [10, 0], sizes = [1, 16], strides = [1, 1]} : vector<25x16xf32> to vector<1x16xf32>
    %70 = vector.shape_cast %69 : vector<1x16xf32> to vector<1x1x16xf32>
    %71 = vector.broadcast %70 : vector<1x1x16xf32> to vector<8x8x16xf32>
    %72 = arith.mulf %68, %71 : vector<8x8x16xf32>
    %73 = arith.addf %67, %72 : vector<8x8x16xf32>
    %74 = vector.extract_strided_slice %5 {offsets = [2, 1, 0], sizes = [8, 8, 16], strides = [1, 1, 1]} : vector<12x12x16xf32> to vector<8x8x16xf32>
    %75 = vector.extract_strided_slice %6 {offsets = [11, 0], sizes = [1, 16], strides = [1, 1]} : vector<25x16xf32> to vector<1x16xf32>
    %76 = vector.shape_cast %75 : vector<1x16xf32> to vector<1x1x16xf32>
    %77 = vector.broadcast %76 : vector<1x1x16xf32> to vector<8x8x16xf32>
    %78 = arith.mulf %74, %77 : vector<8x8x16xf32>
    %79 = arith.addf %73, %78 : vector<8x8x16xf32>
    %80 = vector.extract_strided_slice %5 {offsets = [2, 2, 0], sizes = [8, 8, 16], strides = [1, 1, 1]} : vector<12x12x16xf32> to vector<8x8x16xf32>
    %81 = vector.extract_strided_slice %6 {offsets = [12, 0], sizes = [1, 16], strides = [1, 1]} : vector<25x16xf32> to vector<1x16xf32>
    %82 = vector.shape_cast %81 : vector<1x16xf32> to vector<1x1x16xf32>
    %83 = vector.broadcast %82 : vector<1x1x16xf32> to vector<8x8x16xf32>
    %84 = arith.mulf %80, %83 : vector<8x8x16xf32>
    %85 = arith.addf %79, %84 : vector<8x8x16xf32>
    %86 = vector.extract_strided_slice %5 {offsets = [2, 3, 0], sizes = [8, 8, 16], strides = [1, 1, 1]} : vector<12x12x16xf32> to vector<8x8x16xf32>
    %87 = vector.extract_strided_slice %6 {offsets = [13, 0], sizes = [1, 16], strides = [1, 1]} : vector<25x16xf32> to vector<1x16xf32>
    %88 = vector.shape_cast %87 : vector<1x16xf32> to vector<1x1x16xf32>
    %89 = vector.broadcast %88 : vector<1x1x16xf32> to vector<8x8x16xf32>
    %90 = arith.mulf %86, %89 : vector<8x8x16xf32>
    %91 = arith.addf %85, %90 : vector<8x8x16xf32>
    %92 = vector.extract_strided_slice %5 {offsets = [2, 4, 0], sizes = [8, 8, 16], strides = [1, 1, 1]} : vector<12x12x16xf32> to vector<8x8x16xf32>
    %93 = vector.extract_strided_slice %6 {offsets = [14, 0], sizes = [1, 16], strides = [1, 1]} : vector<25x16xf32> to vector<1x16xf32>
    %94 = vector.shape_cast %93 : vector<1x16xf32> to vector<1x1x16xf32>
    %95 = vector.broadcast %94 : vector<1x1x16xf32> to vector<8x8x16xf32>
    %96 = arith.mulf %92, %95 : vector<8x8x16xf32>
    %97 = arith.addf %91, %96 : vector<8x8x16xf32>
    %98 = vector.extract_strided_slice %5 {offsets = [3, 0, 0], sizes = [8, 8, 16], strides = [1, 1, 1]} : vector<12x12x16xf32> to vector<8x8x16xf32>
    %99 = vector.extract_strided_slice %6 {offsets = [15, 0], sizes = [1, 16], strides = [1, 1]} : vector<25x16xf32> to vector<1x16xf32>
    %100 = vector.shape_cast %99 : vector<1x16xf32> to vector<1x1x16xf32>
    %101 = vector.broadcast %100 : vector<1x1x16xf32> to vector<8x8x16xf32>
    %102 = arith.mulf %98, %101 : vector<8x8x16xf32>
    %103 = arith.addf %97, %102 : vector<8x8x16xf32>
    %104 = vector.extract_strided_slice %5 {offsets = [3, 1, 0], sizes = [8, 8, 16], strides = [1, 1, 1]} : vector<12x12x16xf32> to vector<8x8x16xf32>
    %105 = vector.extract_strided_slice %6 {offsets = [16, 0], sizes = [1, 16], strides = [1, 1]} : vector<25x16xf32> to vector<1x16xf32>
    %106 = vector.shape_cast %105 : vector<1x16xf32> to vector<1x1x16xf32>
    %107 = vector.broadcast %106 : vector<1x1x16xf32> to vector<8x8x16xf32>
    %108 = arith.mulf %104, %107 : vector<8x8x16xf32>
    %109 = arith.addf %103, %108 : vector<8x8x16xf32>
    %110 = vector.extract_strided_slice %5 {offsets = [3, 2, 0], sizes = [8, 8, 16], strides = [1, 1, 1]} : vector<12x12x16xf32> to vector<8x8x16xf32>
    %111 = vector.extract_strided_slice %6 {offsets = [17, 0], sizes = [1, 16], strides = [1, 1]} : vector<25x16xf32> to vector<1x16xf32>
    %112 = vector.shape_cast %111 : vector<1x16xf32> to vector<1x1x16xf32>
    %113 = vector.broadcast %112 : vector<1x1x16xf32> to vector<8x8x16xf32>
    %114 = arith.mulf %110, %113 : vector<8x8x16xf32>
    %115 = arith.addf %109, %114 : vector<8x8x16xf32>
    %116 = vector.extract_strided_slice %5 {offsets = [3, 3, 0], sizes = [8, 8, 16], strides = [1, 1, 1]} : vector<12x12x16xf32> to vector<8x8x16xf32>
    %117 = vector.extract_strided_slice %6 {offsets = [18, 0], sizes = [1, 16], strides = [1, 1]} : vector<25x16xf32> to vector<1x16xf32>
    %118 = vector.shape_cast %117 : vector<1x16xf32> to vector<1x1x16xf32>
    %119 = vector.broadcast %118 : vector<1x1x16xf32> to vector<8x8x16xf32>
    %120 = arith.mulf %116, %119 : vector<8x8x16xf32>
    %121 = arith.addf %115, %120 : vector<8x8x16xf32>
    %122 = vector.extract_strided_slice %5 {offsets = [3, 4, 0], sizes = [8, 8, 16], strides = [1, 1, 1]} : vector<12x12x16xf32> to vector<8x8x16xf32>
    %123 = vector.extract_strided_slice %6 {offsets = [19, 0], sizes = [1, 16], strides = [1, 1]} : vector<25x16xf32> to vector<1x16xf32>
    %124 = vector.shape_cast %123 : vector<1x16xf32> to vector<1x1x16xf32>
    %125 = vector.broadcast %124 : vector<1x1x16xf32> to vector<8x8x16xf32>
    %126 = arith.mulf %122, %125 : vector<8x8x16xf32>
    %127 = arith.addf %121, %126 : vector<8x8x16xf32>
    %128 = vector.extract_strided_slice %5 {offsets = [4, 0, 0], sizes = [8, 8, 16], strides = [1, 1, 1]} : vector<12x12x16xf32> to vector<8x8x16xf32>
    %129 = vector.extract_strided_slice %6 {offsets = [20, 0], sizes = [1, 16], strides = [1, 1]} : vector<25x16xf32> to vector<1x16xf32>
    %130 = vector.shape_cast %129 : vector<1x16xf32> to vector<1x1x16xf32>
    %131 = vector.broadcast %130 : vector<1x1x16xf32> to vector<8x8x16xf32>
    %132 = arith.mulf %128, %131 : vector<8x8x16xf32>
    %133 = arith.addf %127, %132 : vector<8x8x16xf32>
    %134 = vector.extract_strided_slice %5 {offsets = [4, 1, 0], sizes = [8, 8, 16], strides = [1, 1, 1]} : vector<12x12x16xf32> to vector<8x8x16xf32>
    %135 = vector.extract_strided_slice %6 {offsets = [21, 0], sizes = [1, 16], strides = [1, 1]} : vector<25x16xf32> to vector<1x16xf32>
    %136 = vector.shape_cast %135 : vector<1x16xf32> to vector<1x1x16xf32>
    %137 = vector.broadcast %136 : vector<1x1x16xf32> to vector<8x8x16xf32>
    %138 = arith.mulf %134, %137 : vector<8x8x16xf32>
    %139 = arith.addf %133, %138 : vector<8x8x16xf32>
    %140 = vector.extract_strided_slice %5 {offsets = [4, 2, 0], sizes = [8, 8, 16], strides = [1, 1, 1]} : vector<12x12x16xf32> to vector<8x8x16xf32>
    %141 = vector.extract_strided_slice %6 {offsets = [22, 0], sizes = [1, 16], strides = [1, 1]} : vector<25x16xf32> to vector<1x16xf32>
    %142 = vector.shape_cast %141 : vector<1x16xf32> to vector<1x1x16xf32>
    %143 = vector.broadcast %142 : vector<1x1x16xf32> to vector<8x8x16xf32>
    %144 = arith.mulf %140, %143 : vector<8x8x16xf32>
    %145 = arith.addf %139, %144 : vector<8x8x16xf32>
    %146 = vector.extract_strided_slice %5 {offsets = [4, 3, 0], sizes = [8, 8, 16], strides = [1, 1, 1]} : vector<12x12x16xf32> to vector<8x8x16xf32>
    %147 = vector.extract_strided_slice %6 {offsets = [23, 0], sizes = [1, 16], strides = [1, 1]} : vector<25x16xf32> to vector<1x16xf32>
    %148 = vector.shape_cast %147 : vector<1x16xf32> to vector<1x1x16xf32>
    %149 = vector.broadcast %148 : vector<1x1x16xf32> to vector<8x8x16xf32>
    %150 = arith.mulf %146, %149 : vector<8x8x16xf32>
    %151 = arith.addf %145, %150 : vector<8x8x16xf32>
    %152 = vector.extract_strided_slice %5 {offsets = [4, 4, 0], sizes = [8, 8, 16], strides = [1, 1, 1]} : vector<12x12x16xf32> to vector<8x8x16xf32>
    %153 = vector.extract_strided_slice %6 {offsets = [24, 0], sizes = [1, 16], strides = [1, 1]} : vector<25x16xf32> to vector<1x16xf32>
    %154 = vector.shape_cast %153 : vector<1x16xf32> to vector<1x1x16xf32>
    %155 = vector.broadcast %154 : vector<1x1x16xf32> to vector<8x8x16xf32>
    %156 = arith.mulf %152, %155 : vector<8x8x16xf32>
    %157 = arith.addf %151, %156 : vector<8x8x16xf32>
    %c0_14 = arith.constant 0 : index
    %c0_15 = arith.constant 0 : index
    %158 = vector.load %arg3[%c0_14, %c0_15] : memref<1x16xf32, #tpu.memory_space<vmem>>, vector<1x16xf32>
    %159 = vector.shape_cast %158 : vector<1x16xf32> to vector<1x1x16xf32>
    %160 = vector.broadcast %159 : vector<1x1x16xf32> to vector<8x8x16xf32>
    %161 = arith.mulf %157, %160 : vector<8x8x16xf32>
    %c0_16 = arith.constant 0 : index
    %c0_17 = arith.constant 0 : index
    %162 = vector.load %arg4[%c0_16, %c0_17] : memref<1x16xf32, #tpu.memory_space<vmem>>, vector<1x16xf32>
    %163 = vector.shape_cast %162 : vector<1x16xf32> to vector<1x1x16xf32>
    %164 = vector.broadcast %163 : vector<1x1x16xf32> to vector<8x8x16xf32>
    %165 = arith.addf %161, %164 : vector<8x8x16xf32>
    %166 = vector.shape_cast %165 : vector<8x8x16xf32> to vector<64x16xf32>
    %cst_18 = arith.constant dense<0.000000e+00> : vector<16xf32>
    %167 = vector.multi_reduction <add>, %166, %cst_18 [0] : vector<64x16xf32> to vector<16xf32>
    %168 = vector.shape_cast %167 : vector<16xf32> to vector<1x16xf32>
    %cst_19 = arith.constant 6.400000e+01 : f32
    %169 = vector.broadcast %cst_19 : f32 to vector<1x16xf32>
    %170 = arith.divf %168, %169 : vector<1x16xf32>
    %cst_20 = arith.constant dense<0xFF800000> : vector<16xf32>
    %171 = vector.multi_reduction <maximumf>, %166, %cst_20 [0] : vector<64x16xf32> to vector<16xf32>
    %172 = vector.shape_cast %171 : vector<16xf32> to vector<1x16xf32>
    %173 = tpu.concatenate %170, %172 in 0 : vector<1x16xf32>, vector<1x16xf32> -> vector<2x16xf32>
    %c0_21 = arith.constant 0 : index
    %c0_22 = arith.constant 0 : index
    %174 = vector.load %arg5[%c0_21, %c0_22] : memref<16x4xf32, #tpu.memory_space<vmem>>, vector<16x4xf32>
    %cst_23 = arith.constant dense<0.000000e+00> : vector<2x4xf32>
    %175 = tpu.matmul %173, %174, %cst_23 {dimension_numbers = #tpu.dot_dimension_numbers<[1], [0], [0], [1], [0, 0, 1, 1], [], []>} : vector<2x16xf32>, vector<16x4xf32>, vector<2x4xf32> -> vector<2x4xf32>
    %cst_24 = arith.constant 0.000000e+00 : f32
    %176 = vector.broadcast %cst_24 : f32 to vector<2x4xf32>
    %177 = arith.maximumf %175, %176 : vector<2x4xf32>
    %c0_25 = arith.constant 0 : index
    %c0_26 = arith.constant 0 : index
    %178 = vector.load %arg6[%c0_25, %c0_26] : memref<4x16xf32, #tpu.memory_space<vmem>>, vector<4x16xf32>
    %cst_27 = arith.constant dense<0.000000e+00> : vector<2x16xf32>
    %179 = tpu.matmul %177, %178, %cst_27 {dimension_numbers = #tpu.dot_dimension_numbers<[1], [0], [0], [1], [0, 0, 1, 1], [], []>} : vector<2x4xf32>, vector<4x16xf32>, vector<2x16xf32> -> vector<2x16xf32>
    %cst_28 = arith.constant dense<0.000000e+00> : vector<16xf32>
    %180 = vector.multi_reduction <add>, %179, %cst_28 [0] : vector<2x16xf32> to vector<16xf32>
    %181 = vector.shape_cast %180 : vector<16xf32> to vector<1x16xf32>
    %182 = arith.negf %181 : vector<1x16xf32>
    %183 = math.exp %182 : vector<1x16xf32>
    %cst_29 = arith.constant 1.000000e+00 : f32
    %184 = vector.broadcast %cst_29 : f32 to vector<1x16xf32>
    %185 = arith.addf %184, %183 : vector<1x16xf32>
    %186 = arith.divf %184, %185 : vector<1x16xf32>
    %187 = vector.shape_cast %186 : vector<1x16xf32> to vector<1x1x16xf32>
    %188 = vector.broadcast %187 : vector<1x1x16xf32> to vector<8x8x16xf32>
    %189 = arith.mulf %165, %188 : vector<8x8x16xf32>
    %cst_30 = arith.constant 0.000000e+00 : f32
    %190 = vector.broadcast %cst_30 : f32 to vector<14x14xf32>
    %c0_31 = arith.constant 0 : index
    %c0_32 = arith.constant 0 : index
    %191 = vector.load %arg18[%c0_31, %c0_32] : memref<14x14xf32, #tpu.memory_space<vmem>>, vector<14x14xf32>
    tpu.vector_store %arg18[%c0_31, %c0_32], %190 {strides = array<i32>} : memref<14x14xf32, #tpu.memory_space<vmem>>, vector<14x14xf32>,
    %cst_33 = arith.constant 0.000000e+00 : f32
    %192 = vector.broadcast %cst_33 : f32 to vector<14x14xf32>
    %c0_34 = arith.constant 0 : index
    %c0_35 = arith.constant 0 : index
    %193 = vector.load %arg19[%c0_34, %c0_35] : memref<14x14xf32, #tpu.memory_space<vmem>>, vector<14x14xf32>
    tpu.vector_store %arg19[%c0_34, %c0_35], %192 {strides = array<i32>} : memref<14x14xf32, #tpu.memory_space<vmem>>, vector<14x14xf32>,
    %cst_36 = arith.constant dense<0.000000e+00> : vector<8x8xf32>
    %194 = vector.multi_reduction <add>, %189, %cst_36 [2] : vector<8x8x16xf32> to vector<8x8xf32>
    %cst_37 = arith.constant 1.600000e+01 : f32
    %195 = vector.broadcast %cst_37 : f32 to vector<8x8xf32>
    %196 = arith.divf %194, %195 : vector<8x8xf32>
    %c3 = arith.constant 3 : index
    %c3_38 = arith.constant 3 : index
    %197 = vector.load %arg18[%c3, %c3_38] : memref<14x14xf32, #tpu.memory_space<vmem>>, vector<8x8xf32>
    tpu.vector_store %arg18[%c3, %c3_38], %196 {strides = array<i32>} : memref<14x14xf32, #tpu.memory_space<vmem>>, vector<8x8xf32>,
    %cst_39 = arith.constant dense<0xFF800000> : vector<8x8xf32>
    %198 = vector.multi_reduction <maximumf>, %189, %cst_39 [2] : vector<8x8x16xf32> to vector<8x8xf32>
    %c3_40 = arith.constant 3 : index
    %c3_41 = arith.constant 3 : index
    %199 = vector.load %arg19[%c3_40, %c3_41] : memref<14x14xf32, #tpu.memory_space<vmem>>, vector<8x8xf32>
    tpu.vector_store %arg19[%c3_40, %c3_41], %198 {strides = array<i32>} : memref<14x14xf32, #tpu.memory_space<vmem>>, vector<8x8xf32>,
    %c0_42 = arith.constant 0 : index
    %c0_43 = arith.constant 0 : index
    %200 = vector.load %arg18[%c0_42, %c0_43] : memref<14x14xf32, #tpu.memory_space<vmem>>, vector<14x14xf32>
    %c0_44 = arith.constant 0 : index
    %c0_45 = arith.constant 0 : index
    %201 = vector.load %arg19[%c0_44, %c0_45] : memref<14x14xf32, #tpu.memory_space<vmem>>, vector<14x14xf32>
    %c0_46 = arith.constant 0 : index
    %c0_47 = arith.constant 0 : index
    %202 = vector.load %arg7[%c0_46, %c0_47] : memref<49x2xf32, #tpu.memory_space<vmem>>, vector<49x2xf32>
    %cst_48 = arith.constant 0.000000e+00 : f32
    %203 = vector.broadcast %cst_48 : f32 to vector<8x8xf32>
    %204 = vector.extract_strided_slice %200 {offsets = [0, 0], sizes = [8, 8], strides = [1, 1]} : vector<14x14xf32> to vector<8x8xf32>
    %205 = vector.extract_strided_slice %202 {offsets = [0, 0], sizes = [1, 1], strides = [1, 1]} : vector<49x2xf32> to vector<1x1xf32>
    %206 = vector.broadcast %205 : vector<1x1xf32> to vector<8x8xf32>
    %207 = arith.mulf %204, %206 : vector<8x8xf32>
    %208 = arith.addf %203, %207 : vector<8x8xf32>
    %209 = vector.extract_strided_slice %201 {offsets = [0, 0], sizes = [8, 8], strides = [1, 1]} : vector<14x14xf32> to vector<8x8xf32>
    %210 = vector.extract_strided_slice %202 {offsets = [0, 1], sizes = [1, 1], strides = [1, 1]} : vector<49x2xf32> to vector<1x1xf32>
    %211 = vector.broadcast %210 : vector<1x1xf32> to vector<8x8xf32>
    %212 = arith.mulf %209, %211 : vector<8x8xf32>
    %213 = arith.addf %208, %212 : vector<8x8xf32>
    %214 = vector.extract_strided_slice %200 {offsets = [0, 1], sizes = [8, 8], strides = [1, 1]} : vector<14x14xf32> to vector<8x8xf32>
    %215 = vector.extract_strided_slice %202 {offsets = [1, 0], sizes = [1, 1], strides = [1, 1]} : vector<49x2xf32> to vector<1x1xf32>
    %216 = vector.broadcast %215 : vector<1x1xf32> to vector<8x8xf32>
    %217 = arith.mulf %214, %216 : vector<8x8xf32>
    %218 = arith.addf %213, %217 : vector<8x8xf32>
    %219 = vector.extract_strided_slice %201 {offsets = [0, 1], sizes = [8, 8], strides = [1, 1]} : vector<14x14xf32> to vector<8x8xf32>
    %220 = vector.extract_strided_slice %202 {offsets = [1, 1], sizes = [1, 1], strides = [1, 1]} : vector<49x2xf32> to vector<1x1xf32>
    %221 = vector.broadcast %220 : vector<1x1xf32> to vector<8x8xf32>
    %222 = arith.mulf %219, %221 : vector<8x8xf32>
    %223 = arith.addf %218, %222 : vector<8x8xf32>
    %224 = vector.extract_strided_slice %200 {offsets = [0, 2], sizes = [8, 8], strides = [1, 1]} : vector<14x14xf32> to vector<8x8xf32>
    %225 = vector.extract_strided_slice %202 {offsets = [2, 0], sizes = [1, 1], strides = [1, 1]} : vector<49x2xf32> to vector<1x1xf32>
    %226 = vector.broadcast %225 : vector<1x1xf32> to vector<8x8xf32>
    %227 = arith.mulf %224, %226 : vector<8x8xf32>
    %228 = arith.addf %223, %227 : vector<8x8xf32>
    %229 = vector.extract_strided_slice %201 {offsets = [0, 2], sizes = [8, 8], strides = [1, 1]} : vector<14x14xf32> to vector<8x8xf32>
    %230 = vector.extract_strided_slice %202 {offsets = [2, 1], sizes = [1, 1], strides = [1, 1]} : vector<49x2xf32> to vector<1x1xf32>
    %231 = vector.broadcast %230 : vector<1x1xf32> to vector<8x8xf32>
    %232 = arith.mulf %229, %231 : vector<8x8xf32>
    %233 = arith.addf %228, %232 : vector<8x8xf32>
    %234 = vector.extract_strided_slice %200 {offsets = [0, 3], sizes = [8, 8], strides = [1, 1]} : vector<14x14xf32> to vector<8x8xf32>
    %235 = vector.extract_strided_slice %202 {offsets = [3, 0], sizes = [1, 1], strides = [1, 1]} : vector<49x2xf32> to vector<1x1xf32>
    %236 = vector.broadcast %235 : vector<1x1xf32> to vector<8x8xf32>
    %237 = arith.mulf %234, %236 : vector<8x8xf32>
    %238 = arith.addf %233, %237 : vector<8x8xf32>
    %239 = vector.extract_strided_slice %201 {offsets = [0, 3], sizes = [8, 8], strides = [1, 1]} : vector<14x14xf32> to vector<8x8xf32>
    %240 = vector.extract_strided_slice %202 {offsets = [3, 1], sizes = [1, 1], strides = [1, 1]} : vector<49x2xf32> to vector<1x1xf32>
    %241 = vector.broadcast %240 : vector<1x1xf32> to vector<8x8xf32>
    %242 = arith.mulf %239, %241 : vector<8x8xf32>
    %243 = arith.addf %238, %242 : vector<8x8xf32>
    %244 = vector.extract_strided_slice %200 {offsets = [0, 4], sizes = [8, 8], strides = [1, 1]} : vector<14x14xf32> to vector<8x8xf32>
    %245 = vector.extract_strided_slice %202 {offsets = [4, 0], sizes = [1, 1], strides = [1, 1]} : vector<49x2xf32> to vector<1x1xf32>
    %246 = vector.broadcast %245 : vector<1x1xf32> to vector<8x8xf32>
    %247 = arith.mulf %244, %246 : vector<8x8xf32>
    %248 = arith.addf %243, %247 : vector<8x8xf32>
    %249 = vector.extract_strided_slice %201 {offsets = [0, 4], sizes = [8, 8], strides = [1, 1]} : vector<14x14xf32> to vector<8x8xf32>
    %250 = vector.extract_strided_slice %202 {offsets = [4, 1], sizes = [1, 1], strides = [1, 1]} : vector<49x2xf32> to vector<1x1xf32>
    %251 = vector.broadcast %250 : vector<1x1xf32> to vector<8x8xf32>
    %252 = arith.mulf %249, %251 : vector<8x8xf32>
    %253 = arith.addf %248, %252 : vector<8x8xf32>
    %254 = vector.extract_strided_slice %200 {offsets = [0, 5], sizes = [8, 8], strides = [1, 1]} : vector<14x14xf32> to vector<8x8xf32>
    %255 = vector.extract_strided_slice %202 {offsets = [5, 0], sizes = [1, 1], strides = [1, 1]} : vector<49x2xf32> to vector<1x1xf32>
    %256 = vector.broadcast %255 : vector<1x1xf32> to vector<8x8xf32>
    %257 = arith.mulf %254, %256 : vector<8x8xf32>
    %258 = arith.addf %253, %257 : vector<8x8xf32>
    %259 = vector.extract_strided_slice %201 {offsets = [0, 5], sizes = [8, 8], strides = [1, 1]} : vector<14x14xf32> to vector<8x8xf32>
    %260 = vector.extract_strided_slice %202 {offsets = [5, 1], sizes = [1, 1], strides = [1, 1]} : vector<49x2xf32> to vector<1x1xf32>
    %261 = vector.broadcast %260 : vector<1x1xf32> to vector<8x8xf32>
    %262 = arith.mulf %259, %261 : vector<8x8xf32>
    %263 = arith.addf %258, %262 : vector<8x8xf32>
    %264 = vector.extract_strided_slice %200 {offsets = [0, 6], sizes = [8, 8], strides = [1, 1]} : vector<14x14xf32> to vector<8x8xf32>
    %265 = vector.extract_strided_slice %202 {offsets = [6, 0], sizes = [1, 1], strides = [1, 1]} : vector<49x2xf32> to vector<1x1xf32>
    %266 = vector.broadcast %265 : vector<1x1xf32> to vector<8x8xf32>
    %267 = arith.mulf %264, %266 : vector<8x8xf32>
    %268 = arith.addf %263, %267 : vector<8x8xf32>
    %269 = vector.extract_strided_slice %201 {offsets = [0, 6], sizes = [8, 8], strides = [1, 1]} : vector<14x14xf32> to vector<8x8xf32>
    %270 = vector.extract_strided_slice %202 {offsets = [6, 1], sizes = [1, 1], strides = [1, 1]} : vector<49x2xf32> to vector<1x1xf32>
    %271 = vector.broadcast %270 : vector<1x1xf32> to vector<8x8xf32>
    %272 = arith.mulf %269, %271 : vector<8x8xf32>
    %273 = arith.addf %268, %272 : vector<8x8xf32>
    %274 = vector.extract_strided_slice %200 {offsets = [1, 0], sizes = [8, 8], strides = [1, 1]} : vector<14x14xf32> to vector<8x8xf32>
    %275 = vector.extract_strided_slice %202 {offsets = [7, 0], sizes = [1, 1], strides = [1, 1]} : vector<49x2xf32> to vector<1x1xf32>
    %276 = vector.broadcast %275 : vector<1x1xf32> to vector<8x8xf32>
    %277 = arith.mulf %274, %276 : vector<8x8xf32>
    %278 = arith.addf %273, %277 : vector<8x8xf32>
    %279 = vector.extract_strided_slice %201 {offsets = [1, 0], sizes = [8, 8], strides = [1, 1]} : vector<14x14xf32> to vector<8x8xf32>
    %280 = vector.extract_strided_slice %202 {offsets = [7, 1], sizes = [1, 1], strides = [1, 1]} : vector<49x2xf32> to vector<1x1xf32>
    %281 = vector.broadcast %280 : vector<1x1xf32> to vector<8x8xf32>
    %282 = arith.mulf %279, %281 : vector<8x8xf32>
    %283 = arith.addf %278, %282 : vector<8x8xf32>
    %284 = vector.extract_strided_slice %200 {offsets = [1, 1], sizes = [8, 8], strides = [1, 1]} : vector<14x14xf32> to vector<8x8xf32>
    %285 = vector.extract_strided_slice %202 {offsets = [8, 0], sizes = [1, 1], strides = [1, 1]} : vector<49x2xf32> to vector<1x1xf32>
    %286 = vector.broadcast %285 : vector<1x1xf32> to vector<8x8xf32>
    %287 = arith.mulf %284, %286 : vector<8x8xf32>
    %288 = arith.addf %283, %287 : vector<8x8xf32>
    %289 = vector.extract_strided_slice %201 {offsets = [1, 1], sizes = [8, 8], strides = [1, 1]} : vector<14x14xf32> to vector<8x8xf32>
    %290 = vector.extract_strided_slice %202 {offsets = [8, 1], sizes = [1, 1], strides = [1, 1]} : vector<49x2xf32> to vector<1x1xf32>
    %291 = vector.broadcast %290 : vector<1x1xf32> to vector<8x8xf32>
    %292 = arith.mulf %289, %291 : vector<8x8xf32>
    %293 = arith.addf %288, %292 : vector<8x8xf32>
    %294 = vector.extract_strided_slice %200 {offsets = [1, 2], sizes = [8, 8], strides = [1, 1]} : vector<14x14xf32> to vector<8x8xf32>
    %295 = vector.extract_strided_slice %202 {offsets = [9, 0], sizes = [1, 1], strides = [1, 1]} : vector<49x2xf32> to vector<1x1xf32>
    %296 = vector.broadcast %295 : vector<1x1xf32> to vector<8x8xf32>
    %297 = arith.mulf %294, %296 : vector<8x8xf32>
    %298 = arith.addf %293, %297 : vector<8x8xf32>
    %299 = vector.extract_strided_slice %201 {offsets = [1, 2], sizes = [8, 8], strides = [1, 1]} : vector<14x14xf32> to vector<8x8xf32>
    %300 = vector.extract_strided_slice %202 {offsets = [9, 1], sizes = [1, 1], strides = [1, 1]} : vector<49x2xf32> to vector<1x1xf32>
    %301 = vector.broadcast %300 : vector<1x1xf32> to vector<8x8xf32>
    %302 = arith.mulf %299, %301 : vector<8x8xf32>
    %303 = arith.addf %298, %302 : vector<8x8xf32>
    %304 = vector.extract_strided_slice %200 {offsets = [1, 3], sizes = [8, 8], strides = [1, 1]} : vector<14x14xf32> to vector<8x8xf32>
    %305 = vector.extract_strided_slice %202 {offsets = [10, 0], sizes = [1, 1], strides = [1, 1]} : vector<49x2xf32> to vector<1x1xf32>
    %306 = vector.broadcast %305 : vector<1x1xf32> to vector<8x8xf32>
    %307 = arith.mulf %304, %306 : vector<8x8xf32>
    %308 = arith.addf %303, %307 : vector<8x8xf32>
    %309 = vector.extract_strided_slice %201 {offsets = [1, 3], sizes = [8, 8], strides = [1, 1]} : vector<14x14xf32> to vector<8x8xf32>
    %310 = vector.extract_strided_slice %202 {offsets = [10, 1], sizes = [1, 1], strides = [1, 1]} : vector<49x2xf32> to vector<1x1xf32>
    %311 = vector.broadcast %310 : vector<1x1xf32> to vector<8x8xf32>
    %312 = arith.mulf %309, %311 : vector<8x8xf32>
    %313 = arith.addf %308, %312 : vector<8x8xf32>
    %314 = vector.extract_strided_slice %200 {offsets = [1, 4], sizes = [8, 8], strides = [1, 1]} : vector<14x14xf32> to vector<8x8xf32>
    %315 = vector.extract_strided_slice %202 {offsets = [11, 0], sizes = [1, 1], strides = [1, 1]} : vector<49x2xf32> to vector<1x1xf32>
    %316 = vector.broadcast %315 : vector<1x1xf32> to vector<8x8xf32>
    %317 = arith.mulf %314, %316 : vector<8x8xf32>
    %318 = arith.addf %313, %317 : vector<8x8xf32>
    %319 = vector.extract_strided_slice %201 {offsets = [1, 4], sizes = [8, 8], strides = [1, 1]} : vector<14x14xf32> to vector<8x8xf32>
    %320 = vector.extract_strided_slice %202 {offsets = [11, 1], sizes = [1, 1], strides = [1, 1]} : vector<49x2xf32> to vector<1x1xf32>
    %321 = vector.broadcast %320 : vector<1x1xf32> to vector<8x8xf32>
    %322 = arith.mulf %319, %321 : vector<8x8xf32>
    %323 = arith.addf %318, %322 : vector<8x8xf32>
    %324 = vector.extract_strided_slice %200 {offsets = [1, 5], sizes = [8, 8], strides = [1, 1]} : vector<14x14xf32> to vector<8x8xf32>
    %325 = vector.extract_strided_slice %202 {offsets = [12, 0], sizes = [1, 1], strides = [1, 1]} : vector<49x2xf32> to vector<1x1xf32>
    %326 = vector.broadcast %325 : vector<1x1xf32> to vector<8x8xf32>
    %327 = arith.mulf %324, %326 : vector<8x8xf32>
    %328 = arith.addf %323, %327 : vector<8x8xf32>
    %329 = vector.extract_strided_slice %201 {offsets = [1, 5], sizes = [8, 8], strides = [1, 1]} : vector<14x14xf32> to vector<8x8xf32>
    %330 = vector.extract_strided_slice %202 {offsets = [12, 1], sizes = [1, 1], strides = [1, 1]} : vector<49x2xf32> to vector<1x1xf32>
    %331 = vector.broadcast %330 : vector<1x1xf32> to vector<8x8xf32>
    %332 = arith.mulf %329, %331 : vector<8x8xf32>
    %333 = arith.addf %328, %332 : vector<8x8xf32>
    %334 = vector.extract_strided_slice %200 {offsets = [1, 6], sizes = [8, 8], strides = [1, 1]} : vector<14x14xf32> to vector<8x8xf32>
    %335 = vector.extract_strided_slice %202 {offsets = [13, 0], sizes = [1, 1], strides = [1, 1]} : vector<49x2xf32> to vector<1x1xf32>
    %336 = vector.broadcast %335 : vector<1x1xf32> to vector<8x8xf32>
    %337 = arith.mulf %334, %336 : vector<8x8xf32>
    %338 = arith.addf %333, %337 : vector<8x8xf32>
    %339 = vector.extract_strided_slice %201 {offsets = [1, 6], sizes = [8, 8], strides = [1, 1]} : vector<14x14xf32> to vector<8x8xf32>
    %340 = vector.extract_strided_slice %202 {offsets = [13, 1], sizes = [1, 1], strides = [1, 1]} : vector<49x2xf32> to vector<1x1xf32>
    %341 = vector.broadcast %340 : vector<1x1xf32> to vector<8x8xf32>
    %342 = arith.mulf %339, %341 : vector<8x8xf32>
    %343 = arith.addf %338, %342 : vector<8x8xf32>
    %344 = vector.extract_strided_slice %200 {offsets = [2, 0], sizes = [8, 8], strides = [1, 1]} : vector<14x14xf32> to vector<8x8xf32>
    %345 = vector.extract_strided_slice %202 {offsets = [14, 0], sizes = [1, 1], strides = [1, 1]} : vector<49x2xf32> to vector<1x1xf32>
    %346 = vector.broadcast %345 : vector<1x1xf32> to vector<8x8xf32>
    %347 = arith.mulf %344, %346 : vector<8x8xf32>
    %348 = arith.addf %343, %347 : vector<8x8xf32>
    %349 = vector.extract_strided_slice %201 {offsets = [2, 0], sizes = [8, 8], strides = [1, 1]} : vector<14x14xf32> to vector<8x8xf32>
    %350 = vector.extract_strided_slice %202 {offsets = [14, 1], sizes = [1, 1], strides = [1, 1]} : vector<49x2xf32> to vector<1x1xf32>
    %351 = vector.broadcast %350 : vector<1x1xf32> to vector<8x8xf32>
    %352 = arith.mulf %349, %351 : vector<8x8xf32>
    %353 = arith.addf %348, %352 : vector<8x8xf32>
    %354 = vector.extract_strided_slice %200 {offsets = [2, 1], sizes = [8, 8], strides = [1, 1]} : vector<14x14xf32> to vector<8x8xf32>
    %355 = vector.extract_strided_slice %202 {offsets = [15, 0], sizes = [1, 1], strides = [1, 1]} : vector<49x2xf32> to vector<1x1xf32>
    %356 = vector.broadcast %355 : vector<1x1xf32> to vector<8x8xf32>
    %357 = arith.mulf %354, %356 : vector<8x8xf32>
    %358 = arith.addf %353, %357 : vector<8x8xf32>
    %359 = vector.extract_strided_slice %201 {offsets = [2, 1], sizes = [8, 8], strides = [1, 1]} : vector<14x14xf32> to vector<8x8xf32>
    %360 = vector.extract_strided_slice %202 {offsets = [15, 1], sizes = [1, 1], strides = [1, 1]} : vector<49x2xf32> to vector<1x1xf32>
    %361 = vector.broadcast %360 : vector<1x1xf32> to vector<8x8xf32>
    %362 = arith.mulf %359, %361 : vector<8x8xf32>
    %363 = arith.addf %358, %362 : vector<8x8xf32>
    %364 = vector.extract_strided_slice %200 {offsets = [2, 2], sizes = [8, 8], strides = [1, 1]} : vector<14x14xf32> to vector<8x8xf32>
    %365 = vector.extract_strided_slice %202 {offsets = [16, 0], sizes = [1, 1], strides = [1, 1]} : vector<49x2xf32> to vector<1x1xf32>
    %366 = vector.broadcast %365 : vector<1x1xf32> to vector<8x8xf32>
    %367 = arith.mulf %364, %366 : vector<8x8xf32>
    %368 = arith.addf %363, %367 : vector<8x8xf32>
    %369 = vector.extract_strided_slice %201 {offsets = [2, 2], sizes = [8, 8], strides = [1, 1]} : vector<14x14xf32> to vector<8x8xf32>
    %370 = vector.extract_strided_slice %202 {offsets = [16, 1], sizes = [1, 1], strides = [1, 1]} : vector<49x2xf32> to vector<1x1xf32>
    %371 = vector.broadcast %370 : vector<1x1xf32> to vector<8x8xf32>
    %372 = arith.mulf %369, %371 : vector<8x8xf32>
    %373 = arith.addf %368, %372 : vector<8x8xf32>
    %374 = vector.extract_strided_slice %200 {offsets = [2, 3], sizes = [8, 8], strides = [1, 1]} : vector<14x14xf32> to vector<8x8xf32>
    %375 = vector.extract_strided_slice %202 {offsets = [17, 0], sizes = [1, 1], strides = [1, 1]} : vector<49x2xf32> to vector<1x1xf32>
    %376 = vector.broadcast %375 : vector<1x1xf32> to vector<8x8xf32>
    %377 = arith.mulf %374, %376 : vector<8x8xf32>
    %378 = arith.addf %373, %377 : vector<8x8xf32>
    %379 = vector.extract_strided_slice %201 {offsets = [2, 3], sizes = [8, 8], strides = [1, 1]} : vector<14x14xf32> to vector<8x8xf32>
    %380 = vector.extract_strided_slice %202 {offsets = [17, 1], sizes = [1, 1], strides = [1, 1]} : vector<49x2xf32> to vector<1x1xf32>
    %381 = vector.broadcast %380 : vector<1x1xf32> to vector<8x8xf32>
    %382 = arith.mulf %379, %381 : vector<8x8xf32>
    %383 = arith.addf %378, %382 : vector<8x8xf32>
    %384 = vector.extract_strided_slice %200 {offsets = [2, 4], sizes = [8, 8], strides = [1, 1]} : vector<14x14xf32> to vector<8x8xf32>
    %385 = vector.extract_strided_slice %202 {offsets = [18, 0], sizes = [1, 1], strides = [1, 1]} : vector<49x2xf32> to vector<1x1xf32>
    %386 = vector.broadcast %385 : vector<1x1xf32> to vector<8x8xf32>
    %387 = arith.mulf %384, %386 : vector<8x8xf32>
    %388 = arith.addf %383, %387 : vector<8x8xf32>
    %389 = vector.extract_strided_slice %201 {offsets = [2, 4], sizes = [8, 8], strides = [1, 1]} : vector<14x14xf32> to vector<8x8xf32>
    %390 = vector.extract_strided_slice %202 {offsets = [18, 1], sizes = [1, 1], strides = [1, 1]} : vector<49x2xf32> to vector<1x1xf32>
    %391 = vector.broadcast %390 : vector<1x1xf32> to vector<8x8xf32>
    %392 = arith.mulf %389, %391 : vector<8x8xf32>
    %393 = arith.addf %388, %392 : vector<8x8xf32>
    %394 = vector.extract_strided_slice %200 {offsets = [2, 5], sizes = [8, 8], strides = [1, 1]} : vector<14x14xf32> to vector<8x8xf32>
    %395 = vector.extract_strided_slice %202 {offsets = [19, 0], sizes = [1, 1], strides = [1, 1]} : vector<49x2xf32> to vector<1x1xf32>
    %396 = vector.broadcast %395 : vector<1x1xf32> to vector<8x8xf32>
    %397 = arith.mulf %394, %396 : vector<8x8xf32>
    %398 = arith.addf %393, %397 : vector<8x8xf32>
    %399 = vector.extract_strided_slice %201 {offsets = [2, 5], sizes = [8, 8], strides = [1, 1]} : vector<14x14xf32> to vector<8x8xf32>
    %400 = vector.extract_strided_slice %202 {offsets = [19, 1], sizes = [1, 1], strides = [1, 1]} : vector<49x2xf32> to vector<1x1xf32>
    %401 = vector.broadcast %400 : vector<1x1xf32> to vector<8x8xf32>
    %402 = arith.mulf %399, %401 : vector<8x8xf32>
    %403 = arith.addf %398, %402 : vector<8x8xf32>
    %404 = vector.extract_strided_slice %200 {offsets = [2, 6], sizes = [8, 8], strides = [1, 1]} : vector<14x14xf32> to vector<8x8xf32>
    %405 = vector.extract_strided_slice %202 {offsets = [20, 0], sizes = [1, 1], strides = [1, 1]} : vector<49x2xf32> to vector<1x1xf32>
    %406 = vector.broadcast %405 : vector<1x1xf32> to vector<8x8xf32>
    %407 = arith.mulf %404, %406 : vector<8x8xf32>
    %408 = arith.addf %403, %407 : vector<8x8xf32>
    %409 = vector.extract_strided_slice %201 {offsets = [2, 6], sizes = [8, 8], strides = [1, 1]} : vector<14x14xf32> to vector<8x8xf32>
    %410 = vector.extract_strided_slice %202 {offsets = [20, 1], sizes = [1, 1], strides = [1, 1]} : vector<49x2xf32> to vector<1x1xf32>
    %411 = vector.broadcast %410 : vector<1x1xf32> to vector<8x8xf32>
    %412 = arith.mulf %409, %411 : vector<8x8xf32>
    %413 = arith.addf %408, %412 : vector<8x8xf32>
    %414 = vector.extract_strided_slice %200 {offsets = [3, 0], sizes = [8, 8], strides = [1, 1]} : vector<14x14xf32> to vector<8x8xf32>
    %415 = vector.extract_strided_slice %202 {offsets = [21, 0], sizes = [1, 1], strides = [1, 1]} : vector<49x2xf32> to vector<1x1xf32>
    %416 = vector.broadcast %415 : vector<1x1xf32> to vector<8x8xf32>
    %417 = arith.mulf %414, %416 : vector<8x8xf32>
    %418 = arith.addf %413, %417 : vector<8x8xf32>
    %419 = vector.extract_strided_slice %201 {offsets = [3, 0], sizes = [8, 8], strides = [1, 1]} : vector<14x14xf32> to vector<8x8xf32>
    %420 = vector.extract_strided_slice %202 {offsets = [21, 1], sizes = [1, 1], strides = [1, 1]} : vector<49x2xf32> to vector<1x1xf32>
    %421 = vector.broadcast %420 : vector<1x1xf32> to vector<8x8xf32>
    %422 = arith.mulf %419, %421 : vector<8x8xf32>
    %423 = arith.addf %418, %422 : vector<8x8xf32>
    %424 = vector.extract_strided_slice %200 {offsets = [3, 1], sizes = [8, 8], strides = [1, 1]} : vector<14x14xf32> to vector<8x8xf32>
    %425 = vector.extract_strided_slice %202 {offsets = [22, 0], sizes = [1, 1], strides = [1, 1]} : vector<49x2xf32> to vector<1x1xf32>
    %426 = vector.broadcast %425 : vector<1x1xf32> to vector<8x8xf32>
    %427 = arith.mulf %424, %426 : vector<8x8xf32>
    %428 = arith.addf %423, %427 : vector<8x8xf32>
    %429 = vector.extract_strided_slice %201 {offsets = [3, 1], sizes = [8, 8], strides = [1, 1]} : vector<14x14xf32> to vector<8x8xf32>
    %430 = vector.extract_strided_slice %202 {offsets = [22, 1], sizes = [1, 1], strides = [1, 1]} : vector<49x2xf32> to vector<1x1xf32>
    %431 = vector.broadcast %430 : vector<1x1xf32> to vector<8x8xf32>
    %432 = arith.mulf %429, %431 : vector<8x8xf32>
    %433 = arith.addf %428, %432 : vector<8x8xf32>
    %434 = vector.extract_strided_slice %200 {offsets = [3, 2], sizes = [8, 8], strides = [1, 1]} : vector<14x14xf32> to vector<8x8xf32>
    %435 = vector.extract_strided_slice %202 {offsets = [23, 0], sizes = [1, 1], strides = [1, 1]} : vector<49x2xf32> to vector<1x1xf32>
    %436 = vector.broadcast %435 : vector<1x1xf32> to vector<8x8xf32>
    %437 = arith.mulf %434, %436 : vector<8x8xf32>
    %438 = arith.addf %433, %437 : vector<8x8xf32>
    %439 = vector.extract_strided_slice %201 {offsets = [3, 2], sizes = [8, 8], strides = [1, 1]} : vector<14x14xf32> to vector<8x8xf32>
    %440 = vector.extract_strided_slice %202 {offsets = [23, 1], sizes = [1, 1], strides = [1, 1]} : vector<49x2xf32> to vector<1x1xf32>
    %441 = vector.broadcast %440 : vector<1x1xf32> to vector<8x8xf32>
    %442 = arith.mulf %439, %441 : vector<8x8xf32>
    %443 = arith.addf %438, %442 : vector<8x8xf32>
    %444 = vector.extract_strided_slice %200 {offsets = [3, 3], sizes = [8, 8], strides = [1, 1]} : vector<14x14xf32> to vector<8x8xf32>
    %445 = vector.extract_strided_slice %202 {offsets = [24, 0], sizes = [1, 1], strides = [1, 1]} : vector<49x2xf32> to vector<1x1xf32>
    %446 = vector.broadcast %445 : vector<1x1xf32> to vector<8x8xf32>
    %447 = arith.mulf %444, %446 : vector<8x8xf32>
    %448 = arith.addf %443, %447 : vector<8x8xf32>
    %449 = vector.extract_strided_slice %201 {offsets = [3, 3], sizes = [8, 8], strides = [1, 1]} : vector<14x14xf32> to vector<8x8xf32>
    %450 = vector.extract_strided_slice %202 {offsets = [24, 1], sizes = [1, 1], strides = [1, 1]} : vector<49x2xf32> to vector<1x1xf32>
    %451 = vector.broadcast %450 : vector<1x1xf32> to vector<8x8xf32>
    %452 = arith.mulf %449, %451 : vector<8x8xf32>
    %453 = arith.addf %448, %452 : vector<8x8xf32>
    %454 = vector.extract_strided_slice %200 {offsets = [3, 4], sizes = [8, 8], strides = [1, 1]} : vector<14x14xf32> to vector<8x8xf32>
    %455 = vector.extract_strided_slice %202 {offsets = [25, 0], sizes = [1, 1], strides = [1, 1]} : vector<49x2xf32> to vector<1x1xf32>
    %456 = vector.broadcast %455 : vector<1x1xf32> to vector<8x8xf32>
    %457 = arith.mulf %454, %456 : vector<8x8xf32>
    %458 = arith.addf %453, %457 : vector<8x8xf32>
    %459 = vector.extract_strided_slice %201 {offsets = [3, 4], sizes = [8, 8], strides = [1, 1]} : vector<14x14xf32> to vector<8x8xf32>
    %460 = vector.extract_strided_slice %202 {offsets = [25, 1], sizes = [1, 1], strides = [1, 1]} : vector<49x2xf32> to vector<1x1xf32>
    %461 = vector.broadcast %460 : vector<1x1xf32> to vector<8x8xf32>
    %462 = arith.mulf %459, %461 : vector<8x8xf32>
    %463 = arith.addf %458, %462 : vector<8x8xf32>
    %464 = vector.extract_strided_slice %200 {offsets = [3, 5], sizes = [8, 8], strides = [1, 1]} : vector<14x14xf32> to vector<8x8xf32>
    %465 = vector.extract_strided_slice %202 {offsets = [26, 0], sizes = [1, 1], strides = [1, 1]} : vector<49x2xf32> to vector<1x1xf32>
    %466 = vector.broadcast %465 : vector<1x1xf32> to vector<8x8xf32>
    %467 = arith.mulf %464, %466 : vector<8x8xf32>
    %468 = arith.addf %463, %467 : vector<8x8xf32>
    %469 = vector.extract_strided_slice %201 {offsets = [3, 5], sizes = [8, 8], strides = [1, 1]} : vector<14x14xf32> to vector<8x8xf32>
    %470 = vector.extract_strided_slice %202 {offsets = [26, 1], sizes = [1, 1], strides = [1, 1]} : vector<49x2xf32> to vector<1x1xf32>
    %471 = vector.broadcast %470 : vector<1x1xf32> to vector<8x8xf32>
    %472 = arith.mulf %469, %471 : vector<8x8xf32>
    %473 = arith.addf %468, %472 : vector<8x8xf32>
    %474 = vector.extract_strided_slice %200 {offsets = [3, 6], sizes = [8, 8], strides = [1, 1]} : vector<14x14xf32> to vector<8x8xf32>
    %475 = vector.extract_strided_slice %202 {offsets = [27, 0], sizes = [1, 1], strides = [1, 1]} : vector<49x2xf32> to vector<1x1xf32>
    %476 = vector.broadcast %475 : vector<1x1xf32> to vector<8x8xf32>
    %477 = arith.mulf %474, %476 : vector<8x8xf32>
    %478 = arith.addf %473, %477 : vector<8x8xf32>
    %479 = vector.extract_strided_slice %201 {offsets = [3, 6], sizes = [8, 8], strides = [1, 1]} : vector<14x14xf32> to vector<8x8xf32>
    %480 = vector.extract_strided_slice %202 {offsets = [27, 1], sizes = [1, 1], strides = [1, 1]} : vector<49x2xf32> to vector<1x1xf32>
    %481 = vector.broadcast %480 : vector<1x1xf32> to vector<8x8xf32>
    %482 = arith.mulf %479, %481 : vector<8x8xf32>
    %483 = arith.addf %478, %482 : vector<8x8xf32>
    %484 = vector.extract_strided_slice %200 {offsets = [4, 0], sizes = [8, 8], strides = [1, 1]} : vector<14x14xf32> to vector<8x8xf32>
    %485 = vector.extract_strided_slice %202 {offsets = [28, 0], sizes = [1, 1], strides = [1, 1]} : vector<49x2xf32> to vector<1x1xf32>
    %486 = vector.broadcast %485 : vector<1x1xf32> to vector<8x8xf32>
    %487 = arith.mulf %484, %486 : vector<8x8xf32>
    %488 = arith.addf %483, %487 : vector<8x8xf32>
    %489 = vector.extract_strided_slice %201 {offsets = [4, 0], sizes = [8, 8], strides = [1, 1]} : vector<14x14xf32> to vector<8x8xf32>
    %490 = vector.extract_strided_slice %202 {offsets = [28, 1], sizes = [1, 1], strides = [1, 1]} : vector<49x2xf32> to vector<1x1xf32>
    %491 = vector.broadcast %490 : vector<1x1xf32> to vector<8x8xf32>
    %492 = arith.mulf %489, %491 : vector<8x8xf32>
    %493 = arith.addf %488, %492 : vector<8x8xf32>
    %494 = vector.extract_strided_slice %200 {offsets = [4, 1], sizes = [8, 8], strides = [1, 1]} : vector<14x14xf32> to vector<8x8xf32>
    %495 = vector.extract_strided_slice %202 {offsets = [29, 0], sizes = [1, 1], strides = [1, 1]} : vector<49x2xf32> to vector<1x1xf32>
    %496 = vector.broadcast %495 : vector<1x1xf32> to vector<8x8xf32>
    %497 = arith.mulf %494, %496 : vector<8x8xf32>
    %498 = arith.addf %493, %497 : vector<8x8xf32>
    %499 = vector.extract_strided_slice %201 {offsets = [4, 1], sizes = [8, 8], strides = [1, 1]} : vector<14x14xf32> to vector<8x8xf32>
    %500 = vector.extract_strided_slice %202 {offsets = [29, 1], sizes = [1, 1], strides = [1, 1]} : vector<49x2xf32> to vector<1x1xf32>
    %501 = vector.broadcast %500 : vector<1x1xf32> to vector<8x8xf32>
    %502 = arith.mulf %499, %501 : vector<8x8xf32>
    %503 = arith.addf %498, %502 : vector<8x8xf32>
    %504 = vector.extract_strided_slice %200 {offsets = [4, 2], sizes = [8, 8], strides = [1, 1]} : vector<14x14xf32> to vector<8x8xf32>
    %505 = vector.extract_strided_slice %202 {offsets = [30, 0], sizes = [1, 1], strides = [1, 1]} : vector<49x2xf32> to vector<1x1xf32>
    %506 = vector.broadcast %505 : vector<1x1xf32> to vector<8x8xf32>
    %507 = arith.mulf %504, %506 : vector<8x8xf32>
    %508 = arith.addf %503, %507 : vector<8x8xf32>
    %509 = vector.extract_strided_slice %201 {offsets = [4, 2], sizes = [8, 8], strides = [1, 1]} : vector<14x14xf32> to vector<8x8xf32>
    %510 = vector.extract_strided_slice %202 {offsets = [30, 1], sizes = [1, 1], strides = [1, 1]} : vector<49x2xf32> to vector<1x1xf32>
    %511 = vector.broadcast %510 : vector<1x1xf32> to vector<8x8xf32>
    %512 = arith.mulf %509, %511 : vector<8x8xf32>
    %513 = arith.addf %508, %512 : vector<8x8xf32>
    %514 = vector.extract_strided_slice %200 {offsets = [4, 3], sizes = [8, 8], strides = [1, 1]} : vector<14x14xf32> to vector<8x8xf32>
    %515 = vector.extract_strided_slice %202 {offsets = [31, 0], sizes = [1, 1], strides = [1, 1]} : vector<49x2xf32> to vector<1x1xf32>
    %516 = vector.broadcast %515 : vector<1x1xf32> to vector<8x8xf32>
    %517 = arith.mulf %514, %516 : vector<8x8xf32>
    %518 = arith.addf %513, %517 : vector<8x8xf32>
    %519 = vector.extract_strided_slice %201 {offsets = [4, 3], sizes = [8, 8], strides = [1, 1]} : vector<14x14xf32> to vector<8x8xf32>
    %520 = vector.extract_strided_slice %202 {offsets = [31, 1], sizes = [1, 1], strides = [1, 1]} : vector<49x2xf32> to vector<1x1xf32>
    %521 = vector.broadcast %520 : vector<1x1xf32> to vector<8x8xf32>
    %522 = arith.mulf %519, %521 : vector<8x8xf32>
    %523 = arith.addf %518, %522 : vector<8x8xf32>
    %524 = vector.extract_strided_slice %200 {offsets = [4, 4], sizes = [8, 8], strides = [1, 1]} : vector<14x14xf32> to vector<8x8xf32>
    %525 = vector.extract_strided_slice %202 {offsets = [32, 0], sizes = [1, 1], strides = [1, 1]} : vector<49x2xf32> to vector<1x1xf32>
    %526 = vector.broadcast %525 : vector<1x1xf32> to vector<8x8xf32>
    %527 = arith.mulf %524, %526 : vector<8x8xf32>
    %528 = arith.addf %523, %527 : vector<8x8xf32>
    %529 = vector.extract_strided_slice %201 {offsets = [4, 4], sizes = [8, 8], strides = [1, 1]} : vector<14x14xf32> to vector<8x8xf32>
    %530 = vector.extract_strided_slice %202 {offsets = [32, 1], sizes = [1, 1], strides = [1, 1]} : vector<49x2xf32> to vector<1x1xf32>
    %531 = vector.broadcast %530 : vector<1x1xf32> to vector<8x8xf32>
    %532 = arith.mulf %529, %531 : vector<8x8xf32>
    %533 = arith.addf %528, %532 : vector<8x8xf32>
    %534 = vector.extract_strided_slice %200 {offsets = [4, 5], sizes = [8, 8], strides = [1, 1]} : vector<14x14xf32> to vector<8x8xf32>
    %535 = vector.extract_strided_slice %202 {offsets = [33, 0], sizes = [1, 1], strides = [1, 1]} : vector<49x2xf32> to vector<1x1xf32>
    %536 = vector.broadcast %535 : vector<1x1xf32> to vector<8x8xf32>
    %537 = arith.mulf %534, %536 : vector<8x8xf32>
    %538 = arith.addf %533, %537 : vector<8x8xf32>
    %539 = vector.extract_strided_slice %201 {offsets = [4, 5], sizes = [8, 8], strides = [1, 1]} : vector<14x14xf32> to vector<8x8xf32>
    %540 = vector.extract_strided_slice %202 {offsets = [33, 1], sizes = [1, 1], strides = [1, 1]} : vector<49x2xf32> to vector<1x1xf32>
    %541 = vector.broadcast %540 : vector<1x1xf32> to vector<8x8xf32>
    %542 = arith.mulf %539, %541 : vector<8x8xf32>
    %543 = arith.addf %538, %542 : vector<8x8xf32>
    %544 = vector.extract_strided_slice %200 {offsets = [4, 6], sizes = [8, 8], strides = [1, 1]} : vector<14x14xf32> to vector<8x8xf32>
    %545 = vector.extract_strided_slice %202 {offsets = [34, 0], sizes = [1, 1], strides = [1, 1]} : vector<49x2xf32> to vector<1x1xf32>
    %546 = vector.broadcast %545 : vector<1x1xf32> to vector<8x8xf32>
    %547 = arith.mulf %544, %546 : vector<8x8xf32>
    %548 = arith.addf %543, %547 : vector<8x8xf32>
    %549 = vector.extract_strided_slice %201 {offsets = [4, 6], sizes = [8, 8], strides = [1, 1]} : vector<14x14xf32> to vector<8x8xf32>
    %550 = vector.extract_strided_slice %202 {offsets = [34, 1], sizes = [1, 1], strides = [1, 1]} : vector<49x2xf32> to vector<1x1xf32>
    %551 = vector.broadcast %550 : vector<1x1xf32> to vector<8x8xf32>
    %552 = arith.mulf %549, %551 : vector<8x8xf32>
    %553 = arith.addf %548, %552 : vector<8x8xf32>
    %554 = vector.extract_strided_slice %200 {offsets = [5, 0], sizes = [8, 8], strides = [1, 1]} : vector<14x14xf32> to vector<8x8xf32>
    %555 = vector.extract_strided_slice %202 {offsets = [35, 0], sizes = [1, 1], strides = [1, 1]} : vector<49x2xf32> to vector<1x1xf32>
    %556 = vector.broadcast %555 : vector<1x1xf32> to vector<8x8xf32>
    %557 = arith.mulf %554, %556 : vector<8x8xf32>
    %558 = arith.addf %553, %557 : vector<8x8xf32>
    %559 = vector.extract_strided_slice %201 {offsets = [5, 0], sizes = [8, 8], strides = [1, 1]} : vector<14x14xf32> to vector<8x8xf32>
    %560 = vector.extract_strided_slice %202 {offsets = [35, 1], sizes = [1, 1], strides = [1, 1]} : vector<49x2xf32> to vector<1x1xf32>
    %561 = vector.broadcast %560 : vector<1x1xf32> to vector<8x8xf32>
    %562 = arith.mulf %559, %561 : vector<8x8xf32>
    %563 = arith.addf %558, %562 : vector<8x8xf32>
    %564 = vector.extract_strided_slice %200 {offsets = [5, 1], sizes = [8, 8], strides = [1, 1]} : vector<14x14xf32> to vector<8x8xf32>
    %565 = vector.extract_strided_slice %202 {offsets = [36, 0], sizes = [1, 1], strides = [1, 1]} : vector<49x2xf32> to vector<1x1xf32>
    %566 = vector.broadcast %565 : vector<1x1xf32> to vector<8x8xf32>
    %567 = arith.mulf %564, %566 : vector<8x8xf32>
    %568 = arith.addf %563, %567 : vector<8x8xf32>
    %569 = vector.extract_strided_slice %201 {offsets = [5, 1], sizes = [8, 8], strides = [1, 1]} : vector<14x14xf32> to vector<8x8xf32>
    %570 = vector.extract_strided_slice %202 {offsets = [36, 1], sizes = [1, 1], strides = [1, 1]} : vector<49x2xf32> to vector<1x1xf32>
    %571 = vector.broadcast %570 : vector<1x1xf32> to vector<8x8xf32>
    %572 = arith.mulf %569, %571 : vector<8x8xf32>
    %573 = arith.addf %568, %572 : vector<8x8xf32>
    %574 = vector.extract_strided_slice %200 {offsets = [5, 2], sizes = [8, 8], strides = [1, 1]} : vector<14x14xf32> to vector<8x8xf32>
    %575 = vector.extract_strided_slice %202 {offsets = [37, 0], sizes = [1, 1], strides = [1, 1]} : vector<49x2xf32> to vector<1x1xf32>
    %576 = vector.broadcast %575 : vector<1x1xf32> to vector<8x8xf32>
    %577 = arith.mulf %574, %576 : vector<8x8xf32>
    %578 = arith.addf %573, %577 : vector<8x8xf32>
    %579 = vector.extract_strided_slice %201 {offsets = [5, 2], sizes = [8, 8], strides = [1, 1]} : vector<14x14xf32> to vector<8x8xf32>
    %580 = vector.extract_strided_slice %202 {offsets = [37, 1], sizes = [1, 1], strides = [1, 1]} : vector<49x2xf32> to vector<1x1xf32>
    %581 = vector.broadcast %580 : vector<1x1xf32> to vector<8x8xf32>
    %582 = arith.mulf %579, %581 : vector<8x8xf32>
    %583 = arith.addf %578, %582 : vector<8x8xf32>
    %584 = vector.extract_strided_slice %200 {offsets = [5, 3], sizes = [8, 8], strides = [1, 1]} : vector<14x14xf32> to vector<8x8xf32>
    %585 = vector.extract_strided_slice %202 {offsets = [38, 0], sizes = [1, 1], strides = [1, 1]} : vector<49x2xf32> to vector<1x1xf32>
    %586 = vector.broadcast %585 : vector<1x1xf32> to vector<8x8xf32>
    %587 = arith.mulf %584, %586 : vector<8x8xf32>
    %588 = arith.addf %583, %587 : vector<8x8xf32>
    %589 = vector.extract_strided_slice %201 {offsets = [5, 3], sizes = [8, 8], strides = [1, 1]} : vector<14x14xf32> to vector<8x8xf32>
    %590 = vector.extract_strided_slice %202 {offsets = [38, 1], sizes = [1, 1], strides = [1, 1]} : vector<49x2xf32> to vector<1x1xf32>
    %591 = vector.broadcast %590 : vector<1x1xf32> to vector<8x8xf32>
    %592 = arith.mulf %589, %591 : vector<8x8xf32>
    %593 = arith.addf %588, %592 : vector<8x8xf32>
    %594 = vector.extract_strided_slice %200 {offsets = [5, 4], sizes = [8, 8], strides = [1, 1]} : vector<14x14xf32> to vector<8x8xf32>
    %595 = vector.extract_strided_slice %202 {offsets = [39, 0], sizes = [1, 1], strides = [1, 1]} : vector<49x2xf32> to vector<1x1xf32>
    %596 = vector.broadcast %595 : vector<1x1xf32> to vector<8x8xf32>
    %597 = arith.mulf %594, %596 : vector<8x8xf32>
    %598 = arith.addf %593, %597 : vector<8x8xf32>
    %599 = vector.extract_strided_slice %201 {offsets = [5, 4], sizes = [8, 8], strides = [1, 1]} : vector<14x14xf32> to vector<8x8xf32>
    %600 = vector.extract_strided_slice %202 {offsets = [39, 1], sizes = [1, 1], strides = [1, 1]} : vector<49x2xf32> to vector<1x1xf32>
    %601 = vector.broadcast %600 : vector<1x1xf32> to vector<8x8xf32>
    %602 = arith.mulf %599, %601 : vector<8x8xf32>
    %603 = arith.addf %598, %602 : vector<8x8xf32>
    %604 = vector.extract_strided_slice %200 {offsets = [5, 5], sizes = [8, 8], strides = [1, 1]} : vector<14x14xf32> to vector<8x8xf32>
    %605 = vector.extract_strided_slice %202 {offsets = [40, 0], sizes = [1, 1], strides = [1, 1]} : vector<49x2xf32> to vector<1x1xf32>
    %606 = vector.broadcast %605 : vector<1x1xf32> to vector<8x8xf32>
    %607 = arith.mulf %604, %606 : vector<8x8xf32>
    %608 = arith.addf %603, %607 : vector<8x8xf32>
    %609 = vector.extract_strided_slice %201 {offsets = [5, 5], sizes = [8, 8], strides = [1, 1]} : vector<14x14xf32> to vector<8x8xf32>
    %610 = vector.extract_strided_slice %202 {offsets = [40, 1], sizes = [1, 1], strides = [1, 1]} : vector<49x2xf32> to vector<1x1xf32>
    %611 = vector.broadcast %610 : vector<1x1xf32> to vector<8x8xf32>
    %612 = arith.mulf %609, %611 : vector<8x8xf32>
    %613 = arith.addf %608, %612 : vector<8x8xf32>
    %614 = vector.extract_strided_slice %200 {offsets = [5, 6], sizes = [8, 8], strides = [1, 1]} : vector<14x14xf32> to vector<8x8xf32>
    %615 = vector.extract_strided_slice %202 {offsets = [41, 0], sizes = [1, 1], strides = [1, 1]} : vector<49x2xf32> to vector<1x1xf32>
    %616 = vector.broadcast %615 : vector<1x1xf32> to vector<8x8xf32>
    %617 = arith.mulf %614, %616 : vector<8x8xf32>
    %618 = arith.addf %613, %617 : vector<8x8xf32>
    %619 = vector.extract_strided_slice %201 {offsets = [5, 6], sizes = [8, 8], strides = [1, 1]} : vector<14x14xf32> to vector<8x8xf32>
    %620 = vector.extract_strided_slice %202 {offsets = [41, 1], sizes = [1, 1], strides = [1, 1]} : vector<49x2xf32> to vector<1x1xf32>
    %621 = vector.broadcast %620 : vector<1x1xf32> to vector<8x8xf32>
    %622 = arith.mulf %619, %621 : vector<8x8xf32>
    %623 = arith.addf %618, %622 : vector<8x8xf32>
    %624 = vector.extract_strided_slice %200 {offsets = [6, 0], sizes = [8, 8], strides = [1, 1]} : vector<14x14xf32> to vector<8x8xf32>
    %625 = vector.extract_strided_slice %202 {offsets = [42, 0], sizes = [1, 1], strides = [1, 1]} : vector<49x2xf32> to vector<1x1xf32>
    %626 = vector.broadcast %625 : vector<1x1xf32> to vector<8x8xf32>
    %627 = arith.mulf %624, %626 : vector<8x8xf32>
    %628 = arith.addf %623, %627 : vector<8x8xf32>
    %629 = vector.extract_strided_slice %201 {offsets = [6, 0], sizes = [8, 8], strides = [1, 1]} : vector<14x14xf32> to vector<8x8xf32>
    %630 = vector.extract_strided_slice %202 {offsets = [42, 1], sizes = [1, 1], strides = [1, 1]} : vector<49x2xf32> to vector<1x1xf32>
    %631 = vector.broadcast %630 : vector<1x1xf32> to vector<8x8xf32>
    %632 = arith.mulf %629, %631 : vector<8x8xf32>
    %633 = arith.addf %628, %632 : vector<8x8xf32>
    %634 = vector.extract_strided_slice %200 {offsets = [6, 1], sizes = [8, 8], strides = [1, 1]} : vector<14x14xf32> to vector<8x8xf32>
    %635 = vector.extract_strided_slice %202 {offsets = [43, 0], sizes = [1, 1], strides = [1, 1]} : vector<49x2xf32> to vector<1x1xf32>
    %636 = vector.broadcast %635 : vector<1x1xf32> to vector<8x8xf32>
    %637 = arith.mulf %634, %636 : vector<8x8xf32>
    %638 = arith.addf %633, %637 : vector<8x8xf32>
    %639 = vector.extract_strided_slice %201 {offsets = [6, 1], sizes = [8, 8], strides = [1, 1]} : vector<14x14xf32> to vector<8x8xf32>
    %640 = vector.extract_strided_slice %202 {offsets = [43, 1], sizes = [1, 1], strides = [1, 1]} : vector<49x2xf32> to vector<1x1xf32>
    %641 = vector.broadcast %640 : vector<1x1xf32> to vector<8x8xf32>
    %642 = arith.mulf %639, %641 : vector<8x8xf32>
    %643 = arith.addf %638, %642 : vector<8x8xf32>
    %644 = vector.extract_strided_slice %200 {offsets = [6, 2], sizes = [8, 8], strides = [1, 1]} : vector<14x14xf32> to vector<8x8xf32>
    %645 = vector.extract_strided_slice %202 {offsets = [44, 0], sizes = [1, 1], strides = [1, 1]} : vector<49x2xf32> to vector<1x1xf32>
    %646 = vector.broadcast %645 : vector<1x1xf32> to vector<8x8xf32>
    %647 = arith.mulf %644, %646 : vector<8x8xf32>
    %648 = arith.addf %643, %647 : vector<8x8xf32>
    %649 = vector.extract_strided_slice %201 {offsets = [6, 2], sizes = [8, 8], strides = [1, 1]} : vector<14x14xf32> to vector<8x8xf32>
    %650 = vector.extract_strided_slice %202 {offsets = [44, 1], sizes = [1, 1], strides = [1, 1]} : vector<49x2xf32> to vector<1x1xf32>
    %651 = vector.broadcast %650 : vector<1x1xf32> to vector<8x8xf32>
    %652 = arith.mulf %649, %651 : vector<8x8xf32>
    %653 = arith.addf %648, %652 : vector<8x8xf32>
    %654 = vector.extract_strided_slice %200 {offsets = [6, 3], sizes = [8, 8], strides = [1, 1]} : vector<14x14xf32> to vector<8x8xf32>
    %655 = vector.extract_strided_slice %202 {offsets = [45, 0], sizes = [1, 1], strides = [1, 1]} : vector<49x2xf32> to vector<1x1xf32>
    %656 = vector.broadcast %655 : vector<1x1xf32> to vector<8x8xf32>
    %657 = arith.mulf %654, %656 : vector<8x8xf32>
    %658 = arith.addf %653, %657 : vector<8x8xf32>
    %659 = vector.extract_strided_slice %201 {offsets = [6, 3], sizes = [8, 8], strides = [1, 1]} : vector<14x14xf32> to vector<8x8xf32>
    %660 = vector.extract_strided_slice %202 {offsets = [45, 1], sizes = [1, 1], strides = [1, 1]} : vector<49x2xf32> to vector<1x1xf32>
    %661 = vector.broadcast %660 : vector<1x1xf32> to vector<8x8xf32>
    %662 = arith.mulf %659, %661 : vector<8x8xf32>
    %663 = arith.addf %658, %662 : vector<8x8xf32>
    %664 = vector.extract_strided_slice %200 {offsets = [6, 4], sizes = [8, 8], strides = [1, 1]} : vector<14x14xf32> to vector<8x8xf32>
    %665 = vector.extract_strided_slice %202 {offsets = [46, 0], sizes = [1, 1], strides = [1, 1]} : vector<49x2xf32> to vector<1x1xf32>
    %666 = vector.broadcast %665 : vector<1x1xf32> to vector<8x8xf32>
    %667 = arith.mulf %664, %666 : vector<8x8xf32>
    %668 = arith.addf %663, %667 : vector<8x8xf32>
    %669 = vector.extract_strided_slice %201 {offsets = [6, 4], sizes = [8, 8], strides = [1, 1]} : vector<14x14xf32> to vector<8x8xf32>
    %670 = vector.extract_strided_slice %202 {offsets = [46, 1], sizes = [1, 1], strides = [1, 1]} : vector<49x2xf32> to vector<1x1xf32>
    %671 = vector.broadcast %670 : vector<1x1xf32> to vector<8x8xf32>
    %672 = arith.mulf %669, %671 : vector<8x8xf32>
    %673 = arith.addf %668, %672 : vector<8x8xf32>
    %674 = vector.extract_strided_slice %200 {offsets = [6, 5], sizes = [8, 8], strides = [1, 1]} : vector<14x14xf32> to vector<8x8xf32>
    %675 = vector.extract_strided_slice %202 {offsets = [47, 0], sizes = [1, 1], strides = [1, 1]} : vector<49x2xf32> to vector<1x1xf32>
    %676 = vector.broadcast %675 : vector<1x1xf32> to vector<8x8xf32>
    %677 = arith.mulf %674, %676 : vector<8x8xf32>
    %678 = arith.addf %673, %677 : vector<8x8xf32>
    %679 = vector.extract_strided_slice %201 {offsets = [6, 5], sizes = [8, 8], strides = [1, 1]} : vector<14x14xf32> to vector<8x8xf32>
    %680 = vector.extract_strided_slice %202 {offsets = [47, 1], sizes = [1, 1], strides = [1, 1]} : vector<49x2xf32> to vector<1x1xf32>
    %681 = vector.broadcast %680 : vector<1x1xf32> to vector<8x8xf32>
    %682 = arith.mulf %679, %681 : vector<8x8xf32>
    %683 = arith.addf %678, %682 : vector<8x8xf32>
    %684 = vector.extract_strided_slice %200 {offsets = [6, 6], sizes = [8, 8], strides = [1, 1]} : vector<14x14xf32> to vector<8x8xf32>
    %685 = vector.extract_strided_slice %202 {offsets = [48, 0], sizes = [1, 1], strides = [1, 1]} : vector<49x2xf32> to vector<1x1xf32>
    %686 = vector.broadcast %685 : vector<1x1xf32> to vector<8x8xf32>
    %687 = arith.mulf %684, %686 : vector<8x8xf32>
    %688 = arith.addf %683, %687 : vector<8x8xf32>
    %689 = vector.extract_strided_slice %201 {offsets = [6, 6], sizes = [8, 8], strides = [1, 1]} : vector<14x14xf32> to vector<8x8xf32>
    %690 = vector.extract_strided_slice %202 {offsets = [48, 1], sizes = [1, 1], strides = [1, 1]} : vector<49x2xf32> to vector<1x1xf32>
    %691 = vector.broadcast %690 : vector<1x1xf32> to vector<8x8xf32>
    %692 = arith.mulf %689, %691 : vector<8x8xf32>
    %693 = arith.addf %688, %692 : vector<8x8xf32>
    %694 = arith.negf %693 : vector<8x8xf32>
    %695 = math.exp %694 : vector<8x8xf32>
    %cst_49 = arith.constant 1.000000e+00 : f32
    %696 = vector.broadcast %cst_49 : f32 to vector<8x8xf32>
    %697 = arith.addf %696, %695 : vector<8x8xf32>
    %698 = arith.divf %696, %697 : vector<8x8xf32>
    %699 = vector.shape_cast %698 : vector<8x8xf32> to vector<8x8x1xf32>
    %700 = vector.broadcast %699 : vector<8x8x1xf32> to vector<8x8x16xf32>
    %701 = arith.mulf %189, %700 : vector<8x8x16xf32>
    %702 = vector.shape_cast %701 : vector<8x8x16xf32> to vector<64x16xf32>
    %703 = arith.truncf %702 : vector<64x16xf32> to vector<64x16xbf16>
    %c0_50 = arith.constant 0 : index
    %c0_51 = arith.constant 0 : index
    %704 = vector.load %arg8[%c0_50, %c0_51] : memref<16x64xbf16, #tpu.memory_space<vmem>>, vector<16x64xbf16>
    %cst_52 = arith.constant dense<0.000000e+00> : vector<64x64xf32>
    %705 = tpu.matmul %703, %704, %cst_52 {dimension_numbers = #tpu.dot_dimension_numbers<[1], [0], [0], [1], [0, 0, 1, 1], [], []>} : vector<64x16xbf16>, vector<16x64xbf16>, vector<64x64xf32> -> vector<64x64xf32>
    %c0_53 = arith.constant 0 : index
    %c0_54 = arith.constant 0 : index
    %706 = vector.load %arg9[%c0_53, %c0_54] : memref<1x64xf32, #tpu.memory_space<vmem>>, vector<1x64xf32>
    %707 = vector.broadcast %706 : vector<1x64xf32> to vector<64x64xf32>
    %708 = arith.addf %705, %707 : vector<64x64xf32>
    %cst_55 = arith.constant 5.000000e-01 : f32
    %709 = vector.broadcast %cst_55 : f32 to vector<64x64xf32>
    %710 = arith.mulf %709, %708 : vector<64x64xf32>
    %cst_56 = arith.constant 0.707106769 : f32
    %711 = vector.broadcast %cst_56 : f32 to vector<64x64xf32>
    %712 = arith.mulf %708, %711 : vector<64x64xf32>
    %713 = math.absf %712 : vector<64x64xf32>
    %cst_57 = arith.constant 0.327591091 : f32
    %714 = vector.broadcast %cst_57 : f32 to vector<64x64xf32>
    %715 = arith.mulf %714, %713 : vector<64x64xf32>
    %cst_58 = arith.constant 1.000000e+00 : f32
    %716 = vector.broadcast %cst_58 : f32 to vector<64x64xf32>
    %717 = arith.addf %716, %715 : vector<64x64xf32>
    %cst_59 = arith.constant 1.000000e+00 : f32
    %718 = vector.broadcast %cst_59 : f32 to vector<64x64xf32>
    %719 = arith.divf %718, %717 : vector<64x64xf32>
    %cst_60 = arith.constant 1.06140542 : f32
    %720 = vector.broadcast %cst_60 : f32 to vector<64x64xf32>
    %721 = arith.mulf %720, %719 : vector<64x64xf32>
    %cst_61 = arith.constant -1.45315206 : f32
    %722 = vector.broadcast %cst_61 : f32 to vector<64x64xf32>
    %723 = arith.addf %721, %722 : vector<64x64xf32>
    %724 = arith.mulf %723, %719 : vector<64x64xf32>
    %cst_62 = arith.constant 1.42141378 : f32
    %725 = vector.broadcast %cst_62 : f32 to vector<64x64xf32>
    %726 = arith.addf %724, %725 : vector<64x64xf32>
    %727 = arith.mulf %726, %719 : vector<64x64xf32>
    %cst_63 = arith.constant -0.284496725 : f32
    %728 = vector.broadcast %cst_63 : f32 to vector<64x64xf32>
    %729 = arith.addf %727, %728 : vector<64x64xf32>
    %730 = arith.mulf %729, %719 : vector<64x64xf32>
    %cst_64 = arith.constant 0.254829586 : f32
    %731 = vector.broadcast %cst_64 : f32 to vector<64x64xf32>
    %732 = arith.addf %730, %731 : vector<64x64xf32>
    %733 = arith.mulf %732, %719 : vector<64x64xf32>
    %cst_65 = arith.constant 0.000000e+00 : f32
    %734 = vector.broadcast %cst_65 : f32 to vector<64x64xf32>
    %735 = arith.subf %734, %713 : vector<64x64xf32>
    %736 = arith.mulf %735, %713 : vector<64x64xf32>
    %737 = math.exp %736 : vector<64x64xf32>
    %738 = arith.mulf %733, %737 : vector<64x64xf32>
    %cst_66 = arith.constant 1.000000e+00 : f32
    %739 = vector.broadcast %cst_66 : f32 to vector<64x64xf32>
    %740 = arith.subf %739, %738 : vector<64x64xf32>
    %cst_67 = arith.constant 0.000000e+00 : f32
    %741 = vector.broadcast %cst_67 : f32 to vector<64x64xf32>
    %742 = arith.cmpf oge, %712, %741 : vector<64x64xf32>
    %cst_68 = arith.constant 0.000000e+00 : f32
    %743 = vector.broadcast %cst_68 : f32 to vector<64x64xf32>
    %744 = arith.subf %743, %740 : vector<64x64xf32>
    %745 = arith.select %742, %740, %744 : vector<64x64xi1>, vector<64x64xf32>
    %cst_69 = arith.constant 1.000000e+00 : f32
    %746 = vector.broadcast %cst_69 : f32 to vector<64x64xf32>
    %747 = arith.addf %746, %745 : vector<64x64xf32>
    %748 = arith.mulf %710, %747 : vector<64x64xf32>
    %749 = arith.mulf %748, %748 : vector<64x64xf32>
    %cst_70 = arith.constant dense<0.000000e+00> : vector<64xf32>
    %750 = vector.multi_reduction <add>, %749, %cst_70 [0] : vector<64x64xf32> to vector<64xf32>
    %751 = vector.shape_cast %750 : vector<64xf32> to vector<1x64xf32>
    %752 = math.sqrt %751 : vector<1x64xf32>
    %cst_71 = arith.constant dense<0.000000e+00> : vector<1xf32>
    %753 = vector.multi_reduction <add>, %752, %cst_71 [1] : vector<1x64xf32> to vector<1xf32>
    %754 = vector.shape_cast %753 : vector<1xf32> to vector<1x1xf32>
    %cst_72 = arith.constant 6.400000e+01 : f32
    %755 = vector.broadcast %cst_72 : f32 to vector<1x1xf32>
    %756 = arith.divf %754, %755 : vector<1x1xf32>
    %cst_73 = arith.constant 9.99999997E-7 : f32
    %757 = vector.broadcast %cst_73 : f32 to vector<1x1xf32>
    %758 = arith.addf %756, %757 : vector<1x1xf32>
    %759 = vector.broadcast %758 : vector<1x1xf32> to vector<1x64xf32>
    %760 = arith.divf %752, %759 : vector<1x64xf32>
    %c0_74 = arith.constant 0 : index
    %c0_75 = arith.constant 0 : index
    %761 = vector.load %arg10[%c0_74, %c0_75] : memref<1x64xf32, #tpu.memory_space<vmem>>, vector<1x64xf32>
    %762 = arith.mulf %761, %760 : vector<1x64xf32>
    %cst_76 = arith.constant 1.000000e+00 : f32
    %763 = vector.broadcast %cst_76 : f32 to vector<1x64xf32>
    %764 = arith.addf %762, %763 : vector<1x64xf32>
    %765 = vector.broadcast %764 : vector<1x64xf32> to vector<64x64xf32>
    %766 = arith.mulf %765, %748 : vector<64x64xf32>
    %c0_77 = arith.constant 0 : index
    %c0_78 = arith.constant 0 : index
    %767 = vector.load %arg11[%c0_77, %c0_78] : memref<1x64xf32, #tpu.memory_space<vmem>>, vector<1x64xf32>
    %768 = vector.broadcast %767 : vector<1x64xf32> to vector<64x64xf32>
    %769 = arith.addf %766, %768 : vector<64x64xf32>
    %770 = arith.truncf %769 : vector<64x64xf32> to vector<64x64xbf16>
    %c0_79 = arith.constant 0 : index
    %c0_80 = arith.constant 0 : index
    %771 = vector.load %arg12[%c0_79, %c0_80] : memref<64x16xbf16, #tpu.memory_space<vmem>>, vector<64x16xbf16>
    %cst_81 = arith.constant dense<0.000000e+00> : vector<64x16xf32>
    %772 = tpu.matmul %770, %771, %cst_81 {dimension_numbers = #tpu.dot_dimension_numbers<[1], [0], [0], [1], [0, 0, 1, 1], [], []>} : vector<64x64xbf16>, vector<64x16xbf16>, vector<64x16xf32> -> vector<64x16xf32>
    %c0_82 = arith.constant 0 : index
    %c0_83 = arith.constant 0 : index
    %773 = vector.load %arg13[%c0_82, %c0_83] : memref<1x16xf32, #tpu.memory_space<vmem>>, vector<1x16xf32>
    %774 = vector.broadcast %773 : vector<1x16xf32> to vector<64x16xf32>
    %775 = arith.mulf %772, %774 : vector<64x16xf32>
    %c0_84 = arith.constant 0 : index
    %c0_85 = arith.constant 0 : index
    %776 = vector.load %arg14[%c0_84, %c0_85] : memref<1x16xf32, #tpu.memory_space<vmem>>, vector<1x16xf32>
    %777 = vector.broadcast %776 : vector<1x16xf32> to vector<64x16xf32>
    %778 = arith.addf %775, %777 : vector<64x16xf32>
    %779 = vector.shape_cast %1 : vector<8x8x16xf32> to vector<64x16xf32>
    %c0_86 = arith.constant 0 : index
    %c0_87 = arith.constant 0 : index
    %780 = vector.load %arg15[%c0_86, %c0_87] : memref<1x16xf32, #tpu.memory_space<vmem>>, vector<1x16xf32>
    %781 = vector.broadcast %780 : vector<1x16xf32> to vector<64x16xf32>
    %782 = arith.mulf %781, %778 : vector<64x16xf32>
    %783 = arith.addf %779, %782 : vector<64x16xf32>
    %784 = vector.shape_cast %783 : vector<64x16xf32> to vector<8x8x16xf32>
    %c0_88 = arith.constant 0 : index
    %c0_89 = arith.constant 0 : index
    %c0_90 = arith.constant 0 : index
    %c0_91 = arith.constant 0 : index
    %785 = vector.load %arg16[%c0_88, %c0_89, %c0_90, %c0_91] : memref<1x8x8x16xf32, #tpu.memory_space<vmem>>, vector<1x8x8x16xf32>
    %786 = vector.shape_cast %785 : vector<1x8x8x16xf32> to vector<8x8x16xf32>
    %787 = vector.shape_cast %784 : vector<8x8x16xf32> to vector<1x8x8x16xf32>
    tpu.vector_store %arg16[%c0_88, %c0_89, %c0_90, %c0_91], %787 {strides = array<i32>} : memref<1x8x8x16xf32, #tpu.memory_space<vmem>>, vector<1x8x8x16xf32>,
    return
  }
  func.func @transform_0(%arg0: i32) -> (i32, i32, i32, i32) {
    %c0_i32 = arith.constant 0 : i32
    %c0_i32_0 = arith.constant 0 : i32
    %c0_i32_1 = arith.constant 0 : i32
    %c0_i32_2 = arith.constant 0 : i32
    return %arg0, %c0_i32, %c0_i32_0, %c0_i32_1 : i32, i32, i32, i32
  }
  func.func @transform_1(%arg0: i32) -> (i32, i32) {
    %c0_i32 = arith.constant 0 : i32
    %c0_i32_0 = arith.constant 0 : i32
    %c0_i32_1 = arith.constant 0 : i32
    return %c0_i32, %c0_i32_0 : i32, i32
  }
  func.func @transform_2(%arg0: i32) -> (i32, i32) {
    %c0_i32 = arith.constant 0 : i32
    %c0_i32_0 = arith.constant 0 : i32
    %c0_i32_1 = arith.constant 0 : i32
    return %c0_i32, %c0_i32_0 : i32, i32
  }
  func.func @transform_3(%arg0: i32) -> (i32, i32) {
    %c0_i32 = arith.constant 0 : i32
    %c0_i32_0 = arith.constant 0 : i32
    %c0_i32_1 = arith.constant 0 : i32
    return %c0_i32, %c0_i32_0 : i32, i32
  }
  func.func @transform_4(%arg0: i32) -> (i32, i32) {
    %c0_i32 = arith.constant 0 : i32
    %c0_i32_0 = arith.constant 0 : i32
    %c0_i32_1 = arith.constant 0 : i32
    return %c0_i32, %c0_i32_0 : i32, i32
  }
  func.func @transform_5(%arg0: i32) -> (i32, i32) {
    %c0_i32 = arith.constant 0 : i32
    %c0_i32_0 = arith.constant 0 : i32
    %c0_i32_1 = arith.constant 0 : i32
    return %c0_i32, %c0_i32_0 : i32, i32
  }
  func.func @transform_6(%arg0: i32) -> (i32, i32) {
    %c0_i32 = arith.constant 0 : i32
    %c0_i32_0 = arith.constant 0 : i32
    %c0_i32_1 = arith.constant 0 : i32
    return %c0_i32, %c0_i32_0 : i32, i32
  }
  func.func @transform_7(%arg0: i32) -> (i32, i32) {
    %c0_i32 = arith.constant 0 : i32
    %c0_i32_0 = arith.constant 0 : i32
    %c0_i32_1 = arith.constant 0 : i32
    return %c0_i32, %c0_i32_0 : i32, i32
  }
  func.func @transform_8(%arg0: i32) -> (i32, i32) {
    %c0_i32 = arith.constant 0 : i32
    %c0_i32_0 = arith.constant 0 : i32
    %c0_i32_1 = arith.constant 0 : i32
    return %c0_i32, %c0_i32_0 : i32, i32
  }
  func.func @transform_9(%arg0: i32) -> (i32, i32) {
    %c0_i32 = arith.constant 0 : i32
    %c0_i32_0 = arith.constant 0 : i32
    %c0_i32_1 = arith.constant 0 : i32
    return %c0_i32, %c0_i32_0 : i32, i32
  }
  func.func @transform_10(%arg0: i32) -> (i32, i32) {
    %c0_i32 = arith.constant 0 : i32
    %c0_i32_0 = arith.constant 0 : i32
    %c0_i32_1 = arith.constant 0 : i32
    return %c0_i32, %c0_i32_0 : i32, i32
  }
  func.func @transform_11(%arg0: i32) -> (i32, i32) {
    %c0_i32 = arith.constant 0 : i32
    %c0_i32_0 = arith.constant 0 : i32
    %c0_i32_1 = arith.constant 0 : i32
    return %c0_i32, %c0_i32_0 : i32, i32
  }
  func.func @transform_12(%arg0: i32) -> (i32, i32) {
    %c0_i32 = arith.constant 0 : i32
    %c0_i32_0 = arith.constant 0 : i32
    %c0_i32_1 = arith.constant 0 : i32
    return %c0_i32, %c0_i32_0 : i32, i32
  }
  func.func @transform_13(%arg0: i32) -> (i32, i32) {
    %c0_i32 = arith.constant 0 : i32
    %c0_i32_0 = arith.constant 0 : i32
    %c0_i32_1 = arith.constant 0 : i32
    return %c0_i32, %c0_i32_0 : i32, i32
  }
  func.func @transform_14(%arg0: i32) -> (i32, i32) {
    %c0_i32 = arith.constant 0 : i32
    %c0_i32_0 = arith.constant 0 : i32
    %c0_i32_1 = arith.constant 0 : i32
    return %c0_i32, %c0_i32_0 : i32, i32
  }
  func.func @transform_15(%arg0: i32) -> (i32, i32, i32, i32) {
    %c0_i32 = arith.constant 0 : i32
    %c0_i32_0 = arith.constant 0 : i32
    %c0_i32_1 = arith.constant 0 : i32
    %c0_i32_2 = arith.constant 0 : i32
    return %arg0, %c0_i32, %c0_i32_0, %c0_i32_1 : i32, i32, i32, i32
  }
}

</mosaic_0001>

<bundles_post_ra>
// kernel: tpu_custom_call.1
= control target key start
LH: loop header
LB: loop body
LE: loop exit
PB: predicated region body
PF: predicated region fallthrough
CT: control target
= control target key end

     0   :  { %s7832_s0 = inlined_call_operand.vmem [shape: f32[2,8,8,16], index: 0, kind: input, shape index: {}]   ;;  %s7833_s1 = inlined_call_operand.vmem [shape: f32[25,16], index: 1, kind: input, shape index: {}]   ;;  %s7834_s2 = inlined_call_operand.vmem [shape: f32[1,16], index: 2, kind: input, shape index: {}]   ;;  %s7835_s3 = inlined_call_operand.vmem [shape: f32[1,16], index: 3, kind: input, shape index: {}]   ;;  %s7836_s4 = inlined_call_operand.vmem [shape: f32[16,4], index: 4, kind: input, shape index: {}]   ;;  %s7837_s5 = inlined_call_operand.vmem [shape: f32[4,16], index: 5, kind: input, shape index: {}]   ;;  %s7838_s6 = inlined_call_operand.vmem [shape: f32[49,2], index: 6, kind: input, shape index: {}]   ;;  %s7839_s7 = inlined_call_operand.vmem [shape: bf16[16,64], index: 7, kind: input, shape index: {}]   ;;  %s7840_s8 = inlined_call_operand.vmem [shape: f32[1,64], index: 8, kind: input, shape index: {}]   ;;  %s7841_s9 = inlined_call_operand.vmem [shape: f32[1,64], index: 9, kind: input, shape index: {}]   ;;  %s7842_s10 = inlined_call_operand.vmem [shape: f32[1,64], index: 10, kind: input, shape index: {}]   ;;  %s7843_s11 = inlined_call_operand.vmem [shape: bf16[64,16], index: 11, kind: input, shape index: {}]   ;;  %s7844_s12 = inlined_call_operand.vmem [shape: f32[1,16], index: 12, kind: input, shape index: {}]   ;;  %s7845_s13 = inlined_call_operand.vmem [shape: f32[1,16], index: 13, kind: input, shape index: {}]   ;;  %s7846_s14 = inlined_call_operand.vmem [shape: f32[1,16], index: 14, kind: input, shape index: {}]   ;;  %s7847_s15 = inlined_call_operand.hbm [shape: f32[2,8,8,16], index: 15, kind: output, shape index: {}]  }
   0x1   :  { %7903 = sst [smem:[#allocation39_spill]] %s7832_s0 }
   0x2   :  { %7904 = sst [smem:[#allocation40_spill]] %s7833_s1 }
   0x3   :  { %7905 = sst [smem:[#allocation41_spill]] %s7834_s2 }
   0x4   :  { %7906 = sst [smem:[#allocation42_spill]] %s7835_s3 }
   0x5   :  { %7907 = sst [smem:[#allocation43_spill]] %s7836_s4 }
   0x6   :  { %7908 = sst [smem:[#allocation44_spill]] %s7837_s5 }
   0x7   :  { %7909 = sst [smem:[#allocation45_spill]] %s7838_s6 }
   0x8   :  { %7910 = sst [smem:[#allocation46_spill]] %s7847_s15 }
   0x9   :  { %20 = vsyncpa [#allocation6], 0 }
   0xa   :  { %22 = vsyncpa [#allocation6 + $0x1], 0  ;;  %s5330_s18 = smov 0   ;;  %s5332_s19 = smov 0  }
   0xb   :  { %s5334_s20 = smov 0   ;;  %s5336_s21 = smov 0  }
   0xc LB: > { %7911 = sst [smem:[#allocation8_spill]] %s5224_s18  ;;  %s5351_s22 = sadd.s32 4294967295, %s5236_s21   ;;  %s5236_s21 = sphi %s5336_s21, %s7996_s21   ;;  %s5232_s20 = sphi %s5334_s20, %s7998_s20   ;;  %s5228_s19 = sphi %s5332_s19, %s8000_s19   ;;  %s5224_s18 = sphi %s5330_s18, %s7999_s18  }
   0xd   : > { %7912 = sst [smem:[#allocation9_spill]] %s5232_s20  ;;  %s4751_s23 = sadd.s32 4294967294, %s5236_s21  }
   0xe   : > { %7913 = sst [smem:[#allocation10_spill]] %s5236_s21  ;;  %s5355_s24 = sadd.s32 1, %s5236_s21  }
   0xf   : > { %7914 = sst [smem:[#allocation11_spill]] %s5355_s24  ;;  %s355_s25 = sadd.s32 1, %s5232_s20 }
  0x10   : > { %s352_s26 = ssub.s32 %s5236_s21, %s5355_s24  ;;  %p365_p0 = scmp.ne.s32.totalorder %s5232_s20, %s5228_s19 }
  0x11   : > { %p353_p1 = scmp.eq.s32.totalorder %s352_s26, 0  ;;  %p366_p2 = scmp.eq.s32.totalorder %s5351_s22, 1 }
  0x12   : > { %p371_p3 = scmp.ne.s32.totalorder %s5228_s19, %s5224_s18  ;;  %p372_p4 = scmp.eq.s32.totalorder %s4751_s23, 1 }
  0x13   : > { %s5366_s27 = scalar_select %p353_p1, %s5232_s20, %s355_s25  }
  0x14   : > { %p5368_p5 = por %p366_p2, %p365_p0  ;;  %p5372_p6 = por %p372_p4, %p371_p3 }
  0x15   : > { %7915 = sst [smem:[#allocation12_spill]] %s5366_s27  ;;  %p4754_p7 = scmp.ge.s32.totalorder %s5236_s21, 1 }
  0x16   : > { %s7917_s29 = scalar_select %p5372_p6, 1, 0 }
  0x17   : > { %p440_p8 = scmp.lt.s32.totalorder %s5236_s21, 3 }
  0x18   : > { %7918 = sst [smem:[#allocation13_spill]] %s7917_s29 }
  0x19   : > { %p441_p9 = pnand %p4754_p7, %p440_p8 }
  0x1b   : > { %444 = sbr.rel (%p441_p9) target bundleno = 2286 (0x8ee), region = 80 }
  0x22   : > { %s7919_s4 = sld [smem:[#allocation43_spill]]  ;;  %p488_p10 = scmp.lt.s32.totalorder %s5351_s22, 1  ;;  %v7848_v2 = vlaneseq  ;;  %v5238_v3 = vmov 0.0|0.0   ;;  %vm5239_vm0 = vmmov 0   ;;  %v7849_v5 = vmov 0.0  }
  0x23   : > { %4847 = vmatprep.subr.bf16.mxu0 %v5238_v3  ;;  %4813 = vmatprep.mubr.msk.f32.mxu0 %vm5239_vm0, %v7849_v5  ;;  %vm502_vm1 = vcmask 130048   ;;  %vm504_vm2 = vcmask 125952   ;;  %s7921_s1 = sld [smem:[#allocation40_spill]]  ;;  %s7926_s0 = sld [smem:[#allocation39_spill]]  ;;  %vm621_vm3 = vcmask 1046528   ;;  %vm698_vm4 = vcmask 1045504  }
  0x24   : > { %s5388_s25 = scalar_select %p488_p10, %s5351_s22, 1  ;;  %503 = vst.msk [vmem:[#allocation2] sm:$0xff] %vm502_vm1, %v7849_v5  ;;  %506 = vst.msk [vmem:[#allocation2 + $0x10] sm:$0xff] %vm502_vm1, %v7849_v5  ;;  %v5439_v6 = vshrl.u32 %v7848_v2, 7  ;;  %4816 = vmatprep.subr.mxu1 %v7849_v5  ;;  %4818 = vmatprep.mubr.msk.f32.mxu1 %vm5239_vm0, %v7849_v5  ;;  %vm775_vm5 = vcmask 1044480   ;;  %vm852_vm6 = vcmask 1043456  }
  0x25   : > { %505 = vst.msk [vmem:[#allocation2 + $0x8] sm:$0xf] %vm504_vm2, %v7849_v5  ;;  %507 = vst.msk [vmem:[#allocation2 + $0x18] sm:$0xf] %vm504_vm2, %v7849_v5  ;;  %s7967_s2 = sld [smem:[#allocation41_spill]]  ;;  %s7968_s3 = sld [smem:[#allocation42_spill]] }
  0x26   : > { %508 = vst.msk [vmem:[#allocation2 + $0x20] sm:$0xff] %vm502_vm1, %v7849_v5  ;;  %510 = vst.msk [vmem:[#allocation2 + $0x30] sm:$0xff] %vm502_vm1, %v7849_v5  ;;  %s4789_s16 = sshll.u32 %s5388_s25, 6  ;;  %v5452_v9 = vsub.s32 0, %v5439_v6  ;;  %v5455_v10 = vsub.s32 1, %v5439_v6  ;;  %v5458_v11 = vsub.s32 2, %v5439_v6 }
  0x27   : > { %509 = vst.msk [vmem:[#allocation2 + $0x28] sm:$0xf] %vm504_vm2, %v7849_v5  ;;  %511 = vst.msk [vmem:[#allocation2 + $0x38] sm:$0xf] %vm504_vm2, %v7849_v5  ;;  %v5461_v12 = vsub.s32 3, %v5439_v6  ;;  %v5467_v13 = vsub.s32 4, %v5439_v6 }
  0x28   : > { %v2265_v0 = vld [vmem:[%s7919_s4] sm:$0xff]  ;;  %v2266_v1 = vld [vmem:[%s7919_s4 + $0x8] sm:$0xff]  ;;  %512 = vst.msk [vmem:[#allocation2 + $0x40] sm:$0xff] %vm502_vm1, %v7849_v5  ;;  %514 = vst.msk [vmem:[#allocation2 + $0x50] sm:$0xff] %vm502_vm1, %v7849_v5  ;;  %v5470_v14 = vsub.s32 5, %v5439_v6  ;;  %v5473_v15 = vsub.s32 6, %v5439_v6 }
  0x29   : > { %v4848_v4 = vpack.c.bf16 %v2266_v1, %v2265_v0  ;;  %513 = vst.msk [vmem:[#allocation2 + $0x48] sm:$0xf] %vm504_vm2, %v7849_v5  ;;  %515 = vst.msk [vmem:[#allocation2 + $0x58] sm:$0xf] %vm504_vm2, %v7849_v5  ;;  %v561_v7 = vld [vmem:[%s7921_s1] sm:$0xff]  ;;  %v562_v8 = vld [vmem:[%s7921_s1 + $0x8] sm:$0xff]  ;;  %s492_s25 = scalar_lea.vmem %s7926_s0, %s4789_s16 }
  0x2a   : > { %516 = vst.msk [vmem:[#allocation2 + $0x60] sm:$0xff] %vm502_vm1, %v7849_v5  ;;  %518 = vst.msk [vmem:[#allocation2 + $0x70] sm:$0xff] %vm502_vm1, %v7849_v5  ;;  %v5476_v16 = vsub.s32 7, %v5439_v6  ;;  %v5478_v17 = vld [vmem:[%s492_s25] sm:$0xff]  ;;  %v5480_v18 = vld [vmem:[%s492_s25 + $0x8] sm:$0xff]  ;;  %v5485_v20 = vrot.slane %v561_v7, %v5452_v9  ;;  %v5488_v21 = vrot.slane %v561_v7, %v5455_v10  ;;  %v5503_v25 = vrot.slane %v561_v7, %v5458_v11  ;;  %s7969_s5 = sld [smem:[#allocation44_spill]] }
  0x2b   : > { %517 = vst.msk [vmem:[#allocation2 + $0x68] sm:$0xf] %vm504_vm2, %v7849_v5  ;;  %519 = vst.msk [vmem:[#allocation2 + $0x78] sm:$0xf] %vm504_vm2, %v7849_v5  ;;  %4849 = vmatpush3.bf16.msra.mxu0 %v4848_v4  ;;  %v5482_v19 = vld [vmem:[%s492_s25 + $0x10] sm:$0xff]  ;;  %v5490_v22 = vld [vmem:[%s492_s25 + $0x18] sm:$0xff]  ;;  %v5506_v26 = vrot.slane %v561_v7, %v5461_v12  ;;  %v5509_v27 = vrot.slane %v561_v7, %v5467_v13  ;;  %v5512_v28 = vrot.slane %v561_v7, %v5470_v14 }
  0x2c   : > { %520 = vst.msk [vmem:[#allocation2 + $0x80] sm:$0xff] %vm502_vm1, %v7849_v5  ;;  %522 = vst.msk [vmem:[#allocation2 + $0x90] sm:$0xff] %vm502_vm1, %v7849_v5  ;;  %v5492_v23 = vld [vmem:[%s492_s25 + $0x20] sm:$0xff]  ;;  %v5494_v24 = vld [vmem:[%s492_s25 + $0x28] sm:$0xff]  ;;  %v5525_v31 = vrot.slane %v561_v7, %v5473_v15  ;;  %v5528_v32 = vrot.slane %v561_v7, %v5476_v16  ;;  %v5531_v33 = vrot.slane %v562_v8, %v5452_v9  ;;  %vm2263_vm7 = vcmask 1040384   ;;  %s7970_s6 = sld [smem:[#allocation45_spill]] }
  0x2d   : > { %521 = vst.msk [vmem:[#allocation2 + $0x88] sm:$0xf] %vm504_vm2, %v7849_v5  ;;  %523 = vst.msk [vmem:[#allocation2 + $0x98] sm:$0xf] %vm504_vm2, %v7849_v5  ;;  %v5514_v29 = vld [vmem:[%s492_s25 + $0x30] sm:$0xff]  ;;  %v5516_v30 = vld [vmem:[%s492_s25 + $0x38] sm:$0xff]  ;;  %v5534_v34 = vrot.slane %v562_v8, %v5455_v10  ;;  %v5547_v38 = vrot.slane %v562_v8, %v5458_v11  ;;  %v5550_v39 = vrot.slane %v562_v8, %v5461_v12 }
  0x2e   : > { %524 = vst.msk [vmem:[#allocation2 + $0xa0] sm:$0xff] %vm502_vm1, %v7849_v5  ;;  %526 = vst.msk [vmem:[#allocation2 + $0xb0] sm:$0xff] %vm502_vm1, %v7849_v5  ;;  %v5540_v35 = vld [vmem:[#allocation2] sm:$0xff]  ;;  %v5542_v36 = vld [vmem:[#allocation2 + $0x8] sm:$0xf]  ;;  %v5553_v40 = vrot.slane %v562_v8, %v5467_v13  ;;  %v5556_v41 = vrot.slane %v562_v8, %v5470_v14  ;;  %s7884_s4 = smov 127  }
  0x2f   : > { %525 = vst.msk [vmem:[#allocation2 + $0xa8] sm:$0xf] %vm504_vm2, %v7849_v5  ;;  %527 = vst.msk [vmem:[#allocation2 + $0xb8] sm:$0xf] %vm504_vm2, %v7849_v5  ;;  %v5544_v37 = vld [vmem:[#allocation2 + $0x10] sm:$0xff]  ;;  %v5562_v43 = vmul.f32 %v5485_v20, %v5540_v35  ;;  %v589_v45 = vmul.f32 %v5488_v21, %v5540_v35  ;;  %v590_v46 = vmul.f32 %v5488_v21, %v5542_v36  ;;  %vm2342_vm8 = vcmask 31744  }
  0x30   : > { %7920 = vst [vmem:[#allocation14_spill] sm:$0xff] %v5439_v6  ;;  %7922 = vst [vmem:[#allocation15_spill] sm:$0xff] %v5452_v9  ;;  %v5558_v42 = vld [vmem:[#allocation2 + $0x18] sm:$0xf]  ;;  %v5566_v44 = vmul.f32 %v5485_v20, %v5544_v37  ;;  %v591_v47 = vmul.f32 %v5488_v21, %v5544_v37  ;;  %v5578_v49 = vmul.f32 %v5503_v25, %v5540_v35  ;;  %vm2419_vm9 = vcmask 123904   ;;  %s7974_s20 = smov 127  }
  0x31   : > { %7923 = vst [vmem:[#allocation16_spill] sm:$0xff] %v5455_v10  ;;  %7924 = vst [vmem:[#allocation17_spill] sm:$0xff] %v5458_v11  ;;  %v592_v48 = vmul.f32 %v5488_v21, %v5558_v42  ;;  %v5582_v50 = vmul.f32 %v5503_v25, %v5542_v36  ;;  %v622_v51 = vrot.slane %v589_v45, 1  ;;  %v623_v52 = vrot.slane %v590_v46, 1  ;;  %s7975_s24 = smov 126   ;;  %s7977_s18 = smov 125  }
  0x32   : > { %7925 = vst [vmem:[#allocation18_spill] sm:$0xff] %v5461_v12  ;;  %7927 = vst [vmem:[#allocation19_spill] sm:$0xff] %v5467_v13  ;;  %v5586_v53 = vmul.f32 %v5503_v25, %v5544_v37  ;;  %v5590_v54 = vmul.f32 %v5503_v25, %v5558_v42  ;;  %v625_v55 = vrot.slane %v591_v47, 1  ;;  %v5605_v1 = vmul.f32 %v5506_v26, %v5540_v35 }
  0x33   : > { %7928 = vst [vmem:[#allocation20_spill] sm:$0xff] %v5470_v14  ;;  %7929 = vst [vmem:[#allocation21_spill] sm:$0xff] %v5473_v15  ;;  %v626_v56 = vrot.slane %v592_v48, 1  ;;  %v624_v62 = vsel %vm621_vm3, %v622_v51, %v623_v52  ;;  %vm2441_vm10 = vcmask 113664   ;;  %vm2443_vm11 = vcmask 111616  }
  0x34   : > { %7930 = vst [vmem:[#allocation22_spill] sm:$0xff] %v5476_v16  ;;  %7931 = vst [vmem:[#allocation23_spill] sm:$0xff] %v5478_v17  ;;  %vm2523_vm12 = vcmask 1041409   ;;  %vm2525_vm13 = vcmask 1042434   ;;  %vm2527_vm14 = vcmask 1043459   ;;  %vm2529_vm15 = vcmask 1044484  }
  0x35   : > { %7932 = vst [vmem:[#allocation24_spill] sm:$0xff] %v5480_v18  ;;  %7933 = vst [vmem:[#allocation25_spill] sm:$0xff] %v5482_v19  ;;  %v627_v12 = vsel %vm621_vm3, %v625_v55, %v626_v56  ;;  %v654_v56 = vadd.f32 %v624_v62, %v5562_v43  ;;  %vm2531_vm0 = vcmask 1045509   ;;  %vm2533_vm2 = vcmask 1046534  }
  0x36   : > { %7934 = vst [vmem:[#allocation26_spill] sm:$0xff] %v5490_v22  ;;  %7935 = vst [vmem:[#allocation27_spill] sm:$0xff] %v5492_v23 }
  0x37   : > { %7936 = vst [vmem:[#allocation28_spill] sm:$0xff] %v5494_v24  ;;  %529 = vst.msk [vmem:[#allocation2 + $0x22] sm:$0xff] %vm502_vm1, %v5478_v17 }
  0x38   : > { %530 = vst.msk [vmem:[#allocation2 + $0x32] sm:$0xff] %vm502_vm1, %v5480_v18  ;;  %531 = vst.msk [vmem:[#allocation2 + $0x42] sm:$0xff] %vm502_vm1, %v5482_v19 }
  0x39   : > { %7937 = vst [vmem:[#allocation29_spill] sm:$0xff] %v5514_v29  ;;  %7938 = vst [vmem:[#allocation30_spill] sm:$0xff] %v5516_v30 }
  0x3a   : > { %532 = vst.msk [vmem:[#allocation2 + $0x52] sm:$0xff] %vm502_vm1, %v5490_v22  ;;  %533 = vst.msk [vmem:[#allocation2 + $0x62] sm:$0xff] %vm502_vm1, %v5492_v23 }
  0x3b   : > { %534 = vst.msk [vmem:[#allocation2 + $0x72] sm:$0xff] %vm502_vm1, %v5494_v24  ;;  %7939 = vst [vmem:[#allocation31_spill] sm:$0xff] %v5525_v31 }
  0x3c   : > { %7940 = vst [vmem:[#allocation32_spill] sm:$0xff] %v5528_v32  ;;  %7941 = vst [vmem:[#allocation33_spill] sm:$0xff] %v5531_v33 }
  0x3d   : > { %7942 = vst [vmem:[#allocation34_spill] sm:$0xff] %v5534_v34  ;;  %535 = vst.msk [vmem:[#allocation2 + $0x82] sm:$0xff] %vm502_vm1, %v5514_v29 }
  0x3e   : > { %536 = vst.msk [vmem:[#allocation2 + $0x92] sm:$0xff] %vm502_vm1, %v5516_v30  ;;  %7943 = vst [vmem:[#allocation35_spill] sm:$0xff] %v5547_v38  ;;  %v5594_v59 = vld [vmem:[#allocation2 + $0x20] sm:$0xff]  ;;  %v5596_v60 = vld [vmem:[#allocation2 + $0x28] sm:$0xf] }
  0x3f   : > { %7944 = vst [vmem:[#allocation36_spill] sm:$0xff] %v5550_v39  ;;  %7945 = vst [vmem:[#allocation37_spill] sm:$0xff] %v5553_v40  ;;  %v5598_v61 = vld [vmem:[#allocation2 + $0x30] sm:$0xff]  ;;  %v5607_v3 = vld [vmem:[#allocation2 + $0x38] sm:$0xf]  ;;  %v571_v8 = vmul.f32 %v5485_v20, %v5594_v59  ;;  %v593_v46 = vmul.f32 %v5488_v21, %v5594_v59  ;;  %v594_v47 = vmul.f32 %v5488_v21, %v5596_v60 }
  0x40   : > { %7946 = vst [vmem:[#allocation38_spill] sm:$0xff] %v5556_v41  ;;  %v5609_v4 = vld [vmem:[#allocation2 + $0x40] sm:$0xff]  ;;  %v5611_v7 = vld [vmem:[#allocation2 + $0x48] sm:$0xf]  ;;  %v572_v45 = vmul.f32 %v5485_v20, %v5598_v61  ;;  %v595_v5 = vmul.f32 %v5488_v21, %v5598_v61  ;;  %v596_v63 = vmul.f32 %v5488_v21, %v5607_v3 }
  0x41   : > { %v5621_v48 = vld [vmem:[#allocation2 + $0x50] sm:$0xff]  ;;  %v5623_v51 = vld [vmem:[#allocation2 + $0x58] sm:$0xf]  ;;  %v5625_v52 = vld [vmem:[#allocation2 + $0x60] sm:$0xff]  ;;  %v573_v2 = vmul.f32 %v5485_v20, %v5609_v4  ;;  %v597_v0 = vmul.f32 %v5488_v21, %v5609_v4  ;;  %v598_v22 = vmul.f32 %v5488_v21, %v5611_v7  ;;  %v628_v11 = vrot.slane %v593_v46, 1 }
  0x42   : > { %v5635_v57 = vld [vmem:[#allocation2 + $0x68] sm:$0xf]  ;;  %v5637_v58 = vld [vmem:[#allocation2 + $0x70] sm:$0xff]  ;;  %v5639_v24 = vld [vmem:[#allocation2 + $0x78] sm:$0xf]  ;;  %v574_v18 = vmul.f32 %v5485_v20, %v5621_v48  ;;  %v575_v30 = vmul.f32 %v5485_v20, %v5625_v52  ;;  %v599_v23 = vmul.f32 %v5488_v21, %v5621_v48  ;;  %v600_v29 = vmul.f32 %v5488_v21, %v5623_v51 }
  0x43   : > { %v576_v17 = vmul.f32 %v5485_v20, %v5637_v58  ;;  %v601_v19 = vmul.f32 %v5488_v21, %v5625_v52  ;;  %v602_v6 = vmul.f32 %v5488_v21, %v5635_v57  ;;  %v603_v14 = vmul.f32 %v5488_v21, %v5637_v58 }
  0x44   : > { %v604_v13 = vmul.f32 %v5488_v21, %v5639_v24  ;;  %v629_v20 = vrot.slane %v594_v47, 1  ;;  %v631_v10 = vrot.slane %v595_v5, 1  ;;  %v632_v9 = vrot.slane %v596_v63, 1 }
  0x45   : > { %v634_v16 = vrot.slane %v597_v0, 1  ;;  %v635_v15 = vrot.slane %v598_v22, 1  ;;  %v637_v41 = vrot.slane %v599_v23, 1  ;;  %v638_v40 = vrot.slane %v600_v29, 1 }
  0x46   : > { %v640_v39 = vrot.slane %v601_v19, 1  ;;  %v630_v38 = vsel %vm621_vm3, %v628_v11, %v629_v20  ;;  %v633_v34 = vsel %vm621_vm3, %v631_v10, %v632_v9  ;;  %v641_v33 = vrot.slane %v602_v6, 1 }
  0x47   : > { %v643_v32 = vrot.slane %v603_v14, 1  ;;  %v636_v31 = vsel %vm621_vm3, %v634_v16, %v635_v15  ;;  %v639_v21 = vsel %vm621_vm3, %v637_v41, %v638_v40  ;;  %v644_v55 = vrot.slane %v604_v13, 1 }
  0x48   : > { %v642_v5 = vsel %vm621_vm3, %v640_v39, %v641_v33  ;;  %v655_v22 = vadd.f32 %v627_v12, %v5566_v44  ;;  %v656_v23 = vadd.f32 %v630_v38, %v571_v8  ;;  %v657_v29 = vadd.f32 %v633_v34, %v572_v45 }
  0x49   : > { %v645_v19 = vsel %vm621_vm3, %v643_v32, %v644_v55  ;;  %v658_v11 = vadd.f32 %v636_v31, %v573_v2  ;;  %v659_v63 = vadd.f32 %v639_v21, %v574_v18  ;;  %v660_v9 = vadd.f32 %v642_v5, %v575_v30 }
  0x4a   : > { %v661_v6 = vadd.f32 %v645_v19, %v576_v17  ;;  %v670_v10 = vmul.f32 %v5503_v25, %v5594_v59  ;;  %v671_v13 = vmul.f32 %v5503_v25, %v5596_v60  ;;  %v672_v14 = vmul.f32 %v5503_v25, %v5598_v61 }
  0x4b   : > { %v673_v12 = vmul.f32 %v5503_v25, %v5607_v3  ;;  %v674_v15 = vmul.f32 %v5503_v25, %v5609_v4  ;;  %v675_v2 = vmul.f32 %v5503_v25, %v5611_v7  ;;  %v676_v16 = vmul.f32 %v5503_v25, %v5621_v48 }
  0x4c   : > { %v677_v17 = vmul.f32 %v5503_v25, %v5623_v51  ;;  %v678_v18 = vmul.f32 %v5503_v25, %v5625_v52  ;;  %v679_v30 = vmul.f32 %v5503_v25, %v5635_v57  ;;  %v680_v31 = vmul.f32 %v5503_v25, %v5637_v58 }
  0x4d   : > { %v681_v32 = vmul.f32 %v5503_v25, %v5639_v24  ;;  %v7947_v33 = vrot.slane %v5582_v50, 2  ;;  %v7948_v34 = vrot.slane %v5578_v49, 2  ;;  %v7949_v39 = vrot.slane %v5590_v54, 2 }
  0x4e   : > { %v7950_v40 = vrot.slane %v5586_v53, 2  ;;  %v705_v43 = vrot.slane %v670_v10, 2  ;;  %v706_v44 = vrot.slane %v671_v13, 2  ;;  %v708_v62 = vrot.slane %v672_v14, 2 }
  0x4f   : > { %v701_v38 = vsel %vm698_vm4, %v7948_v34, %v7947_v33  ;;  %v709_v0 = vrot.slane %v673_v12, 2  ;;  %v711_v8 = vrot.slane %v674_v15, 2  ;;  %v712_v45 = vrot.slane %v675_v2, 2 }
  0x50   : > { %v704_v41 = vsel %vm698_vm4, %v7950_v40, %v7949_v39  ;;  %v714_v46 = vrot.slane %v676_v16, 2  ;;  %v715_v25 = vrot.slane %v677_v17, 2  ;;  %v717_v47 = vrot.slane %v678_v18, 2 }
  0x51   : > { %v707_v49 = vsel %vm698_vm4, %v705_v43, %v706_v44  ;;  %v710_v50 = vsel %vm698_vm4, %v708_v62, %v709_v0  ;;  %v718_v20 = vrot.slane %v679_v30, 2  ;;  %v720_v54 = vrot.slane %v680_v31, 2 }
  0x52   : > { %v713_v53 = vsel %vm698_vm4, %v711_v8, %v712_v45  ;;  %v716_v21 = vsel %vm698_vm4, %v714_v46, %v715_v25  ;;  %v721_v55 = vrot.slane %v681_v32, 2  ;;  %v731_v5 = vadd.f32 %v701_v38, %v654_v56 }
  0x53   : > { %v719_v19 = vsel %vm698_vm4, %v717_v47, %v718_v20  ;;  %v732_v10 = vadd.f32 %v704_v41, %v655_v22  ;;  %v733_v13 = vadd.f32 %v707_v49, %v656_v23  ;;  %v734_v14 = vadd.f32 %v710_v50, %v657_v29 }
  0x54   : > { %v722_v12 = vsel %vm698_vm4, %v720_v54, %v721_v55  ;;  %v735_v15 = vadd.f32 %v713_v53, %v658_v11  ;;  %v736_v2 = vadd.f32 %v716_v21, %v659_v63  ;;  %v737_v16 = vadd.f32 %v719_v19, %v660_v9 }
  0x55   : > { %v738_v17 = vadd.f32 %v722_v12, %v661_v6  ;;  %v744_v18 = vmul.f32 %v5506_v26, %v5542_v36  ;;  %v745_v30 = vmul.f32 %v5506_v26, %v5544_v37  ;;  %v746_v56 = vmul.f32 %v5506_v26, %v5558_v42 }
  0x56   : > { %v747_v22 = vmul.f32 %v5506_v26, %v5594_v59  ;;  %v748_v23 = vmul.f32 %v5506_v26, %v5596_v60  ;;  %v749_v29 = vmul.f32 %v5506_v26, %v5598_v61  ;;  %v750_v11 = vmul.f32 %v5506_v26, %v5607_v3 }
  0x57   : > { %v751_v63 = vmul.f32 %v5506_v26, %v5609_v4  ;;  %v752_v9 = vmul.f32 %v5506_v26, %v5611_v7  ;;  %v753_v6 = vmul.f32 %v5506_v26, %v5621_v48  ;;  %v754_v31 = vmul.f32 %v5506_v26, %v5623_v51 }
  0x58   : > { %v755_v32 = vmul.f32 %v5506_v26, %v5625_v52  ;;  %v756_v33 = vmul.f32 %v5506_v26, %v5635_v57  ;;  %v757_v34 = vmul.f32 %v5506_v26, %v5637_v58  ;;  %v758_v38 = vmul.f32 %v5506_v26, %v5639_v24 }
  0x59   : > { %v776_v39 = vrot.slane %v5605_v1, 3  ;;  %v777_v40 = vrot.slane %v744_v18, 3  ;;  %v779_v41 = vrot.slane %v745_v30, 3  ;;  %v780_v43 = vrot.slane %v746_v56, 3 }
  0x5a   : > { %v782_v44 = vrot.slane %v747_v22, 3  ;;  %v783_v62 = vrot.slane %v748_v23, 3  ;;  %v785_v0 = vrot.slane %v749_v29, 3  ;;  %v786_v8 = vrot.slane %v750_v11, 3 }
  0x5b   : > { %v778_v45 = vsel %vm775_vm5, %v776_v39, %v777_v40  ;;  %v781_v46 = vsel %vm775_vm5, %v779_v41, %v780_v43  ;;  %v788_v25 = vrot.slane %v751_v63, 3  ;;  %v789_v47 = vrot.slane %v752_v9, 3 }
  0x5c   : > { %v784_v49 = vsel %vm775_vm5, %v782_v44, %v783_v62  ;;  %v787_v50 = vsel %vm775_vm5, %v785_v0, %v786_v8  ;;  %v791_v26 = vrot.slane %v753_v6, 3  ;;  %v792_v20 = vrot.slane %v754_v31, 3 }
  0x5d   : > { %v790_v1 = vsel %vm775_vm5, %v788_v25, %v789_v47  ;;  %v794_v54 = vrot.slane %v755_v32, 3  ;;  %v795_v53 = vrot.slane %v756_v33, 3  ;;  %v797_v21 = vrot.slane %v757_v34, 3 }
  0x5e   : > { %v793_v55 = vsel %vm775_vm5, %v791_v26, %v792_v20  ;;  %v798_v19 = vrot.slane %v758_v38, 3  ;;  %v808_v12 = vadd.f32 %v778_v45, %v731_v5  ;;  %v809_v18 = vadd.f32 %v781_v46, %v732_v10 }
  0x5f   : > { %v796_v30 = vsel %vm775_vm5, %v794_v54, %v795_v53  ;;  %v810_v56 = vadd.f32 %v784_v49, %v733_v13  ;;  %v811_v22 = vadd.f32 %v787_v50, %v734_v14  ;;  %v812_v23 = vadd.f32 %v790_v1, %v735_v15 }
  0x60   : > { %v799_v29 = vsel %vm775_vm5, %v797_v21, %v798_v19  ;;  %v813_v11 = vadd.f32 %v793_v55, %v736_v2  ;;  %v814_v63 = vadd.f32 %v796_v30, %v737_v16  ;;  %v820_v9 = vmul.f32 %v5509_v27, %v5540_v35 }
  0x61   : > { %v815_v6 = vadd.f32 %v799_v29, %v738_v17  ;;  %v821_v31 = vmul.f32 %v5509_v27, %v5542_v36  ;;  %v822_v5 = vmul.f32 %v5509_v27, %v5544_v37  ;;  %v823_v10 = vmul.f32 %v5509_v27, %v5558_v42  ;;  %v5787_v29 = vld [vmem:[#allocation2 + $0x80] sm:$0xff] }
  0x62   : > { %v824_v13 = vmul.f32 %v5509_v27, %v5594_v59  ;;  %v825_v14 = vmul.f32 %v5509_v27, %v5596_v60  ;;  %v826_v15 = vmul.f32 %v5509_v27, %v5598_v61  ;;  %v827_v35 = vmul.f32 %v5509_v27, %v5607_v3 }
  0x63   : > { %v828_v36 = vmul.f32 %v5509_v27, %v5609_v4  ;;  %v829_v2 = vmul.f32 %v5509_v27, %v5611_v7  ;;  %v830_v16 = vmul.f32 %v5509_v27, %v5621_v48  ;;  %v831_v17 = vmul.f32 %v5509_v27, %v5623_v51 }
  0x64   : > { %v832_v32 = vmul.f32 %v5509_v27, %v5625_v52  ;;  %v833_v33 = vmul.f32 %v5509_v27, %v5635_v57  ;;  %v834_v34 = vmul.f32 %v5509_v27, %v5637_v58  ;;  %v835_v38 = vmul.f32 %v5509_v27, %v5639_v24 }
  0x65   : > { %v853_v39 = vrot.slane %v820_v9, 4  ;;  %v854_v40 = vrot.slane %v821_v31, 4  ;;  %v856_v41 = vrot.slane %v822_v5, 4  ;;  %v857_v43 = vrot.slane %v823_v10, 4 }
  0x66   : > { %v859_v44 = vrot.slane %v824_v13, 4  ;;  %v860_v62 = vrot.slane %v825_v14, 4  ;;  %v862_v0 = vrot.slane %v826_v15, 4  ;;  %v863_v8 = vrot.slane %v827_v35, 4 }
  0x67   : > { %v855_v45 = vsel %vm852_vm6, %v853_v39, %v854_v40  ;;  %v858_v46 = vsel %vm852_vm6, %v856_v41, %v857_v43  ;;  %v865_v25 = vrot.slane %v828_v36, 4  ;;  %v866_v47 = vrot.slane %v829_v2, 4  ;;  %v5807_v39 = vld [vmem:[#allocation2 + $0x88] sm:$0xf] }
  0x68   : > { %v861_v49 = vsel %vm852_vm6, %v859_v44, %v860_v62  ;;  %v864_v50 = vsel %vm852_vm6, %v862_v0, %v863_v8  ;;  %v868_v26 = vrot.slane %v830_v16, 4  ;;  %v869_v27 = vrot.slane %v831_v17, 4  ;;  %v7951_v40 = vld [vmem:[#allocation31_spill] sm:$0xff] }
  0x69   : > { %v867_v20 = vsel %vm852_vm6, %v865_v25, %v866_v47  ;;  %v871_v1 = vrot.slane %v832_v32, 4  ;;  %v872_v54 = vrot.slane %v833_v33, 4  ;;  %v874_v53 = vrot.slane %v834_v34, 4 }
  0x6a   : > { %v870_v21 = vsel %vm852_vm6, %v868_v26, %v869_v27  ;;  %v875_v55 = vrot.slane %v835_v38, 4  ;;  %v885_v19 = vadd.f32 %v855_v45, %v808_v12  ;;  %v886_v30 = vadd.f32 %v858_v46, %v809_v18 }
  0x6b   : > { %v873_v9 = vsel %vm852_vm6, %v871_v1, %v872_v54  ;;  %v887_v31 = vadd.f32 %v861_v49, %v810_v56  ;;  %v888_v5 = vadd.f32 %v864_v50, %v811_v22  ;;  %v889_v10 = vadd.f32 %v867_v20, %v812_v23 }
  0x6c   : > { %v876_v13 = vsel %vm852_vm6, %v874_v53, %v875_v55  ;;  %v890_v14 = vadd.f32 %v870_v21, %v813_v11  ;;  %v891_v15 = vadd.f32 %v873_v9, %v814_v63  ;;  %v897_v35 = vmul.f32 %v5512_v28, %v5544_v37 }
  0x6d   : > { %v892_v36 = vadd.f32 %v876_v13, %v815_v6  ;;  %v898_v2 = vmul.f32 %v5512_v28, %v5594_v59  ;;  %v899_v12 = vmul.f32 %v5512_v28, %v5598_v61  ;;  %v900_v18 = vmul.f32 %v5512_v28, %v5609_v4 }
  0x6e   : > { %v901_v56 = vmul.f32 %v5512_v28, %v5621_v48  ;;  %v902_v22 = vmul.f32 %v5512_v28, %v5625_v52  ;;  %v903_v23 = vmul.f32 %v5512_v28, %v5637_v58  ;;  %v904_v11 = vmul.f32 %v5512_v28, %v5787_v29 }
  0x6f   : > { %v905_v63 = vadd.f32 %v897_v35, %v885_v19  ;;  %v906_v6 = vadd.f32 %v898_v2, %v886_v30  ;;  %v907_v16 = vadd.f32 %v899_v12, %v887_v31  ;;  %v908_v17 = vadd.f32 %v900_v18, %v888_v5 }
  0x70   : > { %v909_v32 = vadd.f32 %v901_v56, %v889_v10  ;;  %v910_v33 = vadd.f32 %v902_v22, %v890_v14  ;;  %v911_v34 = vadd.f32 %v903_v23, %v891_v15  ;;  %v912_v38 = vadd.f32 %v904_v11, %v892_v36 }
  0x71   : > { %v917_v41 = vmul.f32 %v7951_v40, %v5544_v37  ;;  %v918_v43 = vmul.f32 %v7951_v40, %v5558_v42  ;;  %v919_v44 = vmul.f32 %v7951_v40, %v5594_v59  ;;  %v920_v28 = vmul.f32 %v7951_v40, %v5596_v60 }
  0x72   : > { %v921_v62 = vmul.f32 %v7951_v40, %v5598_v61  ;;  %v922_v0 = vmul.f32 %v7951_v40, %v5607_v3  ;;  %v923_v8 = vmul.f32 %v7951_v40, %v5609_v4  ;;  %v924_v45 = vmul.f32 %v7951_v40, %v5611_v7 }
  0x73   : > { %v925_v46 = vmul.f32 %v7951_v40, %v5621_v48  ;;  %v926_v25 = vmul.f32 %v7951_v40, %v5623_v51  ;;  %v927_v47 = vmul.f32 %v7951_v40, %v5625_v52  ;;  %v928_v49 = vmul.f32 %v7951_v40, %v5635_v57 }
  0x74   : > { %v929_v50 = vmul.f32 %v7951_v40, %v5637_v58  ;;  %v930_v26 = vmul.f32 %v7951_v40, %v5639_v24  ;;  %v931_v27 = vmul.f32 %v7951_v40, %v5787_v29  ;;  %v932_v20 = vmul.f32 %v7951_v40, %v5807_v39 }
  0x75   : > { %v949_v1 = vrot.slane %v917_v41, 1  ;;  %v950_v54 = vrot.slane %v918_v43, 1  ;;  %v952_v53 = vrot.slane %v919_v44, 1  ;;  %v953_v21 = vrot.slane %v920_v28, 1 }
  0x76   : > { %v955_v55 = vrot.slane %v921_v62, 1  ;;  %v956_v19 = vrot.slane %v922_v0, 1  ;;  %v958_v30 = vrot.slane %v923_v8, 1  ;;  %v959_v9 = vrot.slane %v924_v45, 1  ;;  %v7952_v45 = vld [vmem:[#allocation32_spill] sm:$0xff] }
  0x77   : > { %v951_v31 = vsel %vm621_vm3, %v949_v1, %v950_v54  ;;  %v954_v5 = vsel %vm621_vm3, %v952_v53, %v953_v21  ;;  %v961_v10 = vrot.slane %v925_v46, 1  ;;  %v962_v13 = vrot.slane %v926_v25, 1 }
  0x78   : > { %v957_v14 = vsel %vm621_vm3, %v955_v55, %v956_v19  ;;  %v960_v15 = vsel %vm621_vm3, %v958_v30, %v959_v9  ;;  %v964_v35 = vrot.slane %v927_v47, 1  ;;  %v965_v36 = vrot.slane %v928_v49, 1 }
  0x79   : > { %v963_v2 = vsel %vm621_vm3, %v961_v10, %v962_v13  ;;  %v967_v12 = vrot.slane %v929_v50, 1  ;;  %v968_v18 = vrot.slane %v930_v26, 1  ;;  %v970_v56 = vrot.slane %v931_v27, 1 }
  0x7a   : > { %v966_v22 = vsel %vm621_vm3, %v964_v35, %v965_v36  ;;  %v971_v23 = vrot.slane %v932_v20, 1  ;;  %v981_v11 = vadd.f32 %v951_v31, %v905_v63  ;;  %v982_v40 = vadd.f32 %v954_v5, %v906_v6 }
  0x7b   : > { %v969_v41 = vsel %vm621_vm3, %v967_v12, %v968_v18  ;;  %v983_v43 = vadd.f32 %v957_v14, %v907_v16  ;;  %v984_v44 = vadd.f32 %v960_v15, %v908_v17  ;;  %v985_v28 = vadd.f32 %v963_v2, %v909_v32 }
  0x7c   : > { %v972_v62 = vsel %vm621_vm3, %v970_v56, %v971_v23  ;;  %v986_v0 = vadd.f32 %v966_v22, %v910_v33  ;;  %v987_v8 = vadd.f32 %v969_v41, %v911_v34  ;;  %v993_v46 = vmul.f32 %v7952_v45, %v5544_v37 }
  0x7d   : > { %v988_v25 = vadd.f32 %v972_v62, %v912_v38  ;;  %v994_v47 = vmul.f32 %v7952_v45, %v5558_v42  ;;  %v995_v63 = vmul.f32 %v7952_v45, %v5594_v59  ;;  %v996_v6 = vmul.f32 %v7952_v45, %v5596_v60 }
  0x7e   : > { %v997_v16 = vmul.f32 %v7952_v45, %v5598_v61  ;;  %v998_v17 = vmul.f32 %v7952_v45, %v5607_v3  ;;  %v999_v32 = vmul.f32 %v7952_v45, %v5609_v4  ;;  %v1000_v33 = vmul.f32 %v7952_v45, %v5611_v7 }
  0x7f   : > { %v1001_v34 = vmul.f32 %v7952_v45, %v5621_v48  ;;  %v1002_v38 = vmul.f32 %v7952_v45, %v5623_v51  ;;  %v1003_v49 = vmul.f32 %v7952_v45, %v5625_v52  ;;  %v1004_v50 = vmul.f32 %v7952_v45, %v5635_v57 }
  0x80   : > { %v1005_v26 = vmul.f32 %v7952_v45, %v5637_v58  ;;  %v1006_v27 = vmul.f32 %v7952_v45, %v5639_v24  ;;  %v1007_v20 = vmul.f32 %v7952_v45, %v5787_v29  ;;  %v1008_v1 = vmul.f32 %v7952_v45, %v5807_v39 }
  0x81   : > { %v1025_v54 = vrot.slane %v993_v46, 2  ;;  %v1026_v53 = vrot.slane %v994_v47, 2  ;;  %v1028_v21 = vrot.slane %v995_v63, 2  ;;  %v1029_v55 = vrot.slane %v996_v6, 2 }
  0x82   : > { %v1031_v19 = vrot.slane %v997_v16, 2  ;;  %v1032_v30 = vrot.slane %v998_v17, 2  ;;  %v1034_v9 = vrot.slane %v999_v32, 2  ;;  %v1035_v31 = vrot.slane %v1000_v33, 2  ;;  %v7953_v33 = vld [vmem:[#allocation33_spill] sm:$0xff] }
  0x83   : > { %v1027_v5 = vsel %vm698_vm4, %v1025_v54, %v1026_v53  ;;  %v1030_v10 = vsel %vm698_vm4, %v1028_v21, %v1029_v55  ;;  %v1037_v13 = vrot.slane %v1001_v34, 2  ;;  %v1038_v14 = vrot.slane %v1002_v38, 2 }
  0x84   : > { %v1033_v15 = vsel %vm698_vm4, %v1031_v19, %v1032_v30  ;;  %v1036_v35 = vsel %vm698_vm4, %v1034_v9, %v1035_v31  ;;  %v1040_v36 = vrot.slane %v1003_v49, 2  ;;  %v1041_v2 = vrot.slane %v1004_v50, 2 }
  0x85   : > { %v1039_v12 = vsel %vm698_vm4, %v1037_v13, %v1038_v14  ;;  %v1043_v18 = vrot.slane %v1005_v26, 2  ;;  %v1044_v56 = vrot.slane %v1006_v27, 2  ;;  %v1046_v22 = vrot.slane %v1007_v20, 2 }
  0x86   : > { %v1042_v23 = vsel %vm698_vm4, %v1040_v36, %v1041_v2  ;;  %v1047_v41 = vrot.slane %v1008_v1, 2  ;;  %v1057_v62 = vadd.f32 %v1027_v5, %v981_v11  ;;  %v1058_v45 = vadd.f32 %v1030_v10, %v982_v40 }
  0x87   : > { %v1045_v46 = vsel %vm698_vm4, %v1043_v18, %v1044_v56  ;;  %v1059_v47 = vadd.f32 %v1033_v15, %v983_v43  ;;  %v1060_v63 = vadd.f32 %v1036_v35, %v984_v44  ;;  %v1061_v6 = vadd.f32 %v1039_v12, %v985_v28 }
  0x88   : > { %v1048_v16 = vsel %vm698_vm4, %v1046_v22, %v1047_v41  ;;  %v1062_v17 = vadd.f32 %v1042_v23, %v986_v0  ;;  %v1063_v32 = vadd.f32 %v1045_v46, %v987_v8  ;;  %v1069_v34 = vmul.f32 %v7953_v33, %v5544_v37 }
  0x89   : > { %v1064_v38 = vadd.f32 %v1048_v16, %v988_v25  ;;  %v1070_v49 = vmul.f32 %v7953_v33, %v5558_v42  ;;  %v1071_v11 = vmul.f32 %v7953_v33, %v5594_v59  ;;  %v1072_v40 = vmul.f32 %v7953_v33, %v5596_v60 }
  0x8a   : > { %v1073_v43 = vmul.f32 %v7953_v33, %v5598_v61  ;;  %v1074_v44 = vmul.f32 %v7953_v33, %v5607_v3  ;;  %v1075_v28 = vmul.f32 %v7953_v33, %v5609_v4  ;;  %v1076_v0 = vmul.f32 %v7953_v33, %v5611_v7 }
  0x8b   : > { %v1077_v8 = vmul.f32 %v7953_v33, %v5621_v48  ;;  %v1078_v25 = vmul.f32 %v7953_v33, %v5623_v51  ;;  %v1079_v50 = vmul.f32 %v7953_v33, %v5625_v52  ;;  %v1080_v26 = vmul.f32 %v7953_v33, %v5635_v57 }
  0x8c   : > { %v1081_v27 = vmul.f32 %v7953_v33, %v5637_v58  ;;  %v1082_v20 = vmul.f32 %v7953_v33, %v5639_v24  ;;  %v1083_v1 = vmul.f32 %v7953_v33, %v5787_v29  ;;  %v1084_v54 = vmul.f32 %v7953_v33, %v5807_v39 }
  0x8d   : > { %v1101_v53 = vrot.slane %v1069_v34, 3  ;;  %v1102_v21 = vrot.slane %v1070_v49, 3  ;;  %v1104_v55 = vrot.slane %v1071_v11, 3  ;;  %v1105_v19 = vrot.slane %v1072_v40, 3 }
  0x8e   : > { %v1107_v30 = vrot.slane %v1073_v43, 3  ;;  %v1108_v9 = vrot.slane %v1074_v44, 3  ;;  %v1110_v31 = vrot.slane %v1075_v28, 3  ;;  %v1111_v5 = vrot.slane %v1076_v0, 3  ;;  %v7954_v0 = vld [vmem:[#allocation34_spill] sm:$0xff] }
  0x8f   : > { %v1103_v10 = vsel %vm775_vm5, %v1101_v53, %v1102_v21  ;;  %v1106_v13 = vsel %vm775_vm5, %v1104_v55, %v1105_v19  ;;  %v1113_v14 = vrot.slane %v1077_v8, 3  ;;  %v1114_v15 = vrot.slane %v1078_v25, 3 }
  0x90   : > { %v1109_v35 = vsel %vm775_vm5, %v1107_v30, %v1108_v9  ;;  %v1112_v36 = vsel %vm775_vm5, %v1110_v31, %v1111_v5  ;;  %v1116_v2 = vrot.slane %v1079_v50, 3  ;;  %v1117_v12 = vrot.slane %v1080_v26, 3 }
  0x91   : > { %v1115_v18 = vsel %vm775_vm5, %v1113_v14, %v1114_v15  ;;  %v1119_v56 = vrot.slane %v1081_v27, 3  ;;  %v1120_v22 = vrot.slane %v1082_v20, 3  ;;  %v1122_v23 = vrot.slane %v1083_v1, 3 }
  0x92   : > { %v1118_v41 = vsel %vm775_vm5, %v1116_v2, %v1117_v12  ;;  %v1123_v46 = vrot.slane %v1084_v54, 3  ;;  %v1133_v16 = vadd.f32 %v1103_v10, %v1057_v62  ;;  %v1134_v33 = vadd.f32 %v1106_v13, %v1058_v45 }
  0x93   : > { %v1121_v34 = vsel %vm775_vm5, %v1119_v56, %v1120_v22  ;;  %v1135_v49 = vadd.f32 %v1109_v35, %v1059_v47  ;;  %v1136_v11 = vadd.f32 %v1112_v36, %v1060_v63  ;;  %v1137_v40 = vadd.f32 %v1115_v18, %v1061_v6 }
  0x94   : > { %v1124_v43 = vsel %vm775_vm5, %v1122_v23, %v1123_v46  ;;  %v1138_v44 = vadd.f32 %v1118_v41, %v1062_v17  ;;  %v1139_v28 = vadd.f32 %v1121_v34, %v1063_v32  ;;  %v1145_v8 = vmul.f32 %v7954_v0, %v5544_v37 }
  0x95   : > { %v1140_v25 = vadd.f32 %v1124_v43, %v1064_v38  ;;  %v1146_v50 = vmul.f32 %v7954_v0, %v5558_v42  ;;  %v1147_v62 = vmul.f32 %v7954_v0, %v5594_v59  ;;  %v1148_v45 = vmul.f32 %v7954_v0, %v5596_v60  ;;  %v5967_v43 = vld [vmem:[#allocation2 + $0x90] sm:$0xff] }
  0x96   : > { %v1149_v47 = vmul.f32 %v7954_v0, %v5598_v61  ;;  %v1150_v63 = vmul.f32 %v7954_v0, %v5607_v3  ;;  %v1151_v6 = vmul.f32 %v7954_v0, %v5609_v4  ;;  %v1152_v37 = vmul.f32 %v7954_v0, %v5611_v7 }
  0x97   : > { %v1153_v42 = vmul.f32 %v7954_v0, %v5621_v48  ;;  %v1154_v17 = vmul.f32 %v7954_v0, %v5623_v51  ;;  %v1155_v32 = vmul.f32 %v7954_v0, %v5625_v52  ;;  %v1156_v38 = vmul.f32 %v7954_v0, %v5635_v57 }
  0x98   : > { %v1157_v26 = vmul.f32 %v7954_v0, %v5637_v58  ;;  %v1158_v27 = vmul.f32 %v7954_v0, %v5639_v24  ;;  %v1159_v20 = vmul.f32 %v7954_v0, %v5787_v29  ;;  %v1160_v1 = vmul.f32 %v7954_v0, %v5807_v39 }
  0x99   : > { %v1177_v54 = vrot.slane %v1145_v8, 4  ;;  %v1178_v53 = vrot.slane %v1146_v50, 4  ;;  %v1180_v21 = vrot.slane %v1147_v62, 4  ;;  %v1181_v55 = vrot.slane %v1148_v45, 4 }
  0x9a   : > { %v1183_v19 = vrot.slane %v1149_v47, 4  ;;  %v1184_v30 = vrot.slane %v1150_v63, 4  ;;  %v1186_v9 = vrot.slane %v1151_v6, 4  ;;  %v1187_v31 = vrot.slane %v1152_v37, 4  ;;  %v7955_v6 = vld [vmem:[#allocation35_spill] sm:$0xff] }
  0x9b   : > { %v1179_v5 = vsel %vm852_vm6, %v1177_v54, %v1178_v53  ;;  %v1182_v10 = vsel %vm852_vm6, %v1180_v21, %v1181_v55  ;;  %v1189_v13 = vrot.slane %v1153_v42, 4  ;;  %v1190_v14 = vrot.slane %v1154_v17, 4  ;;  %v5987_v54 = vld [vmem:[#allocation2 + $0x98] sm:$0xf]  ;;  %v7956_v53 = vld [vmem:[#allocation36_spill] sm:$0xff] }
  0x9c   : > { %v1185_v15 = vsel %vm852_vm6, %v1183_v19, %v1184_v30  ;;  %v1188_v35 = vsel %vm852_vm6, %v1186_v9, %v1187_v31  ;;  %v1192_v36 = vrot.slane %v1155_v32, 4  ;;  %v1193_v2 = vrot.slane %v1156_v38, 4 }
  0x9d   : > { %v1191_v12 = vsel %vm852_vm6, %v1189_v13, %v1190_v14  ;;  %v1195_v18 = vrot.slane %v1157_v26, 4  ;;  %v1196_v56 = vrot.slane %v1158_v27, 4  ;;  %v1198_v22 = vrot.slane %v1159_v20, 4 }
  0x9e   : > { %v1194_v23 = vsel %vm852_vm6, %v1192_v36, %v1193_v2  ;;  %v1199_v41 = vrot.slane %v1160_v1, 4  ;;  %v1209_v46 = vadd.f32 %v1179_v5, %v1133_v16  ;;  %v1210_v34 = vadd.f32 %v1182_v10, %v1134_v33 }
  0x9f   : > { %v1197_v0 = vsel %vm852_vm6, %v1195_v18, %v1196_v56  ;;  %v1211_v8 = vadd.f32 %v1185_v15, %v1135_v49  ;;  %v1212_v50 = vadd.f32 %v1188_v35, %v1136_v11  ;;  %v1213_v62 = vadd.f32 %v1191_v12, %v1137_v40 }
  0xa0   : > { %v1200_v45 = vsel %vm852_vm6, %v1198_v22, %v1199_v41  ;;  %v1214_v47 = vadd.f32 %v1194_v23, %v1138_v44  ;;  %v1215_v63 = vadd.f32 %v1197_v0, %v1139_v28  ;;  %v1221_v37 = vmul.f32 %v7955_v6, %v5594_v59 }
  0xa1   : > { %v1216_v42 = vadd.f32 %v1200_v45, %v1140_v25  ;;  %v1222_v17 = vmul.f32 %v7955_v6, %v5598_v61  ;;  %v1223_v16 = vmul.f32 %v7955_v6, %v5609_v4  ;;  %v1224_v33 = vmul.f32 %v7955_v6, %v5621_v48 }
  0xa2   : > { %v1225_v49 = vmul.f32 %v7955_v6, %v5625_v52  ;;  %v1226_v11 = vmul.f32 %v7955_v6, %v5637_v58  ;;  %v1227_v40 = vmul.f32 %v7955_v6, %v5787_v29  ;;  %v1228_v44 = vmul.f32 %v7955_v6, %v5967_v43 }
  0xa3   : > { %v1229_v28 = vadd.f32 %v1221_v37, %v1209_v46  ;;  %v1230_v25 = vadd.f32 %v1222_v17, %v1210_v34  ;;  %v1231_v32 = vadd.f32 %v1223_v16, %v1211_v8  ;;  %v1232_v38 = vadd.f32 %v1224_v33, %v1212_v50 }
  0xa4   : > { %v1233_v26 = vadd.f32 %v1225_v49, %v1213_v62  ;;  %v1234_v27 = vadd.f32 %v1226_v11, %v1214_v47  ;;  %v1235_v20 = vadd.f32 %v1227_v40, %v1215_v63  ;;  %v1236_v1 = vadd.f32 %v1228_v44, %v1216_v42 }
  0xa5   : > { %v1241_v21 = vmul.f32 %v7956_v53, %v5594_v59  ;;  %v1242_v55 = vmul.f32 %v7956_v53, %v5596_v60  ;;  %v1243_v19 = vmul.f32 %v7956_v53, %v5598_v61  ;;  %v1244_v30 = vmul.f32 %v7956_v53, %v5607_v3 }
  0xa6   : > { %v1245_v9 = vmul.f32 %v7956_v53, %v5609_v4  ;;  %v1246_v31 = vmul.f32 %v7956_v53, %v5611_v7  ;;  %v1247_v5 = vmul.f32 %v7956_v53, %v5621_v48  ;;  %v1248_v10 = vmul.f32 %v7956_v53, %v5623_v51 }
  0xa7   : > { %v1249_v13 = vmul.f32 %v7956_v53, %v5625_v52  ;;  %v1250_v14 = vmul.f32 %v7956_v53, %v5635_v57  ;;  %v1251_v15 = vmul.f32 %v7956_v53, %v5637_v58  ;;  %v1252_v35 = vmul.f32 %v7956_v53, %v5639_v24 }
  0xa8   : > { %v1253_v36 = vmul.f32 %v7956_v53, %v5787_v29  ;;  %v1254_v2 = vmul.f32 %v7956_v53, %v5807_v39  ;;  %v1255_v12 = vmul.f32 %v7956_v53, %v5967_v43  ;;  %v1256_v18 = vmul.f32 %v7956_v53, %v5987_v54 }
  0xa9   : > { %v1273_v56 = vrot.slane %v1241_v21, 1  ;;  %v1274_v22 = vrot.slane %v1242_v55, 1  ;;  %v1276_v23 = vrot.slane %v1243_v19, 1  ;;  %v1277_v41 = vrot.slane %v1244_v30, 1 }
  0xaa   : > { %v1279_v46 = vrot.slane %v1245_v9, 1  ;;  %v1280_v34 = vrot.slane %v1246_v31, 1  ;;  %v1282_v0 = vrot.slane %v1247_v5, 1  ;;  %v1283_v8 = vrot.slane %v1248_v10, 1  ;;  %v7957_v10 = vld [vmem:[#allocation37_spill] sm:$0xff] }
  0xab   : > { %v1275_v50 = vsel %vm621_vm3, %v1273_v56, %v1274_v22  ;;  %v1278_v62 = vsel %vm621_vm3, %v1276_v23, %v1277_v41  ;;  %v1285_v45 = vrot.slane %v1249_v13, 1  ;;  %v1286_v47 = vrot.slane %v1250_v14, 1 }
  0xac   : > { %v1281_v63 = vsel %vm621_vm3, %v1279_v46, %v1280_v34  ;;  %v1284_v6 = vsel %vm621_vm3, %v1282_v0, %v1283_v8  ;;  %v1288_v37 = vrot.slane %v1251_v15, 1  ;;  %v1289_v42 = vrot.slane %v1252_v35, 1 }
  0xad   : > { %v1287_v17 = vsel %vm621_vm3, %v1285_v45, %v1286_v47  ;;  %v1291_v16 = vrot.slane %v1253_v36, 1  ;;  %v1292_v33 = vrot.slane %v1254_v2, 1  ;;  %v1294_v49 = vrot.slane %v1255_v12, 1 }
  0xae   : > { %v1290_v11 = vsel %vm621_vm3, %v1288_v37, %v1289_v42  ;;  %v1295_v40 = vrot.slane %v1256_v18, 1  ;;  %v1305_v44 = vadd.f32 %v1275_v50, %v1229_v28  ;;  %v1306_v53 = vadd.f32 %v1278_v62, %v1230_v25 }
  0xaf   : > { %v1293_v21 = vsel %vm621_vm3, %v1291_v16, %v1292_v33  ;;  %v1307_v55 = vadd.f32 %v1281_v63, %v1231_v32  ;;  %v1308_v19 = vadd.f32 %v1284_v6, %v1232_v38  ;;  %v1309_v30 = vadd.f32 %v1287_v17, %v1233_v26 }
  0xb0   : > { %v1296_v9 = vsel %vm621_vm3, %v1294_v49, %v1295_v40  ;;  %v1310_v31 = vadd.f32 %v1290_v11, %v1234_v27  ;;  %v1311_v5 = vadd.f32 %v1293_v21, %v1235_v20  ;;  %v1317_v13 = vmul.f32 %v7957_v10, %v5594_v59  ;;  %v6069_v11 = vld [vmem:[#allocation2 + $0x20] sm:$0xff] }
  0xb1   : > { %v1312_v14 = vadd.f32 %v1296_v9, %v1236_v1  ;;  %v1318_v15 = vmul.f32 %v7957_v10, %v5596_v60  ;;  %v1319_v28 = vmul.f32 %v7957_v10, %v5598_v61  ;;  %v1320_v25 = vmul.f32 %v7957_v10, %v5607_v3  ;;  %v7958_v40 = vld [vmem:[#allocation38_spill] sm:$0xff] }
  0xb2   : > { %v1321_v32 = vmul.f32 %v7957_v10, %v5609_v4  ;;  %v1322_v38 = vmul.f32 %v7957_v10, %v5611_v7  ;;  %v1323_v26 = vmul.f32 %v7957_v10, %v5621_v48  ;;  %v1324_v59 = vmul.f32 %v7957_v10, %v5623_v51 }
  0xb3   : > { %v1325_v60 = vmul.f32 %v7957_v10, %v5625_v52  ;;  %v1326_v61 = vmul.f32 %v7957_v10, %v5635_v57  ;;  %v1327_v3 = vmul.f32 %v7957_v10, %v5637_v58  ;;  %v1328_v4 = vmul.f32 %v7957_v10, %v5639_v24 }
  0xb4   : > { %v1329_v7 = vmul.f32 %v7957_v10, %v5787_v29  ;;  %v1330_v48 = vmul.f32 %v7957_v10, %v5807_v39  ;;  %v1331_v51 = vmul.f32 %v7957_v10, %v5967_v43  ;;  %v1332_v52 = vmul.f32 %v7957_v10, %v5987_v54  ;;  %v6073_v10 = vld [vmem:[#allocation2 + $0x28] sm:$0xf] }
  0xb5   : > { %v1349_v27 = vrot.slane %v1317_v13, 2  ;;  %v1350_v57 = vrot.slane %v1318_v15, 2  ;;  %v1352_v20 = vrot.slane %v1319_v28, 2  ;;  %v1353_v1 = vrot.slane %v1320_v25, 2  ;;  %v6089_v13 = vld [vmem:[#allocation2 + $0x48] sm:$0xf] }
  0xb6   : > { %v1355_v58 = vrot.slane %v1321_v32, 2  ;;  %v1356_v35 = vrot.slane %v1322_v38, 2  ;;  %v1358_v36 = vrot.slane %v1323_v26, 2  ;;  %v1359_v24 = vrot.slane %v1324_v59, 2  ;;  %v6093_v15 = vld [vmem:[#allocation2 + $0x50] sm:$0xff]  ;;  %v6101_v38 = vld [vmem:[#allocation2 + $0x60] sm:$0xff] }
  0xb7   : > { %v1351_v2 = vsel %vm698_vm4, %v1349_v27, %v1350_v57  ;;  %v1354_v12 = vsel %vm698_vm4, %v1352_v20, %v1353_v1  ;;  %v1361_v18 = vrot.slane %v1325_v60, 2  ;;  %v1362_v56 = vrot.slane %v1326_v61, 2  ;;  %v6097_v25 = vld [vmem:[#allocation2 + $0x58] sm:$0xf]  ;;  %v6105_v59 = vld [vmem:[#allocation2 + $0x68] sm:$0xf] }
  0xb8   : > { %v1357_v22 = vsel %vm698_vm4, %v1355_v58, %v1356_v35  ;;  %v1360_v23 = vsel %vm698_vm4, %v1358_v36, %v1359_v24  ;;  %v1364_v41 = vrot.slane %v1327_v3, 2  ;;  %v1365_v46 = vrot.slane %v1328_v4, 2  ;;  %v6109_v61 = vld [vmem:[#allocation2 + $0x70] sm:$0xff]  ;;  %v6113_v4 = vld [vmem:[#allocation2 + $0x78] sm:$0xf] }
  0xb9   : > { %v1363_v34 = vsel %vm698_vm4, %v1361_v18, %v1362_v56  ;;  %v1367_v0 = vrot.slane %v1329_v7, 2  ;;  %v1368_v8 = vrot.slane %v1330_v48, 2  ;;  %v1370_v50 = vrot.slane %v1331_v51, 2 }
  0xba   : > { %v1366_v62 = vsel %vm698_vm4, %v1364_v41, %v1365_v46  ;;  %v1371_v45 = vrot.slane %v1332_v52, 2  ;;  %v1381_v47 = vadd.f32 %v1351_v2, %v1305_v44  ;;  %v1382_v63 = vadd.f32 %v1354_v12, %v1306_v53  ;;  %v6077_v53 = vld [vmem:[#allocation2 + $0x30] sm:$0xff] }
  0xbb   : > { %v1369_v6 = vsel %vm698_vm4, %v1367_v0, %v1368_v8  ;;  %v1383_v37 = vadd.f32 %v1357_v22, %v1307_v55  ;;  %v1384_v42 = vadd.f32 %v1360_v23, %v1308_v19  ;;  %v1385_v17 = vadd.f32 %v1363_v34, %v1309_v30  ;;  %v6081_v19 = vld [vmem:[#allocation2 + $0x38] sm:$0xf] }
  0xbc   : > { %v1372_v16 = vsel %vm698_vm4, %v1370_v50, %v1371_v45  ;;  %v1386_v33 = vadd.f32 %v1366_v62, %v1310_v31  ;;  %v1387_v49 = vadd.f32 %v1369_v6, %v1311_v5  ;;  %v1393_v21 = vmul.f32 %v6069_v11, %v7958_v40  ;;  %v6085_v31 = vld [vmem:[#allocation2 + $0x40] sm:$0xff]  ;;  %v6133_v45 = vld [vmem:[%s7921_s1 + $0x10] sm:$0xff] }
  0xbd   : > { %v1388_v9 = vadd.f32 %v1372_v16, %v1312_v14  ;;  %v1394_v44 = vmul.f32 %v6073_v10, %v7958_v40  ;;  %v1395_v55 = vmul.f32 %v6077_v53, %v7958_v40  ;;  %v1396_v30 = vmul.f32 %v6081_v19, %v7958_v40 }
  0xbe   : > { %v1397_v5 = vmul.f32 %v6085_v31, %v7958_v40  ;;  %v1398_v14 = vmul.f32 %v6089_v13, %v7958_v40  ;;  %v1399_v28 = vmul.f32 %v6093_v15, %v7958_v40  ;;  %v1400_v32 = vmul.f32 %v6097_v25, %v7958_v40 }
  0xbf   : > { %v1401_v26 = vmul.f32 %v6101_v38, %v7958_v40  ;;  %v1402_v60 = vmul.f32 %v6105_v59, %v7958_v40  ;;  %v1403_v3 = vmul.f32 %v6109_v61, %v7958_v40  ;;  %v1404_v7 = vmul.f32 %v6113_v4, %v7958_v40 }
  0xc0   : > { %v1405_v48 = vmul.f32 %v7958_v40, %v5787_v29  ;;  %v1406_v51 = vmul.f32 %v7958_v40, %v5807_v39  ;;  %v1407_v52 = vmul.f32 %v7958_v40, %v5967_v43  ;;  %v1408_v27 = vmul.f32 %v7958_v40, %v5987_v54 }
  0xc1   : > { %v1425_v57 = vrot.slane %v1393_v21, 3  ;;  %v1426_v20 = vrot.slane %v1394_v44, 3  ;;  %v1428_v1 = vrot.slane %v1395_v55, 3  ;;  %v1429_v58 = vrot.slane %v1396_v30, 3 }
  0xc2   : > { %v1431_v35 = vrot.slane %v1397_v5, 3  ;;  %v1432_v36 = vrot.slane %v1398_v14, 3  ;;  %v1434_v24 = vrot.slane %v1399_v28, 3  ;;  %v1435_v2 = vrot.slane %v1400_v32, 3 }
  0xc3   : > { %v1427_v12 = vsel %vm775_vm5, %v1425_v57, %v1426_v20  ;;  %v1430_v18 = vsel %vm775_vm5, %v1428_v1, %v1429_v58  ;;  %v1437_v56 = vrot.slane %v1401_v26, 3  ;;  %v1438_v22 = vrot.slane %v1402_v60, 3  ;;  %v5165_v26 = vld [vmem:[%s7921_s1 + $0x8] sm:$0xff]  ;;  %v7959_v60 = vld [vmem:[#allocation21_spill] sm:$0xff] }
  0xc4   : > { %v1433_v23 = vsel %vm775_vm5, %v1431_v35, %v1432_v36  ;;  %v1436_v41 = vsel %vm775_vm5, %v1434_v24, %v1435_v2  ;;  %v1440_v46 = vrot.slane %v1403_v3, 3  ;;  %v1441_v34 = vrot.slane %v1404_v7, 3 }
  0xc5   : > { %v1439_v0 = vsel %vm775_vm5, %v1437_v56, %v1438_v22  ;;  %v1443_v8 = vrot.slane %v1405_v48, 3  ;;  %v1444_v50 = vrot.slane %v1406_v51, 3  ;;  %v1446_v62 = vrot.slane %v1407_v52, 3  ;;  %v7960_v48 = vld [vmem:[#allocation22_spill] sm:$0xff] }
  0xc6   : > { %v1442_v6 = vsel %vm775_vm5, %v1440_v46, %v1441_v34  ;;  %v1447_v16 = vrot.slane %v1408_v27, 3  ;;  %v1457_v40 = vadd.f32 %v1427_v12, %v1381_v47  ;;  %v1458_v21 = vadd.f32 %v1430_v18, %v1382_v63  ;;  %v7961_v47 = vld [vmem:[#allocation15_spill] sm:$0xff] }
  0xc7   : > { %v1445_v44 = vsel %vm775_vm5, %v1443_v8, %v1444_v50  ;;  %v1459_v55 = vadd.f32 %v1433_v23, %v1383_v37  ;;  %v1460_v30 = vadd.f32 %v1436_v41, %v1384_v42  ;;  %v1461_v5 = vadd.f32 %v1439_v0, %v1385_v17  ;;  %v7962_v37 = vld [vmem:[#allocation16_spill] sm:$0xff] }
  0xc8   : > { %v1448_v14 = vsel %vm775_vm5, %v1446_v62, %v1447_v16  ;;  %v1462_v28 = vadd.f32 %v1442_v6, %v1386_v33  ;;  %v1463_v32 = vadd.f32 %v1445_v44, %v1387_v49  ;;  %v1468_v3 = vrot.slane %v5165_v26, %v7959_v60 }
  0xc9   : > { %v1464_v7 = vadd.f32 %v1448_v14, %v1388_v9  ;;  %v1544_v51 = vrot.slane %v5165_v26, %v7960_v48  ;;  %v6145_v63 = vrot.slane %v6133_v45, %v7961_v47  ;;  %v6149_v42 = vrot.slane %v6133_v45, %v7962_v37 }
  0xca   : > { %v1469_v17 = vmul.f32 %v6069_v11, %v1468_v3  ;;  %v1470_v33 = vmul.f32 %v6073_v10, %v1468_v3  ;;  %v1471_v49 = vmul.f32 %v6077_v53, %v1468_v3  ;;  %v1472_v52 = vmul.f32 %v6081_v19, %v1468_v3 }
  0xcb   : > { %v1473_v9 = vmul.f32 %v6085_v31, %v1468_v3  ;;  %v1474_v27 = vmul.f32 %v6089_v13, %v1468_v3  ;;  %v1475_v57 = vmul.f32 %v6093_v15, %v1468_v3  ;;  %v1476_v20 = vmul.f32 %v6097_v25, %v1468_v3 }
  0xcc   : > { %v1477_v1 = vmul.f32 %v6101_v38, %v1468_v3  ;;  %v1478_v58 = vmul.f32 %v6105_v59, %v1468_v3  ;;  %v1479_v11 = vmul.f32 %v6109_v61, %v1468_v3  ;;  %v1480_v10 = vmul.f32 %v6113_v4, %v1468_v3 }
  0xcd   : > { %v1481_v35 = vmul.f32 %v1468_v3, %v5787_v29  ;;  %v1482_v36 = vmul.f32 %v1468_v3, %v5807_v39  ;;  %v1483_v24 = vmul.f32 %v1468_v3, %v5967_v43  ;;  %v1484_v2 = vmul.f32 %v1468_v3, %v5987_v54 }
  0xce   : > { %v1501_v12 = vrot.slane %v1469_v17, 4  ;;  %v1502_v18 = vrot.slane %v1470_v33, 4  ;;  %v1504_v56 = vrot.slane %v1471_v49, 4  ;;  %v1505_v22 = vrot.slane %v1472_v52, 4 }
  0xcf   : > { %v1507_v23 = vrot.slane %v1473_v9, 4  ;;  %v1508_v41 = vrot.slane %v1474_v27, 4  ;;  %v1510_v46 = vrot.slane %v1475_v57, 4  ;;  %v1511_v34 = vrot.slane %v1476_v20, 4  ;;  %v6173_v57 = vld [vmem:[#allocation2 + $0xa0] sm:$0xff] }
  0xd0   : > { %v1503_v0 = vsel %vm852_vm6, %v1501_v12, %v1502_v18  ;;  %v1506_v8 = vsel %vm852_vm6, %v1504_v56, %v1505_v22  ;;  %v1513_v50 = vrot.slane %v1477_v1, 4  ;;  %v1514_v62 = vrot.slane %v1478_v58, 4 }
  0xd1   : > { %v1509_v6 = vsel %vm852_vm6, %v1507_v23, %v1508_v41  ;;  %v1512_v16 = vsel %vm852_vm6, %v1510_v46, %v1511_v34  ;;  %v1516_v44 = vrot.slane %v1479_v11, 4  ;;  %v1517_v14 = vrot.slane %v1480_v10, 4  ;;  %v6185_v34 = vld [vmem:[#allocation2 + $0xa8] sm:$0xf] }
  0xd2   : > { %v1515_v26 = vsel %vm852_vm6, %v1513_v50, %v1514_v62  ;;  %v1519_v3 = vrot.slane %v1481_v35, 4  ;;  %v1520_v17 = vrot.slane %v1482_v36, 4  ;;  %v1522_v33 = vrot.slane %v1483_v24, 4 }
  0xd3   : > { %v1518_v49 = vsel %vm852_vm6, %v1516_v44, %v1517_v14  ;;  %v1523_v52 = vrot.slane %v1484_v2, 4  ;;  %v1533_v9 = vadd.f32 %v1503_v0, %v1457_v40  ;;  %v1534_v27 = vadd.f32 %v1506_v8, %v1458_v21 }
  0xd4   : > { %v1521_v20 = vsel %vm852_vm6, %v1519_v3, %v1520_v17  ;;  %v1535_v1 = vadd.f32 %v1509_v6, %v1459_v55  ;;  %v1536_v58 = vadd.f32 %v1512_v16, %v1460_v30  ;;  %v1537_v12 = vadd.f32 %v1515_v26, %v1461_v5 }
  0xd5   : > { %v1524_v11 = vsel %vm852_vm6, %v1522_v33, %v1523_v52  ;;  %v1538_v10 = vadd.f32 %v1518_v49, %v1462_v28  ;;  %v1539_v18 = vadd.f32 %v1521_v20, %v1463_v32  ;;  %v1545_v35 = vmul.f32 %v6077_v53, %v1544_v51 }
  0xd6   : > { %v1540_v36 = vadd.f32 %v1524_v11, %v1464_v7  ;;  %v1546_v24 = vmul.f32 %v6085_v31, %v1544_v51  ;;  %v1547_v2 = vmul.f32 %v6093_v15, %v1544_v51  ;;  %v1548_v40 = vmul.f32 %v6101_v38, %v1544_v51 }
  0xd7   : > { %v1549_v21 = vmul.f32 %v6109_v61, %v1544_v51  ;;  %v1550_v56 = vmul.f32 %v1544_v51, %v5787_v29  ;;  %v1551_v55 = vmul.f32 %v1544_v51, %v5967_v43  ;;  %v1552_v30 = vmul.f32 %v1544_v51, %v6173_v57 }
  0xd8   : > { %v1553_v5 = vadd.f32 %v1545_v35, %v1533_v9  ;;  %v1554_v28 = vadd.f32 %v1546_v24, %v1534_v27  ;;  %v1555_v32 = vadd.f32 %v1547_v2, %v1535_v1  ;;  %v1556_v22 = vadd.f32 %v1548_v40, %v1536_v58 }
  0xd9   : > { %v1557_v23 = vadd.f32 %v1549_v21, %v1537_v12  ;;  %v1558_v7 = vadd.f32 %v1550_v56, %v1538_v10  ;;  %v1559_v41 = vadd.f32 %v1551_v55, %v1539_v18  ;;  %v1560_v46 = vadd.f32 %v1552_v30, %v1540_v36 }
  0xda   : > { %v1565_v0 = vmul.f32 %v6077_v53, %v6145_v63  ;;  %v1566_v8 = vmul.f32 %v6081_v19, %v6145_v63  ;;  %v1567_v50 = vmul.f32 %v6085_v31, %v6145_v63  ;;  %v1568_v51 = vmul.f32 %v6089_v13, %v6145_v63 }
  0xdb   : > { %v1569_v62 = vmul.f32 %v6093_v15, %v6145_v63  ;;  %v1570_v6 = vmul.f32 %v6097_v25, %v6145_v63  ;;  %v1571_v16 = vmul.f32 %v6101_v38, %v6145_v63  ;;  %v1572_v44 = vmul.f32 %v6105_v59, %v6145_v63 }
  0xdc   : > { %v1573_v14 = vmul.f32 %v6109_v61, %v6145_v63  ;;  %v1574_v26 = vmul.f32 %v6113_v4, %v6145_v63  ;;  %v1575_v3 = vmul.f32 %v6145_v63, %v5787_v29  ;;  %v1576_v17 = vmul.f32 %v6145_v63, %v5807_v39 }
  0xdd   : > { %v1577_v33 = vmul.f32 %v6145_v63, %v5967_v43  ;;  %v1578_v49 = vmul.f32 %v6145_v63, %v5987_v54  ;;  %v1579_v52 = vmul.f32 %v6145_v63, %v6173_v57  ;;  %v1580_v9 = vmul.f32 %v6145_v63, %v6185_v34 }
  0xde   : > { %v1597_v27 = vrot.slane %v1565_v0, 1  ;;  %v1598_v20 = vrot.slane %v1566_v8, 1  ;;  %v1600_v1 = vrot.slane %v1567_v50, 1  ;;  %v1601_v58 = vrot.slane %v1568_v51, 1 }
  0xdf   : > { %v1603_v12 = vrot.slane %v1569_v62, 1  ;;  %v1604_v11 = vrot.slane %v1570_v6, 1  ;;  %v1606_v10 = vrot.slane %v1571_v16, 1  ;;  %v1607_v18 = vrot.slane %v1572_v44, 1 }
  0xe0   : > { %v1599_v35 = vsel %vm621_vm3, %v1597_v27, %v1598_v20  ;;  %v1602_v36 = vsel %vm621_vm3, %v1600_v1, %v1601_v58  ;;  %v1609_v24 = vrot.slane %v1573_v14, 1  ;;  %v1610_v2 = vrot.slane %v1574_v26, 1 }
  0xe1   : > { %v1605_v40 = vsel %vm621_vm3, %v1603_v12, %v1604_v11  ;;  %v1608_v21 = vsel %vm621_vm3, %v1606_v10, %v1607_v18  ;;  %v1612_v56 = vrot.slane %v1575_v3, 1  ;;  %v1613_v63 = vrot.slane %v1576_v17, 1 }
  0xe2   : > { %v1611_v55 = vsel %vm621_vm3, %v1609_v24, %v1610_v2  ;;  %v1615_v30 = vrot.slane %v1577_v33, 1  ;;  %v1616_v0 = vrot.slane %v1578_v49, 1  ;;  %v1618_v8 = vrot.slane %v1579_v52, 1 }
  0xe3   : > { %v1614_v50 = vsel %vm621_vm3, %v1612_v56, %v1613_v63  ;;  %v1619_v51 = vrot.slane %v1580_v9, 1  ;;  %v1629_v62 = vadd.f32 %v1599_v35, %v1553_v5  ;;  %v1630_v6 = vadd.f32 %v1602_v36, %v1554_v28 }
  0xe4   : > { %v1617_v16 = vsel %vm621_vm3, %v1615_v30, %v1616_v0  ;;  %v1631_v44 = vadd.f32 %v1605_v40, %v1555_v32  ;;  %v1632_v14 = vadd.f32 %v1608_v21, %v1556_v22  ;;  %v1633_v26 = vadd.f32 %v1611_v55, %v1557_v23 }
  0xe5   : > { %v1620_v27 = vsel %vm621_vm3, %v1618_v8, %v1619_v51  ;;  %v1634_v20 = vadd.f32 %v1614_v50, %v1558_v7  ;;  %v1635_v3 = vadd.f32 %v1617_v16, %v1559_v41  ;;  %v1641_v17 = vmul.f32 %v6077_v53, %v6149_v42 }
  0xe6   : > { %v1636_v33 = vadd.f32 %v1620_v27, %v1560_v46  ;;  %v1642_v49 = vmul.f32 %v6081_v19, %v6149_v42  ;;  %v1643_v5 = vmul.f32 %v6085_v31, %v6149_v42  ;;  %v1644_v28 = vmul.f32 %v6089_v13, %v6149_v42 }
  0xe7   : > { %v1645_v32 = vmul.f32 %v6093_v15, %v6149_v42  ;;  %v1646_v22 = vmul.f32 %v6097_v25, %v6149_v42  ;;  %v1647_v23 = vmul.f32 %v6101_v38, %v6149_v42  ;;  %v1648_v7 = vmul.f32 %v6105_v59, %v6149_v42 }
  0xe8   : > { %v1649_v41 = vmul.f32 %v6109_v61, %v6149_v42  ;;  %v1650_v46 = vmul.f32 %v6113_v4, %v6149_v42  ;;  %v1651_v52 = vmul.f32 %v6149_v42, %v5787_v29  ;;  %v1652_v9 = vmul.f32 %v6149_v42, %v5807_v39 }
  0xe9   : > { %v1653_v1 = vmul.f32 %v6149_v42, %v5967_v43  ;;  %v1654_v58 = vmul.f32 %v6149_v42, %v5987_v54  ;;  %v1655_v12 = vmul.f32 %v6149_v42, %v6173_v57  ;;  %v1656_v11 = vmul.f32 %v6149_v42, %v6185_v34 }
  0xea   : > { %v1673_v10 = vrot.slane %v1641_v17, 2  ;;  %v1674_v18 = vrot.slane %v1642_v49, 2  ;;  %v1676_v35 = vrot.slane %v1643_v5, 2  ;;  %v1677_v36 = vrot.slane %v1644_v28, 2 }
  0xeb   : > { %v1679_v29 = vrot.slane %v1645_v32, 2  ;;  %v1680_v24 = vrot.slane %v1646_v22, 2  ;;  %v1682_v2 = vrot.slane %v1647_v23, 2  ;;  %v1683_v39 = vrot.slane %v1648_v7, 2 }
  0xec   : > { %v1675_v40 = vsel %vm698_vm4, %v1673_v10, %v1674_v18  ;;  %v1678_v21 = vsel %vm698_vm4, %v1676_v35, %v1677_v36  ;;  %v1685_v56 = vrot.slane %v1649_v41, 2  ;;  %v1686_v63 = vrot.slane %v1650_v46, 2 }
  0xed   : > { %v1681_v55 = vsel %vm698_vm4, %v1679_v29, %v1680_v24  ;;  %v1684_v30 = vsel %vm698_vm4, %v1682_v2, %v1683_v39  ;;  %v1688_v0 = vrot.slane %v1651_v52, 2  ;;  %v1689_v42 = vrot.slane %v1652_v9, 2  ;;  %v7963_v52 = vld [vmem:[#allocation17_spill] sm:$0xff]  ;;  %v6291_v24 = vld [vmem:[#allocation2 + $0x80] sm:$0xff]  ;;  %v6294_v39 = vld [vmem:[#allocation2 + $0x88] sm:$0xf] }
  0xee   : > { %v1687_v8 = vsel %vm698_vm4, %v1685_v56, %v1686_v63  ;;  %v1691_v50 = vrot.slane %v1653_v1, 2  ;;  %v1692_v51 = vrot.slane %v1654_v58, 2  ;;  %v1694_v16 = vrot.slane %v1655_v12, 2  ;;  %v7964_v58 = vld [vmem:[#allocation18_spill] sm:$0xff] }
  0xef   : > { %v1690_v27 = vsel %vm698_vm4, %v1688_v0, %v1689_v42  ;;  %v1695_v17 = vrot.slane %v1656_v11, 2  ;;  %v1705_v49 = vadd.f32 %v1675_v40, %v1629_v62  ;;  %v1706_v5 = vadd.f32 %v1678_v21, %v1630_v6  ;;  %v7965_v11 = vld [vmem:[#allocation19_spill] sm:$0xff]  ;;  %v7966_v6 = vld [vmem:[#allocation20_spill] sm:$0xff] }
  0xf0   : > { %v1693_v28 = vsel %vm698_vm4, %v1691_v50, %v1692_v51  ;;  %v1707_v32 = vadd.f32 %v1681_v55, %v1631_v44  ;;  %v1708_v22 = vadd.f32 %v1684_v30, %v1632_v14  ;;  %v1709_v23 = vadd.f32 %v1687_v8, %v1633_v26 }
  0xf1   : > { %v1696_v7 = vsel %vm698_vm4, %v1694_v16, %v1695_v17  ;;  %v1710_v41 = vadd.f32 %v1690_v27, %v1634_v20  ;;  %v1711_v46 = vadd.f32 %v1693_v28, %v1635_v3  ;;  %v1716_v9 = vrot.slane %v6133_v45, %v7963_v52 }
  0xf2   : > { %v1712_v1 = vadd.f32 %v1696_v7, %v1636_v33  ;;  %v6271_v12 = vrot.slane %v6133_v45, %v7964_v58  ;;  %v6275_v62 = vrot.slane %v6133_v45, %v7965_v11  ;;  %v6279_v44 = vrot.slane %v6133_v45, %v7966_v6 }
  0xf3   : > { %v1717_v14 = vmul.f32 %v6077_v53, %v1716_v9  ;;  %v1718_v26 = vmul.f32 %v6081_v19, %v1716_v9  ;;  %v1719_v20 = vmul.f32 %v6085_v31, %v1716_v9  ;;  %v1720_v3 = vmul.f32 %v6089_v13, %v1716_v9 }
  0xf4   : > { %v1721_v33 = vmul.f32 %v6093_v15, %v1716_v9  ;;  %v1722_v10 = vmul.f32 %v6097_v25, %v1716_v9  ;;  %v1723_v18 = vmul.f32 %v6101_v38, %v1716_v9  ;;  %v1724_v35 = vmul.f32 %v6105_v59, %v1716_v9 }
  0xf5   : > { %v1725_v36 = vmul.f32 %v6109_v61, %v1716_v9  ;;  %v1726_v29 = vmul.f32 %v6113_v4, %v1716_v9  ;;  %v1727_v2 = vmul.f32 %v6291_v24, %v1716_v9  ;;  %v1728_v40 = vmul.f32 %v6294_v39, %v1716_v9 }
  0xf6   : > { %v1729_v21 = vmul.f32 %v1716_v9, %v5967_v43  ;;  %v1730_v56 = vmul.f32 %v1716_v9, %v5987_v54  ;;  %v1731_v63 = vmul.f32 %v1716_v9, %v6173_v57  ;;  %v1732_v55 = vmul.f32 %v1716_v9, %v6185_v34 }
  0xf7   : > { %v1749_v30 = vrot.slane %v1717_v14, 3  ;;  %v1750_v0 = vrot.slane %v1718_v26, 3  ;;  %v1752_v42 = vrot.slane %v1719_v20, 3  ;;  %v1753_v8 = vrot.slane %v1720_v3, 3 }
  0xf8   : > { %v1755_v50 = vrot.slane %v1721_v33, 3  ;;  %v1756_v51 = vrot.slane %v1722_v10, 3  ;;  %v1758_v16 = vrot.slane %v1723_v18, 3  ;;  %v1759_v27 = vrot.slane %v1724_v35, 3 }
  0xf9   : > { %v1751_v17 = vsel %vm775_vm5, %v1749_v30, %v1750_v0  ;;  %v1754_v28 = vsel %vm775_vm5, %v1752_v42, %v1753_v8  ;;  %v1761_v7 = vrot.slane %v1725_v36, 3  ;;  %v1762_v11 = vrot.slane %v1726_v29, 3 }
  0xfa   : > { %v1757_v6 = vsel %vm775_vm5, %v1755_v50, %v1756_v51  ;;  %v1760_v52 = vsel %vm775_vm5, %v1758_v16, %v1759_v27  ;;  %v1764_v58 = vrot.slane %v1727_v2, 3  ;;  %v1765_v9 = vrot.slane %v1728_v40, 3 }
  0xfb   : > { %v1763_v14 = vsel %vm775_vm5, %v1761_v7, %v1762_v11  ;;  %v1767_v26 = vrot.slane %v1729_v21, 3  ;;  %v1768_v20 = vrot.slane %v1730_v56, 3  ;;  %v1770_v3 = vrot.slane %v1731_v63, 3 }
  0xfc   : > { %v1766_v33 = vsel %vm775_vm5, %v1764_v58, %v1765_v9  ;;  %v1771_v10 = vrot.slane %v1732_v55, 3  ;;  %v1781_v18 = vadd.f32 %v1751_v17, %v1705_v49  ;;  %v1782_v35 = vadd.f32 %v1754_v28, %v1706_v5 }
  0xfd   : > { %v1769_v30 = vsel %vm775_vm5, %v1767_v26, %v1768_v20  ;;  %v1783_v36 = vadd.f32 %v1757_v6, %v1707_v32  ;;  %v1784_v29 = vadd.f32 %v1760_v52, %v1708_v22  ;;  %v1785_v0 = vadd.f32 %v1763_v14, %v1709_v23 }
  0xfe   : > { %v1772_v42 = vsel %vm775_vm5, %v1770_v3, %v1771_v10  ;;  %v1786_v8 = vadd.f32 %v1766_v33, %v1710_v41  ;;  %v1787_v2 = vadd.f32 %v1769_v30, %v1711_v46  ;;  %v1793_v11 = vmul.f32 %v6077_v53, %v6271_v12 }
  0xff   : > { %v1788_v40 = vadd.f32 %v1772_v42, %v1712_v1  ;;  %v1794_v21 = vmul.f32 %v6081_v19, %v6271_v12  ;;  %v1795_v49 = vmul.f32 %v6085_v31, %v6271_v12  ;;  %v1796_v5 = vmul.f32 %v6089_v13, %v6271_v12 }
 0x100   : > { %v1797_v32 = vmul.f32 %v6093_v15, %v6271_v12  ;;  %v1798_v22 = vmul.f32 %v6097_v25, %v6271_v12  ;;  %v1799_v23 = vmul.f32 %v6101_v38, %v6271_v12  ;;  %v1800_v53 = vmul.f32 %v6105_v59, %v6271_v12 }
 0x101   : > { %v1801_v19 = vmul.f32 %v6109_v61, %v6271_v12  ;;  %v1802_v41 = vmul.f32 %v6113_v4, %v6271_v12  ;;  %v1803_v46 = vmul.f32 %v6291_v24, %v6271_v12  ;;  %v1804_v52 = vmul.f32 %v6294_v39, %v6271_v12 }
 0x102   : > { %v1805_v1 = vmul.f32 %v6271_v12, %v5967_v43  ;;  %v1806_v58 = vmul.f32 %v6271_v12, %v5987_v54  ;;  %v1807_v6 = vmul.f32 %v6271_v12, %v6173_v57  ;;  %v1808_v56 = vmul.f32 %v6271_v12, %v6185_v34 }
 0x103   : > { %v1825_v63 = vrot.slane %v1793_v11, 4  ;;  %v1826_v55 = vrot.slane %v1794_v21, 4  ;;  %v1828_v50 = vrot.slane %v1795_v49, 4  ;;  %v1829_v51 = vrot.slane %v1796_v5, 4 }
 0x104   : > { %v1831_v16 = vrot.slane %v1797_v32, 4  ;;  %v1832_v27 = vrot.slane %v1798_v22, 4  ;;  %v1834_v17 = vrot.slane %v1799_v23, 4  ;;  %v1835_v28 = vrot.slane %v1800_v53, 4  ;;  %v6347_v22 = vld [vmem:[#allocation2 + $0xb0] sm:$0xff] }
 0x105   : > { %v1827_v7 = vsel %vm852_vm6, %v1825_v63, %v1826_v55  ;;  %v1830_v9 = vsel %vm852_vm6, %v1828_v50, %v1829_v51  ;;  %v1837_v14 = vrot.slane %v1801_v19, 4  ;;  %v1838_v26 = vrot.slane %v1802_v41, 4 }
 0x106   : > { %v1833_v20 = vsel %vm852_vm6, %v1831_v16, %v1832_v27  ;;  %v1836_v3 = vsel %vm852_vm6, %v1834_v17, %v1835_v28  ;;  %v1840_v33 = vrot.slane %v1803_v46, 4  ;;  %v1841_v12 = vrot.slane %v1804_v52, 4  ;;  %v6367_v17 = vld [vmem:[#allocation2 + $0xb8] sm:$0xf] }
 0x107   : > { %v1839_v10 = vsel %vm852_vm6, %v1837_v14, %v1838_v26  ;;  %v1843_v30 = vrot.slane %v1805_v1, 4  ;;  %v1844_v42 = vrot.slane %v1806_v58, 4  ;;  %v1846_v11 = vrot.slane %v1807_v6, 4 }
 0x108   : > { %v1842_v21 = vsel %vm852_vm6, %v1840_v33, %v1841_v12  ;;  %v1847_v49 = vrot.slane %v1808_v56, 4  ;;  %v1857_v5 = vadd.f32 %v1827_v7, %v1781_v18  ;;  %v1858_v32 = vadd.f32 %v1830_v9, %v1782_v35 }
 0x109   : > { %v1845_v23 = vsel %vm852_vm6, %v1843_v30, %v1844_v42  ;;  %v1859_v53 = vadd.f32 %v1833_v20, %v1783_v36  ;;  %v1860_v19 = vadd.f32 %v1836_v3, %v1784_v29  ;;  %v1861_v41 = vadd.f32 %v1839_v10, %v1785_v0 }
 0x10a   : > { %v1848_v46 = vsel %vm852_vm6, %v1846_v11, %v1847_v49  ;;  %v1862_v52 = vadd.f32 %v1842_v21, %v1786_v8  ;;  %v1863_v63 = vadd.f32 %v1845_v23, %v1787_v2  ;;  %v1869_v1 = vmul.f32 %v6085_v31, %v6275_v62 }
 0x10b   : > { %v1864_v58 = vadd.f32 %v1848_v46, %v1788_v40  ;;  %v1870_v6 = vmul.f32 %v6093_v15, %v6275_v62  ;;  %v1871_v18 = vmul.f32 %v6101_v38, %v6275_v62  ;;  %v1872_v35 = vmul.f32 %v6109_v61, %v6275_v62 }
 0x10c   : > { %v1873_v36 = vmul.f32 %v6291_v24, %v6275_v62  ;;  %v1874_v29 = vmul.f32 %v6275_v62, %v5967_v43  ;;  %v1875_v0 = vmul.f32 %v6275_v62, %v6173_v57  ;;  %v1876_v8 = vmul.f32 %v6275_v62, %v6347_v22 }
 0x10d   : > { %v1877_v2 = vadd.f32 %v1869_v1, %v1857_v5  ;;  %v1878_v40 = vadd.f32 %v1870_v6, %v1858_v32  ;;  %v1879_v56 = vadd.f32 %v1871_v18, %v1859_v53  ;;  %v1880_v55 = vadd.f32 %v1872_v35, %v1860_v19 }
 0x10e   : > { %v1881_v50 = vadd.f32 %v1873_v36, %v1861_v41  ;;  %v1882_v51 = vadd.f32 %v1874_v29, %v1862_v52  ;;  %v1883_v16 = vadd.f32 %v1875_v0, %v1863_v63  ;;  %v1884_v27 = vadd.f32 %v1876_v8, %v1864_v58 }
 0x10f   : > { %v1889_v28 = vmul.f32 %v6085_v31, %v6279_v44  ;;  %v1890_v7 = vmul.f32 %v6089_v13, %v6279_v44  ;;  %v1891_v9 = vmul.f32 %v6093_v15, %v6279_v44  ;;  %v1892_v62 = vmul.f32 %v6097_v25, %v6279_v44 }
 0x110   : > { %v1893_v14 = vmul.f32 %v6101_v38, %v6279_v44  ;;  %v1894_v26 = vmul.f32 %v6105_v59, %v6279_v44  ;;  %v1895_v20 = vmul.f32 %v6109_v61, %v6279_v44  ;;  %v1896_v3 = vmul.f32 %v6113_v4, %v6279_v44 }
 0x111   : > { %v1897_v33 = vmul.f32 %v6291_v24, %v6279_v44  ;;  %v1898_v12 = vmul.f32 %v6294_v39, %v6279_v44  ;;  %v1899_v10 = vmul.f32 %v6279_v44, %v5967_v43  ;;  %v1900_v30 = vmul.f32 %v6279_v44, %v5987_v54 }
 0x112   : > { %v1901_v42 = vmul.f32 %v6279_v44, %v6173_v57  ;;  %v1902_v11 = vmul.f32 %v6279_v44, %v6185_v34  ;;  %v1903_v21 = vmul.f32 %v6279_v44, %v6347_v22  ;;  %v1904_v49 = vmul.f32 %v6279_v44, %v6367_v17 }
 0x113   : > { %v1921_v5 = vrot.slane %v1889_v28, 1  ;;  %v1922_v32 = vrot.slane %v1890_v7, 1  ;;  %v1924_v23 = vrot.slane %v1891_v9, 1  ;;  %v1925_v53 = vrot.slane %v1892_v62, 1  ;;  %v6409_v28 = vld [vmem:[%s7921_s1 + $0x18] ss:$0 sm:$0xff] }
 0x114   : > { %v1927_v43 = vrot.slane %v1893_v14, 1  ;;  %v1928_v19 = vrot.slane %v1894_v26, 1  ;;  %v1930_v41 = vrot.slane %v1895_v20, 1  ;;  %v1931_v46 = vrot.slane %v1896_v3, 1 }
 0x115   : > { %v1923_v52 = vsel %vm621_vm3, %v1921_v5, %v1922_v32  ;;  %v1926_v63 = vsel %vm621_vm3, %v1924_v23, %v1925_v53  ;;  %v1933_v1 = vrot.slane %v1897_v33, 1  ;;  %v1934_v58 = vrot.slane %v1898_v12, 1  ;;  %v6438_v23 = vld [vmem:[#allocation2 + $0x90] sm:$0xff] }
 0x116   : > { %v1929_v6 = vsel %vm621_vm3, %v1927_v43, %v1928_v19  ;;  %v1932_v18 = vsel %vm621_vm3, %v1930_v41, %v1931_v46  ;;  %v1936_v35 = vrot.slane %v1899_v10, 1  ;;  %v1937_v44 = vrot.slane %v1900_v30, 1 }
 0x117   : > { %v1935_v36 = vsel %vm621_vm3, %v1933_v1, %v1934_v58  ;;  %v1939_v29 = vrot.slane %v1901_v42, 1  ;;  %v1940_v0 = vrot.slane %v1902_v11, 1  ;;  %v1942_v8 = vrot.slane %v1903_v21, 1 }
 0x118   : > { %v1938_v7 = vsel %vm621_vm3, %v1936_v35, %v1937_v44  ;;  %v1943_v9 = vrot.slane %v1904_v49, 1  ;;  %v1953_v62 = vadd.f32 %v1923_v52, %v1877_v2  ;;  %v1954_v14 = vadd.f32 %v1926_v63, %v1878_v40 }
 0x119   : > { %v1941_v26 = vsel %vm621_vm3, %v1939_v29, %v1940_v0  ;;  %v1955_v20 = vadd.f32 %v1929_v6, %v1879_v56  ;;  %v1956_v3 = vadd.f32 %v1932_v18, %v1880_v55  ;;  %v1957_v33 = vadd.f32 %v1935_v36, %v1881_v50 }
 0x11a   : > { %v1944_v12 = vsel %vm621_vm3, %v1942_v8, %v1943_v9  ;;  %v1958_v10 = vadd.f32 %v1938_v7, %v1882_v51  ;;  %v1959_v30 = vadd.f32 %v1941_v26, %v1883_v16  ;;  %v1964_v42 = vrot.slane %v6133_v45, %v7959_v60 }
 0x11b   : > { %v1960_v11 = vadd.f32 %v1944_v12, %v1884_v27  ;;  %v6418_v21 = vrot.slane %v6133_v45, %v7960_v48  ;;  %v6422_v2 = vmul.f32 %v6085_v31, %v6409_v28  ;;  %v6426_v40 = vmul.f32 %v6089_v13, %v6409_v28 }
 0x11c   : > { %v1965_v56 = vmul.f32 %v6085_v31, %v1964_v42  ;;  %v1966_v55 = vmul.f32 %v6089_v13, %v1964_v42  ;;  %v1967_v50 = vmul.f32 %v6093_v15, %v1964_v42  ;;  %v1968_v51 = vmul.f32 %v6097_v25, %v1964_v42 }
 0x11d   : > { %v1969_v16 = vmul.f32 %v6101_v38, %v1964_v42  ;;  %v1970_v45 = vmul.f32 %v6105_v59, %v1964_v42  ;;  %v1971_v27 = vmul.f32 %v6109_v61, %v1964_v42  ;;  %v1972_v49 = vmul.f32 %v6113_v4, %v1964_v42 }
 0x11e   : > { %v1973_v5 = vmul.f32 %v6291_v24, %v1964_v42  ;;  %v1974_v32 = vmul.f32 %v6294_v39, %v1964_v42  ;;  %v1975_v53 = vmul.f32 %v6438_v23, %v1964_v42  ;;  %v1976_v43 = vmul.f32 %v1964_v42, %v5987_v54 }
 0x11f   : > { %v1977_v19 = vmul.f32 %v1964_v42, %v6173_v57  ;;  %v1978_v41 = vmul.f32 %v1964_v42, %v6185_v34  ;;  %v1979_v46 = vmul.f32 %v1964_v42, %v6347_v22  ;;  %v1980_v52 = vmul.f32 %v1964_v42, %v6367_v17 }
 0x120   : > { %v1997_v63 = vrot.slane %v1965_v56, 2  ;;  %v1998_v1 = vrot.slane %v1966_v55, 2  ;;  %v2000_v58 = vrot.slane %v1967_v50, 2  ;;  %v2001_v6 = vrot.slane %v1968_v51, 2 }
 0x121   : > { %v2003_v18 = vrot.slane %v1969_v16, 2  ;;  %v2004_v35 = vrot.slane %v1970_v45, 2  ;;  %v2006_v44 = vrot.slane %v1971_v27, 2  ;;  %v2007_v36 = vrot.slane %v1972_v49, 2 }
 0x122   : > { %v1999_v29 = vsel %vm698_vm4, %v1997_v63, %v1998_v1  ;;  %v2002_v54 = vsel %vm698_vm4, %v2000_v58, %v2001_v6  ;;  %v2009_v0 = vrot.slane %v1973_v5, 2  ;;  %v2010_v8 = vrot.slane %v1974_v32, 2 }
 0x123   : > { %v2005_v7 = vsel %vm698_vm4, %v2003_v18, %v2004_v35  ;;  %v2008_v9 = vsel %vm698_vm4, %v2006_v44, %v2007_v36  ;;  %v2012_v26 = vrot.slane %v1975_v53, 2  ;;  %v2013_v12 = vrot.slane %v1976_v43, 2 }
 0x124   : > { %v2011_v42 = vsel %vm698_vm4, %v2009_v0, %v2010_v8  ;;  %v2015_v56 = vrot.slane %v1977_v19, 2  ;;  %v2016_v55 = vrot.slane %v1978_v41, 2  ;;  %v2018_v50 = vrot.slane %v1979_v46, 2 }
 0x125   : > { %v2014_v51 = vsel %vm698_vm4, %v2012_v26, %v2013_v12  ;;  %v2019_v16 = vrot.slane %v1980_v52, 2  ;;  %v2029_v45 = vadd.f32 %v1999_v29, %v1953_v62  ;;  %v2030_v27 = vadd.f32 %v2002_v54, %v1954_v14 }
 0x126   : > { %v2017_v49 = vsel %vm698_vm4, %v2015_v56, %v2016_v55  ;;  %v2031_v5 = vadd.f32 %v2005_v7, %v1955_v20  ;;  %v2032_v32 = vadd.f32 %v2008_v9, %v1956_v3  ;;  %v2033_v63 = vadd.f32 %v2011_v42, %v1957_v33 }
 0x127   : > { %v2020_v1 = vsel %vm698_vm4, %v2018_v50, %v2019_v16  ;;  %v2034_v58 = vadd.f32 %v2014_v51, %v1958_v10  ;;  %v2035_v53 = vadd.f32 %v2017_v49, %v1959_v30  ;;  %v2041_v43 = vmul.f32 %v6085_v31, %v6418_v21 }
 0x128   : > { %v2036_v19 = vadd.f32 %v2020_v1, %v1960_v11  ;;  %v2042_v41 = vmul.f32 %v6089_v13, %v6418_v21  ;;  %v2043_v62 = vmul.f32 %v6093_v15, %v6418_v21  ;;  %v2044_v14 = vmul.f32 %v6097_v25, %v6418_v21  ;;  %v5169_v11 = vld [vmem:[#allocation2 + $0x98] sm:$0xf] }
 0x129   : > { %v2045_v20 = vmul.f32 %v6101_v38, %v6418_v21  ;;  %v2046_v3 = vmul.f32 %v6105_v59, %v6418_v21  ;;  %v2047_v33 = vmul.f32 %v6109_v61, %v6418_v21  ;;  %v2048_v31 = vmul.f32 %v6113_v4, %v6418_v21 }
 0x12a   : > { %v2049_v13 = vmul.f32 %v6291_v24, %v6418_v21  ;;  %v2050_v10 = vmul.f32 %v6294_v39, %v6418_v21  ;;  %v2051_v30 = vmul.f32 %v6438_v23, %v6418_v21  ;;  %v2052_v46 = vmul.f32 %v5169_v11, %v6418_v21 }
 0x12b   : > { %v2053_v52 = vmul.f32 %v6418_v21, %v6173_v57  ;;  %v2054_v6 = vmul.f32 %v6418_v21, %v6185_v34  ;;  %v2055_v18 = vmul.f32 %v6418_v21, %v6347_v22  ;;  %v2056_v35 = vmul.f32 %v6418_v21, %v6367_v17 }
 0x12c   : > { %v2073_v44 = vrot.slane %v2041_v43, 3  ;;  %v2074_v36 = vrot.slane %v2042_v41, 3  ;;  %v2076_v29 = vrot.slane %v2043_v62, 3  ;;  %v2077_v54 = vrot.slane %v2044_v14, 3 }
 0x12d   : > { %v2079_v0 = vrot.slane %v2045_v20, 3  ;;  %v2080_v8 = vrot.slane %v2046_v3, 3  ;;  %v2082_v7 = vrot.slane %v2047_v33, 3  ;;  %v2083_v9 = vrot.slane %v2048_v31, 3 }
 0x12e   : > { %v2075_v26 = vsel %vm775_vm5, %v2073_v44, %v2074_v36  ;;  %v2078_v12 = vsel %vm775_vm5, %v2076_v29, %v2077_v54  ;;  %v2085_v42 = vrot.slane %v2049_v13, 3  ;;  %v2086_v56 = vrot.slane %v2050_v10, 3 }
 0x12f   : > { %v2081_v55 = vsel %vm775_vm5, %v2079_v0, %v2080_v8  ;;  %v2084_v50 = vsel %vm775_vm5, %v2082_v7, %v2083_v9  ;;  %v2088_v51 = vrot.slane %v2051_v30, 3  ;;  %v2089_v21 = vrot.slane %v2052_v46, 3 }
 0x130   : > { %v2087_v16 = vsel %vm775_vm5, %v2085_v42, %v2086_v56  ;;  %v2091_v49 = vrot.slane %v2053_v52, 3  ;;  %v2092_v1 = vrot.slane %v2054_v6, 3  ;;  %v2094_v43 = vrot.slane %v2055_v18, 3 }
 0x131   : > { %v2090_v41 = vsel %vm775_vm5, %v2088_v51, %v2089_v21  ;;  %v2095_v62 = vrot.slane %v2056_v35, 3  ;;  %v2105_v14 = vadd.f32 %v2075_v26, %v2029_v45  ;;  %v2106_v20 = vadd.f32 %v2078_v12, %v2030_v27  ;;  %v4759_v26 = vld [vmem:[%s7967_s2] ss:$0 sm:$0xff] }
 0x132   : > { %v2093_v3 = vsel %vm775_vm5, %v2091_v49, %v2092_v1  ;;  %v2107_v33 = vadd.f32 %v2081_v55, %v2031_v5  ;;  %v2108_v31 = vadd.f32 %v2084_v50, %v2032_v32  ;;  %v2109_v13 = vadd.f32 %v2087_v16, %v2033_v63  ;;  %v4760_v49 = vld [vmem:[%s7968_s3] ss:$0 sm:$0xff] }
 0x133   : > { %v2096_v10 = vsel %vm775_vm5, %v2094_v43, %v2095_v62  ;;  %v2110_v44 = vadd.f32 %v2090_v41, %v2034_v58  ;;  %v2111_v30 = vadd.f32 %v2093_v3, %v2035_v53  ;;  %v2119_v46 = vmul.f32 %v6093_v15, %v6409_v28 }
 0x134   : > { %v2112_v52 = vadd.f32 %v2096_v10, %v2036_v19  ;;  %v2120_v6 = vmul.f32 %v6097_v25, %v6409_v28  ;;  %v2121_v45 = vmul.f32 %v6101_v38, %v6409_v28  ;;  %v2122_v27 = vmul.f32 %v6105_v59, %v6409_v28 }
 0x135   : > { %v2123_v5 = vmul.f32 %v6109_v61, %v6409_v28  ;;  %v2124_v32 = vmul.f32 %v6113_v4, %v6409_v28  ;;  %v2125_v63 = vmul.f32 %v6291_v24, %v6409_v28  ;;  %v2126_v15 = vmul.f32 %v6294_v39, %v6409_v28 }
 0x136   : > { %v2127_v25 = vmul.f32 %v6438_v23, %v6409_v28  ;;  %v2128_v38 = vmul.f32 %v5169_v11, %v6409_v28  ;;  %v2129_v59 = vmul.f32 %v6409_v28, %v6173_v57  ;;  %v2130_v61 = vmul.f32 %v6409_v28, %v6185_v34 }
 0x137   : > { %v2131_v4 = vmul.f32 %v6409_v28, %v6347_v22  ;;  %v2132_v24 = vmul.f32 %v6409_v28, %v6367_v17  ;;  %v2149_v58 = vrot.slane %v6422_v2, 4  ;;  %v2150_v39 = vrot.slane %v6426_v40, 4 }
 0x138   : > { %v2152_v53 = vrot.slane %v2119_v46, 4  ;;  %v2153_v23 = vrot.slane %v2120_v6, 4  ;;  %v2155_v19 = vrot.slane %v2121_v45, 4  ;;  %v2156_v11 = vrot.slane %v2122_v27, 4 }
 0x139   : > { %v2151_v18 = vsel %vm852_vm6, %v2149_v58, %v2150_v39  ;;  %v2158_v57 = vrot.slane %v2123_v5, 4  ;;  %v2159_v35 = vrot.slane %v2124_v32, 4  ;;  %v2161_v36 = vrot.slane %v2125_v63, 4 }
 0x13a   : > { %v2154_v34 = vsel %vm852_vm6, %v2152_v53, %v2153_v23  ;;  %v2157_v22 = vsel %vm852_vm6, %v2155_v19, %v2156_v11  ;;  %v2162_v29 = vrot.slane %v2126_v15, 4  ;;  %v2164_v54 = vrot.slane %v2127_v25, 4 }
 0x13b   : > { %v2160_v17 = vsel %vm852_vm6, %v2158_v57, %v2159_v35  ;;  %v2165_v28 = vrot.slane %v2128_v38, 4  ;;  %v2167_v2 = vrot.slane %v2129_v59, 4  ;;  %v2168_v40 = vrot.slane %v2130_v61, 4 }
 0x13c   : > { %v2163_v0 = vsel %vm852_vm6, %v2161_v36, %v2162_v29  ;;  %v2170_v8 = vrot.slane %v2131_v4, 4  ;;  %v2171_v7 = vrot.slane %v2132_v24, 4  ;;  %v2181_v9 = vadd.f32 %v2151_v18, %v2105_v14 }
 0x13d   : > { %v2166_v12 = vsel %vm852_vm6, %v2164_v54, %v2165_v28  ;;  %v2169_v42 = vsel %vm852_vm6, %v2167_v2, %v2168_v40  ;;  %v2182_v56 = vadd.f32 %v2154_v34, %v2106_v20  ;;  %v2183_v55 = vadd.f32 %v2157_v22, %v2107_v33 }
 0x13e   : > { %v2172_v50 = vsel %vm852_vm6, %v2170_v8, %v2171_v7  ;;  %v2184_v51 = vadd.f32 %v2160_v17, %v2108_v31  ;;  %v2185_v21 = vadd.f32 %v2163_v0, %v2109_v13  ;;  %v2186_v16 = vadd.f32 %v2166_v12, %v2110_v44 }
 0x13f   : > { %v2187_v1 = vadd.f32 %v2169_v42, %v2111_v30  ;;  %v2188_v43 = vadd.f32 %v2172_v50, %v2112_v52  ;;  %v2196_v41 = vmul.f32 %v4759_v26, %v2181_v9  ;;  %v2197_v62 = vmul.f32 %v4759_v26, %v2182_v56 }
 0x140   : > { %v2198_v14 = vmul.f32 %v4759_v26, %v2183_v55  ;;  %v2199_v3 = vmul.f32 %v4759_v26, %v2184_v51  ;;  %v2200_v10 = vmul.f32 %v4759_v26, %v2185_v21  ;;  %v2201_v46 = vmul.f32 %v4759_v26, %v2186_v16 }
 0x141   : > { %v2202_v6 = vmul.f32 %v4759_v26, %v2187_v1  ;;  %v2203_v20 = vmul.f32 %v4759_v26, %v2188_v43  ;;  %v6536_v33 = vadd.f32 %v4760_v49, %v2196_v41  ;;  %v6538_v45 = vadd.f32 %v4760_v49, %v2197_v62  ;;  %v2341_v41 = vld [vmem:[%s7969_s5] sm:$0xf] }
 0x142   : > { %v6540_v31 = vadd.f32 %v4760_v49, %v2198_v14  ;;  %v6542_v13 = vadd.f32 %v4760_v49, %v2199_v3  ;;  %v6544_v44 = vadd.f32 %v4760_v49, %v2200_v10  ;;  %v6556_v15 = vadd.f32 %v4760_v49, %v2201_v46  ;;  %4817 = vmatpush3.msk.msra.mxu1 %vm852_vm6, %v2341_v41  ;;  %v6592_v62 = vld [vmem:[%s7970_s6] sm:$0xff] }
 0x143   : > { %v6546_v30 = vadd.f32 %v4760_v49, %v2202_v6  ;;  %v6548_v52 = vadd.f32 %v4760_v49, %v2203_v20  ;;  %v2219_v27 = vsel %vm502_vm1, %v6536_v33, 0.0  ;;  %v2220_v5 = vsel %vm502_vm1, %v6538_v45, 0.0  ;;  %2630 = vrot.lane.b32.xlu0 %v6592_v62, %s7884_s4  ;;  %4858 = vpush %v6592_v62  ;;  %v6608_v20 = vld [vmem:[%s7970_s6 + $0x8] sm:$0xff] }
 0x144   : > { %v2221_v32 = vadd.f32 %v2220_v5, %v2219_v27  ;;  %v2222_v63 = vsel %vm502_vm1, %v6540_v31, 0.0  ;;  %v2224_v25 = vsel %vm502_vm1, %v6542_v13, 0.0  ;;  %v2226_v38 = vsel %vm502_vm1, %v6544_v44, 0.0 }
 0x145   : > { %v2242_v59 = vsel %vm502_vm1, %v6536_v33, -inf  ;;  %v2243_v4 = vsel %vm502_vm1, %v6538_v45, -inf  ;;  %v2244_v24 = vsel %vm502_vm1, %v6540_v31, -inf  ;;  %v2245_v58 = vsel %vm502_vm1, %v6542_v13, -inf }
 0x146   : > { %v2223_v61 = vadd.f32 %v2222_v63, %v2221_v32  ;;  %v2246_v39 = vsel %vm502_vm1, %v6544_v44, -inf  ;;  %v2248_v53 = vsel %vm502_vm1, %v6556_v15, -inf  ;;  %v2250_v23 = vsel %vm502_vm1, %v6546_v30, -inf }
 0x147   : > { %v2252_v19 = vsel %vm502_vm1, %v6548_v52, -inf  ;;  %v2247_v18 = vmax.f32 %v2242_v59, %v2246_v39  ;;  %v2249_v57 = vmax.f32 %v2243_v4, %v2248_v53  ;;  %v2251_v35 = vmax.f32 %v2244_v24, %v2250_v23  ;;  %v6635_v53 = vld [vmem:[%s7970_s6 + $0x10] sm:$0xff] }
 0x148   : > { %v2225_v11 = vadd.f32 %v2224_v25, %v2223_v61  ;;  %v2228_v36 = vsel %vm502_vm1, %v6556_v15, 0.0  ;;  %v2253_v34 = vmax.f32 %v2245_v58, %v2252_v19  ;;  %v2230_v54 = vsel %vm502_vm1, %v6546_v30, 0.0 }
 0x149   : > { %v2254_v29 = vmax.f32 %v2247_v18, %v2249_v57  ;;  %v2232_v2 = vsel %vm502_vm1, %v6548_v52, 0.0  ;;  %v2637_v14 = vrot.slane %v6592_v62, 1  ;;  %v2658_v3 = vrot.slane %v6592_v62, 2 }
 0x14a   : > { %v2227_v22 = vadd.f32 %v2226_v38, %v2225_v11  ;;  %v2255_v17 = vmax.f32 %v2251_v35, %v2253_v34  ;;  %v2679_v10 = vrot.slane %v6592_v62, 3  ;;  %v2700_v46 = vrot.slane %v6592_v62, 4 }
 0x14b   : > { %2668 = vrot.lane.b32.xlu1 %v2658_v3, %s7884_s4  ;;  %2647 = vrot.lane.b32.xlu0 %v2637_v14, %s7884_s4  ;;  %v2763_v6 = vrot.slane %v6592_v62, 7  ;;  %v2721_v27 = vrot.slane %v6592_v62, 5  ;;  %v2821_v5 = vrot.slane %v6608_v20, 1  ;;  %v2742_v32 = vrot.slane %v6592_v62, 6 }
 0x14c   : > { %v2229_v28 = vadd.f32 %v2228_v36, %v2227_v22  ;;  %v2256_v40 = vmax.f32 %v2254_v29, %v2255_v17  ;;  %v2852_v63 = vrot.slane %v6608_v20, 2  ;;  %v2914_v25 = vrot.slane %v6608_v20, 4 }
 0x14d   : > { %v2883_v38 = vrot.slane %v6608_v20, 3  ;;  %v2945_v59 = vrot.slane %v6608_v20, 5  ;;  %v2976_v61 = vrot.slane %v6608_v20, 6  ;;  %v3003_v4 = vrot.slane %v6608_v20, 7 }
 0x14e   : > { %v2231_v0 = vadd.f32 %v2230_v54, %v2229_v28  ;;  %v2257_v8 = vrot.slane %v2256_v40, 4  ;;  %v3065_v23 = vrot.slane %v6635_v53, 1 }
 0x14f   : > { %2689 = vrot.lane.b32.xlu1 %v2679_v10, %s7884_s4  ;;  %2710 = vrot.lane.b32.xlu0 %v2700_v46, %s7884_s4 }
 0x150   : > { %v2233_v7 = vadd.f32 %v2232_v2, %v2231_v0  ;;  %v2258_v9 = vmax.f32 %v2256_v40, %v2257_v8 }
 0x152   : > { %v2234_v26 = vrot.slane %v2233_v7, 4  ;;  %v2259_v12 = vrot.slane %v2258_v9, 2 }
 0x153   : > { %2776 = vrot.lane.b32.xlu1 %v2763_v6, %s7884_s4  ;;  %2731 = vrot.lane.b32.xlu0 %v2721_v27, %s7884_s4 }
 0x154   : > { %v2235_v42 = vadd.f32 %v2234_v26, %v2233_v7  ;;  %v2260_v56 = vmax.f32 %v2258_v9, %v2259_v12  ;;  %v3096_v9 = vrot.slane %v6635_v53, 2 }
 0x156   : > { %v2236_v55 = vrot.slane %v2235_v42, 2  ;;  %v2261_v51 = vrot.slane %v2260_v56, 1 }
 0x157   : > { %2836 = vrot.lane.b32.xlu1 %v2821_v5, %s7884_s4  ;;  %2752 = vrot.lane.b32.xlu0 %v2742_v32, %s7884_s4 }
 0x158   : > { %v2237_v50 = vadd.f32 %v2236_v55, %v2235_v42  ;;  %v2262_v49 = vmax.f32 %v2260_v56, %v2261_v51 }
 0x15a   : > { %v2238_v21 = vrot.slane %v2237_v50, 1 }
 0x15b   : > { %2867 = vrot.lane.b32.xlu1 %v2852_v63, %s7884_s4  ;;  %2805 = vrot.lane.b32.xlu0 %v6608_v20, %s7884_s4 }
 0x15c   : > { %v2239_v16 = vadd.f32 %v2238_v21, %v2237_v50 }
 0x15e   : > { %v2241_v1 = vmul.f32 0.015625, %v2239_v16 }
 0x15f   : > { %2929 = vrot.lane.b32.xlu1 %v2914_v25, %s7884_s4  ;;  %2898 = vrot.lane.b32.xlu0 %v2883_v38, %s7884_s4 }
 0x160   : > { %v2264_v43 = vsel %vm2263_vm7, %v2241_v1, %v2262_v49  ;;  %vm2535_vm7 = vcmask 1047559  }
 0x161   : > { %4814 = vmatmul.mubr.msk.f32.vlgmr.msra.gmra.mrb[0].mxu0 %vm502_vm1, %v2264_v43 }
 0x163   : > { %2960 = vrot.lane.b32.xlu1 %v2945_v59, %s7884_s4 }
 0x167   : > { %2989 = vrot.lane.b32.xlu1 %v2976_v61, %s7884_s4 }
 0x16b   : > { %3018 = vrot.lane.b32.xlu1 %v3003_v4, %s7884_s4 }
 0x16f   : > { %3049 = vrot.lane.b32.xlu1 %v6635_v53, %s7884_s4 }
 0x173   : > { %3080 = vrot.lane.b32.xlu1 %v3065_v23, %s7884_s4 }
 0x174   : > { %s6812_s17 = spop %4858 }
 0x1b5   : > { %v2631_v19 = vpop.permute.xlu0 %2630 }
 0x1b6   : > { %4860 = vpush %v2631_v19 }
 0x1b7   : > { %4862 = vpush %v2637_v14 }
 0x1bd   : > { %v2648_v11 = vpop.permute.xlu0 %2647  ;;  %v2669_v18 = vpop.permute.xlu1 %2668 }
 0x1be   : > { %4864 = vpush %v2648_v11  ;;  %v7971_v11 = vmov 0.0  }
 0x1bf   : > { %4866 = vpush %v2658_v3 }
 0x1c0   : > { %4868 = vpush %v2669_v18 }
 0x1c1   : > { %v2711_v57 = vpop.permute.xlu0 %2710  ;;  %4870 = vpush %v2679_v10  ;;  %v2690_v35 = vpop.permute.xlu1 %2689 }
 0x1c2   : > { %4872 = vpush %v2690_v35  ;;  %v3127_v35 = vrot.slane %v6635_v53, 3 }
 0x1c3   : > { %4874 = vpush %v2700_v46 }
 0x1c4   : > { %4876 = vpush %v2711_v57 }
 0x1c5   : > { %v2732_v36 = vpop.permute.xlu0 %2731  ;;  %v2777_v34 = vpop.permute.xlu1 %2776  ;;  %4878 = vpush %v2721_v27 }
 0x1c6   : > { %4880 = vpush %v2732_v36 }
 0x1c7   : > { %4882 = vpush %v2742_v32 }
 0x1c8   : > { %2442 = vst.msk [vmem:[#allocation3] sm:$0xff] %vm2441_vm10, %v7971_v11  ;;  %2445 = vst.msk [vmem:[#allocation4] sm:$0xff] %vm2441_vm10, %v7971_v11 }
 0x1c9   : > { %v2753_v22 = vpop.permute.xlu0 %2752  ;;  %v2837_v29 = vpop.permute.xlu1 %2836  ;;  %2444 = vst.msk [vmem:[#allocation3 + $0x8] sm:$0x3f] %vm2443_vm11, %v7971_v11  ;;  %2446 = vst.msk [vmem:[#allocation4 + $0x8] sm:$0x3f] %vm2443_vm11, %v7971_v11  ;;  %vm4433_vm11 = vcmask 523264  }
 0x1ca   : > { %4884 = vpush %v2753_v22  ;;  %v3189_v22 = vrot.slane %v6635_v53, 5 }
 0x1cb   : > { %4886 = vpush %v2763_v6 }
 0x1cc   : > { %4888 = vpush %v2777_v34  ;;  %v6737_v34 = vld [vmem:[%s7970_s6 + $0x20] sm:$0xff] }
 0x1cd   : > { %v2806_v54 = vpop.permute.xlu0 %2805  ;;  %4890 = vpush %v6608_v20  ;;  %v2868_v17 = vpop.permute.xlu1 %2867 }
 0x1ce   : > { %4892 = vpush %v2806_v54  ;;  %v3247_v54 = vrot.slane %v6635_v53, 7 }
 0x1cf   : > { %4894 = vpush %v2821_v5 }
 0x1d0   : > { %4896 = vpush %v2837_v29  ;;  %v3553_v29 = vrot.slane %v6737_v34, 1 }
 0x1d1   : > { %4898 = vpush %v2852_v63  ;;  %v2899_v28 = vpop.permute.xlu0 %2898  ;;  %v2930_v2 = vpop.permute.xlu1 %2929 }
 0x1d2   : > { %4900 = vpush %v2868_v17  ;;  %v3674_v17 = vrot.slane %v6737_v34, 5 }
 0x1d3   : > { %4902 = vpush %v2883_v38 }
 0x1d4   : > { %4904 = vpush %v2899_v28 }
 0x1d5   : > { %4906 = vpush %v2914_v25  ;;  %v2961_v40 = vpop.permute.xlu1 %2960 }
 0x1d6   : > { %4908 = vpush %v2930_v2 }
 0x1d7   : > { %4910 = vpush %v2945_v59 }
 0x1d8   : > { %4912 = vpush %v2961_v40 }
 0x1d9   : > { %4914 = vpush %v2976_v61  ;;  %v2990_v0 = vpop.permute.xlu1 %2989 }
 0x1da   : > { %4916 = vpush %v2990_v0  ;;  %v3584_v0 = vrot.slane %v6737_v34, 2 }
 0x1db   : > { %4918 = vpush %v3003_v4  ;;  %v3158_v4 = vrot.slane %v6635_v53, 4 }
 0x1dd   : > { %v3019_v8 = vpop.permute.xlu1 %3018 }
 0x1de   : > { %4920 = vpush %v3019_v8  ;;  %v3615_v8 = vrot.slane %v6737_v34, 3 }
 0x1df   : > { %4922 = vpush %v6635_v53 }
 0x1e1   : > { %v3050_v7 = vpop.permute.xlu1 %3049 }
 0x1e2   : > { %4924 = vpush %v3050_v7  ;;  %v3643_v7 = vrot.slane %v6737_v34, 4 }
 0x1e3   : > { %4926 = vpush %v3065_v23  ;;  %v6712_v23 = vld [vmem:[%s7970_s6 + $0x18] sm:$0xff] }
 0x1e4   : > { %v3340_v19 = vrot.slane %v6712_v23, 2  ;;  %v3402_v18 = vrot.slane %v6712_v23, 4  ;;  %v3429_v57 = vrot.slane %v6712_v23, 5  ;;  %v3491_v36 = vrot.slane %v6712_v23, 7 }
 0x1e5   : > { %v3081_v26 = vpop.permute.xlu1 %3080  ;;  %v3309_v28 = vrot.slane %v6712_v23, 1  ;;  %v3371_v2 = vrot.slane %v6712_v23, 3  ;;  %v3460_v40 = vrot.slane %v6712_v23, 6 }
 0x1e6   : > { %4928 = vpush %v3081_v26 }
 0x1e7   : > { %4930 = vpush %v3096_v9  ;;  %s6815_s23 = spop %4860 }
 0x1e8   : > { %s6824_s26 = spop %4862 }
 0x1ef   : > { %s6829_s25 = spop %4864 }
 0x1f0   : > { %s6836_s30 = spop %4866 }
 0x1f1   : > { %s6842_s16 = spop %4868 }
 0x234   : > { %v2336_v24 = vpop.f32.mrb[0].mxu0 }
 0x235   : > { %v2340_v58 = vmax.f32 %v2336_v24, 0.0  ;;  %v4815_v39 = vpop.f32.mrb[1].mxu0 }
 0x237   : > { %4819 = vmatmul.mubr.msk.f32.vlgmr.msra.gmra.mrb[0].mxu1 %vm2342_vm8, %v2340_v58  ;;  %vm2538_vm8 = vcmask 89112  }
 0x30a   : > { %v2415_v12 = vpop.f32.mrb[0].mxu1 }
 0x30b   : > { %v2420_v42 = vsel %vm2419_vm9, %v2415_v12, 0.0  ;;  %v4820_v56 = vpop.f32.mrb[1].mxu1  ;;  %vm3623_vm9 = vcmask 1042432  }
 0x30c   : > { %v2421_v55 = vrot.slane %v2420_v42, 4 }
 0x30e   : > { %v2422_v50 = vadd.f32 %v2421_v55, %v2420_v42 }
 0x310   : > { %v2423_v51 = vrot.slane %v2422_v50, 2 }
 0x312   : > { %v2424_v21 = vadd.f32 %v2423_v51, %v2422_v50 }
 0x314   : > { %v2425_v16 = vrot.slane %v2424_v21, 1 }
 0x316   : > { %v2426_v49 = vadd.f32 %v2425_v16, %v2424_v21  ;;  %v7972_v21 = vlaneseq }
 0x318   : > { %v4764_v1 = vmul.f32 -1.442695, %v2426_v49  ;;  %v2489_v16 = vand.u32 127, %v7972_v21 }
 0x31a   : > { %5109 = vpow2.f32 %v4764_v1 }
 0x324   : > { %v5110_v43 = vpop.eup %5109 }
 0x325   : > { %v2430_v41 = vadd.f32 1.0, %v5110_v43  ;;  %v2490_v43 = vadd.s32 4294967293, %v2489_v16 }
 0x327   : > { %5111 = vrcp.f32 %v2430_v41 }
 0x331   : > { %v5112_v62 = vpop.eup %5111 }
 0x332   : > { %v6645_v14 = vmul.f32 %v5112_v62, %v6538_v45  ;;  %v6648_v3 = vmul.f32 %v5112_v62, %v6536_v33  ;;  %v6655_v6 = vmul.f32 %v5112_v62, %v6540_v31  ;;  %v6662_v33 = vmul.f32 %v5112_v62, %v6556_v15 }
 0x333   : > { %v6665_v27 = vmul.f32 %v5112_v62, %v6542_v13  ;;  %v6672_v32 = vmul.f32 %v5112_v62, %v6548_v52  ;;  %v6675_v63 = vmul.f32 %v5112_v62, %v6544_v44  ;;  %v6688_v38 = vmul.f32 %v5112_v62, %v6546_v30  ;;  %v7973_v62 = vld [vmem:[#allocation14_spill] sm:$0xff] }
 0x334   : > { %v2450_v10 = vsel %vm502_vm1, %v6645_v14, 0.0  ;;  %v2447_v46 = vsel %vm502_vm1, %v6648_v3, 0.0  ;;  %v2546_v20 = vsel %vm502_vm1, %v6655_v6, -inf  ;;  %v2453_v45 = vsel %vm502_vm1, %v6655_v6, 0.0 }
 0x335   : > { %2451 = vadd.xlane.f32.xlu0 %v2450_v10  ;;  %2448 = vadd.xlane.f32.xlu1 %v2447_v46  ;;  %v2555_v31 = vsel %vm502_vm1, %v6662_v33, -inf  ;;  %v2456_v5 = vsel %vm502_vm1, %v6665_v27, 0.0  ;;  %v2561_v13 = vsel %vm502_vm1, %v6672_v32, -inf  ;;  %v2459_v15 = vsel %vm502_vm1, %v6675_v63, 0.0 }
 0x336   : > { %v2462_v25 = vsel %vm502_vm1, %v6662_v33, 0.0  ;;  %v2540_v52 = vsel %vm502_vm1, %v6648_v3, -inf  ;;  %v2543_v44 = vsel %vm502_vm1, %v6645_v14, -inf  ;;  %v2465_v59 = vsel %vm502_vm1, %v6688_v38, 0.0 }
 0x337   : > { %v2468_v61 = vsel %vm502_vm1, %v6672_v32, 0.0  ;;  %v2549_v24 = vsel %vm502_vm1, %v6665_v27, -inf  ;;  %v3216_v30 = vrot.slane %v6635_v53, 6  ;;  %v2552_v58 = vsel %vm502_vm1, %v6675_v63, -inf }
 0x338   : > { %v2558_v39 = vsel %vm502_vm1, %v6688_v38, -inf  ;;  %v6793_v10 = vsub.s32 %v2490_v43, %v7973_v62 }
 0x339   : > { %2547 = vmax.xlane.f32.xlu0 %v2546_v20  ;;  %2454 = vadd.xlane.f32.xlu1 %v2453_v45 }
 0x33d   : > { %2556 = vmax.xlane.f32.xlu0 %v2555_v31  ;;  %2457 = vadd.xlane.f32.xlu1 %v2456_v5 }
 0x341   : > { %2562 = vmax.xlane.f32.xlu0 %v2561_v13  ;;  %2460 = vadd.xlane.f32.xlu1 %v2459_v15 }
 0x345   : > { %2463 = vadd.xlane.f32.xlu1 %v2462_v25 }
 0x349   : > { %2541 = vmax.xlane.f32.xlu1 %v2540_v52 }
 0x34d   : > { %2544 = vmax.xlane.f32.xlu1 %v2543_v44 }
 0x351   : > { %2466 = vadd.xlane.f32.xlu1 %v2465_v59 }
 0x355   : > { %2469 = vadd.xlane.f32.xlu1 %v2468_v61 }
 0x357   : > { %3111 = vrot.lane.b32.xlu0 %v3096_v9, %s7884_s4 }
 0x359   : > { %2550 = vmax.xlane.f32.xlu1 %v2549_v24 }
 0x35b   : > { %3173 = vrot.lane.b32.xlu0 %v3158_v4, %s7884_s4 }
 0x35d   : > { %2553 = vmax.xlane.f32.xlu1 %v2552_v58 }
 0x35f   : > { %3231 = vrot.lane.b32.xlu0 %v3216_v30, %s7884_s4 }
 0x361   : > { %2559 = vmax.xlane.f32.xlu1 %v2558_v39 }
 0x363   : > { %3293 = vrot.lane.b32.xlu0 %v6712_v23, %s7884_s4 }
 0x367   : > { %3355 = vrot.lane.b32.xlu0 %v3340_v19, %s7884_s4 }
 0x36b   : > { %3415 = vrot.lane.b32.xlu0 %v3402_v18, %s7884_s4 }
 0x36f   : > { %3444 = vrot.lane.b32.xlu0 %v3429_v57, %s7884_s4 }
 0x372   : > { %3142 = vrot.lane.b32.xlu1 %v3127_v35, %s7884_s4 }
 0x373   : > { %3506 = vrot.lane.b32.xlu0 %v3491_v36, %s7884_s4 }
 0x376   : > { %3202 = vrot.lane.b32.xlu1 %v3189_v22, %s7884_s4 }
 0x377   : > { %3568 = vrot.lane.b32.xlu0 %v3553_v29, %s7884_s4 }
 0x37a   : > { %3262 = vrot.lane.b32.xlu1 %v3247_v54, %s7884_s4 }
 0x37b   : > { %3689 = vrot.lane.b32.xlu0 %v3674_v17, %s7884_s4 }
 0x37e   : > { %3324 = vrot.lane.b32.xlu1 %v3309_v28, %s7884_s4 }
 0x382   : > { %3386 = vrot.lane.b32.xlu1 %v3371_v2, %s7884_s4 }
 0x386   : > { %3475 = vrot.lane.b32.xlu1 %v3460_v40, %s7884_s4 }
 0x38a   : > { %3537 = vrot.lane.b32.xlu1 %v6737_v34, %s7884_s4 }
 0x38e   : > { %3599 = vrot.lane.b32.xlu1 %v3584_v0, %s7884_s4 }
 0x392   : > { %3629 = vrot.lane.b32.xlu1 %v3615_v8, %s7884_s4 }
 0x396   : > { %3658 = vrot.lane.b32.xlu1 %v3643_v7, %s7884_s4  ;;  %s6848_s4 = spop %4870 }
 0x397   : > { %s6854_s0 = spop %4872 }
 0x398   : > { %s6857_s1 = spop %4874 }
 0x399   : > { %s6861_s2 = spop %4876 }
 0x39a   : > { %s6865_s3 = spop %4878 }
 0x39b   : > { %s6871_s5 = spop %4880 }
 0x39c   : > { %s6879_s27 = spop %4882 }
 0x3c2   : > { %v2452_v9 = vpop.xlane.xlu0 %2451  ;;  %v2449_v26 = vpop.xlane.xlu1 %2448 }
 0x3c3   : > { %v2473_v46 = vmul.f32 0.0625, %v2452_v9  ;;  %v2472_v20 = vmul.f32 0.0625, %v2449_v26 }
 0x3c5   : > { %v2498_v15 = vrot.slane %v2473_v46, %v6793_v10  ;;  %v2494_v25 = vrot.slane %v2472_v20, %v6793_v10 }
 0x3c6   : > { %v6785_v12 = vpop.xlane.xlu0 %2547  ;;  %v2455_v42 = vpop.xlane.xlu1 %2454 }
 0x3c7   : > { %v2474_v45 = vmul.f32 0.0625, %v2455_v42  ;;  %v2524_v39 = vsel %vm2523_vm12, %v2498_v15, %v2494_v25 }
 0x3c9   : > { %v2502_v44 = vrot.slane %v2474_v45, %v6793_v10 }
 0x3ca   : > { %v6787_v56 = vpop.xlane.xlu0 %2556  ;;  %v2458_v55 = vpop.xlane.xlu1 %2457 }
 0x3cb   : > { %v2475_v5 = vmul.f32 0.0625, %v2458_v55 }
 0x3cd   : > { %v2506_v61 = vrot.slane %v2475_v5, %v6793_v10 }
 0x3ce   : > { %v6789_v50 = vpop.xlane.xlu0 %2562  ;;  %v2461_v51 = vpop.xlane.xlu1 %2460 }
 0x3cf   : > { %v2476_v13 = vmul.f32 0.0625, %v2461_v51 }
 0x3d1   : > { %v2510_v58 = vrot.slane %v2476_v13, %v6793_v10 }
 0x3d2   : > { %v3112_v49 = vpop.permute.xlu0 %3111  ;;  %v2464_v1 = vpop.xlane.xlu1 %2463 }
 0x3d3   : > { %4932 = vpush %v3112_v49  ;;  %v2477_v52 = vmul.f32 0.0625, %v2464_v1 }
 0x3d4   : > { %4934 = vpush %v3127_v35  ;;  %v2526_v35 = vsel %vm2525_vm13, %v2502_v44, %v2524_v39 }
 0x3d5   : > { %v2514_v11 = vrot.slane %v2477_v52, %v6793_v10  ;;  %v2528_v42 = vsel %vm2527_vm14, %v2506_v61, %v2526_v35 }
 0x3d6   : > { %v2542_v41 = vpop.xlane.xlu1 %2541  ;;  %v2530_v51 = vsel %vm2529_vm15, %v2510_v58, %v2528_v42  ;;  %v3174_v49 = vpop.permute.xlu0 %3173 }
 0x3d7   : > { %v2532_v21 = vsel %vm2531_vm0, %v2514_v11, %v2530_v51  ;;  %v2575_v15 = vrot.slane %v2542_v41, %v6793_v10 }
 0x3da   : > { %v2545_v31 = vpop.xlane.xlu1 %2544  ;;  %v3232_v20 = vpop.permute.xlu0 %3231 }
 0x3db   : > { %v2579_v5 = vrot.slane %v2545_v31, %v6793_v10 }
 0x3dd   : > { %v2604_v52 = vsel %vm2523_vm12, %v2579_v5, %v2575_v15  ;;  %v2734_v5 = vstv %s6871_s5  ;;  %v2639_v15 = vstv %s6824_s26  ;;  %s7893_s5 = smov 123  }
 0x3de   : > { %v2467_v59 = vpop.xlane.xlu1 %2466  ;;  %v3294_v13 = vpop.permute.xlu0 %3293 }
 0x3df   : > { %v2478_v24 = vmul.f32 0.0625, %v2467_v59  ;;  %v2583_v59 = vrot.slane %v6785_v12, %v6793_v10 }
 0x3e1   : > { %v2518_v9 = vrot.slane %v2478_v24, %v6793_v10  ;;  %v2605_v61 = vsel %vm2525_vm13, %v2583_v59, %v2604_v52 }
 0x3e2   : > { %v2470_v26 = vpop.xlane.xlu1 %2469  ;;  %v3356_v24 = vpop.permute.xlu0 %3355 }
 0x3e3   : > { %v2479_v55 = vmul.f32 0.0625, %v2470_v26  ;;  %v2534_v1 = vsel %vm2533_vm2, %v2518_v9, %v2532_v21  ;;  %v2671_v9 = vstv %s6842_s16  ;;  %v2713_v21 = vstv %s6861_s2  ;;  %s4885_s16 = spop %4884  ;;  %s7889_s2 = smov 124  }
 0x3e5   : > { %v2522_v16 = vrot.slane %v2479_v55, %v6793_v10  ;;  %v2633_v55 = vstv %s6815_s23 }
 0x3e6   : > { %v2551_v43 = vpop.xlane.xlu1 %2550 }
 0x3e7   : > { %v2536_v62 = vsel %vm2535_vm7, %v2522_v16, %v2534_v1  ;;  %v2587_v44 = vrot.slane %v2551_v43, %v6793_v10  ;;  %v2692_v1 = vstv %s6854_s0  ;;  %s7891_s0 = smov 125  }
 0x3e8   : > { %2539 = vst.msk [vmem:[#allocation3 + $0x3] sm:$0xff] %vm2538_vm8, %v2536_v62 }
 0x3ea   : > { %v2554_v46 = vpop.xlane.xlu1 %2553 }
 0x3eb   : > { %v2591_v31 = vrot.slane %v2554_v46, %v6793_v10  ;;  %v2755_v46 = vstv %s4885_s16 }
 0x3ee   : > { %v2560_v45 = vpop.xlane.xlu1 %2559 }
 0x3ef   : > { %v2599_v58 = vrot.slane %v2560_v45, %v6793_v10  ;;  %v6885_v51 = vld [vmem:[#allocation3] sm:$0xff] }
 0x3f0   : > { %v2641_v59 = vmul.f32 %v2639_v15, %v6885_v51 }
 0x3f2   : > { %v3143_v25 = vpop.permute.xlu1 %3142 }
 0x3f3   : > { %4936 = vpush %v3143_v25  ;;  %v3736_v25 = vrot.slane %v6737_v34, 7 }
 0x3f4   : > { %4938 = vpush %v3158_v4  ;;  %v2606_v4 = vsel %vm2527_vm14, %v2587_v44, %v2605_v61  ;;  %v2660_v44 = vstv %s6836_s30  ;;  %v2702_v61 = vstv %s6857_s1 }
 0x3f5   : > { %4940 = vpush %v3174_v49  ;;  %v2607_v12 = vsel %vm2529_vm15, %v2591_v31, %v2606_v4  ;;  %v2662_v31 = vmul.f32 %v2660_v44, %v6885_v51  ;;  %v2704_v4 = vmul.f32 %v2702_v61, %v6885_v51 }
 0x3f6   : > { %4942 = vpush %v3189_v22  ;;  %v3203_v41 = vpop.permute.xlu1 %3202  ;;  %v2595_v22 = vrot.slane %v6787_v56, %v6793_v10  ;;  %v3416_v56 = vpop.permute.xlu0 %3415 }
 0x3f7   : > { %4944 = vpush %v3203_v41 }
 0x3f8   : > { %4946 = vpush %v3216_v30  ;;  %v2603_v30 = vrot.slane %v6789_v50, %v6793_v10  ;;  %v2608_v11 = vsel %vm2531_vm0, %v2595_v22, %v2607_v12  ;;  %v2650_v10 = vstv %s6829_s25  ;;  %s7887_s25 = smov 126   ;;  %v2744_v12 = vstv %s6879_s27 }
 0x3f9   : > { %4948 = vpush %v3232_v20  ;;  %v2609_v35 = vsel %vm2533_vm2, %v2599_v58, %v2608_v11 }
 0x3fa   : > { %4950 = vpush %v3247_v54  ;;  %v3263_v39 = vpop.permute.xlu1 %3262  ;;  %v2610_v53 = vsel %vm2535_vm7, %v2603_v30, %v2609_v35  ;;  %v3445_v50 = vpop.permute.xlu0 %3444  ;;  %v2746_v35 = vmul.f32 %v2744_v12, %v6885_v51 }
 0x3fb   : > { %4952 = vpush %v3263_v39 }
 0x3fc   : > { %4954 = vpush %v6712_v23 }
 0x3fd   : > { %4956 = vpush %v3294_v13 }
 0x3fe   : > { %4958 = vpush %v3309_v28  ;;  %v3325_v54 = vpop.permute.xlu1 %3324 }
 0x3ff   : > { %2612 = vst.msk [vmem:[#allocation4 + $0x3] sm:$0xff] %vm2538_vm8, %v2610_v53 }
 0x400   : > { %4960 = vpush %v3325_v54 }
 0x401   : > { %4962 = vpush %v3340_v19 }
 0x402   : > { %4964 = vpush %v3356_v24  ;;  %v3387_v28 = vpop.permute.xlu1 %3386 }
 0x403   : > { %4966 = vpush %v3371_v2 }
 0x404   : > { %4968 = vpush %v3387_v28 }
 0x405   : > { %4970 = vpush %v3402_v18  ;;  %v2626_v18 = vstv %s6812_s17  ;;  %s6893_s17 = spop %4886 }
 0x406   : > { %4972 = vpush %v3416_v56  ;;  %v6873_v19 = vld [vmem:[#allocation4] sm:$0xff]  ;;  %v3476_v2 = vpop.permute.xlu1 %3475  ;;  %s6900_s23 = spop %4888  ;;  %v6943_v24 = vld [vmem:[#allocation4 + $0x8] sm:$0x3f]  ;;  %v6967_v56 = vld [vmem:[%s7970_s6 + $0x28] sm:$0xff] }
 0x407   : > { %4974 = vpush %v3429_v57  ;;  %v2652_v26 = vmul.f32 %v2650_v10, %v6873_v19  ;;  %v2673_v42 = vmul.f32 %v2671_v9, %v6873_v19  ;;  %v3507_v57 = vpop.permute.xlu0 %3506  ;;  %v2635_v16 = vmul.f32 %v2633_v55, %v6873_v19  ;;  %v2715_v43 = vmul.f32 %v2713_v21, %v6873_v19 }
 0x408   : > { %4976 = vpush %v3445_v50  ;;  %v2694_v62 = vmul.f32 %v2692_v1, %v6873_v19  ;;  %v2757_v23 = vmul.f32 %v2755_v46, %v6873_v19  ;;  %v2736_v13 = vmul.f32 %v2734_v5, %v6873_v19 }
 0x409   : > { %4978 = vpush %v3460_v40  ;;  %2675 = vrot.lane.b32.xlu0 %v2673_v42, %s7887_s25  ;;  %2654 = vrot.lane.b32.xlu1 %v2652_v26, %s7974_s20  ;;  %v2628_v40 = vmul.f32 %v2626_v18, %v6885_v51  ;;  %s6906_s25 = spop %4890 }
 0x40a   : > { %v3538_v49 = vpop.permute.xlu1 %3537  ;;  %4980 = vpush %v3476_v2  ;;  %s6912_s16 = spop %4892  ;;  %v2792_v26 = vstv %s6906_s25 }
 0x40b   : > { %4982 = vpush %v3491_v36  ;;  %v6902_v20 = vadd.f32 %v2635_v16, %v2628_v40  ;;  %v3569_v36 = vpop.permute.xlu0 %3568 }
 0x40c   : > { %4984 = vpush %v3507_v57  ;;  %v6982_v57 = vld [vmem:[#allocation3 + $0x8] sm:$0x3f] }
 0x40d   : > { %2717 = vrot.lane.b32.xlu0 %v2715_v43, %s7889_s2  ;;  %2696 = vrot.lane.b32.xlu1 %v2694_v62, %s7891_s0  ;;  %4986 = vpush %v6737_v34  ;;  %s7895_s2 = smov 122   ;;  %s6919_s0 = spop %4894 }
 0x40e   : > { %v3600_v45 = vpop.permute.xlu1 %3599  ;;  %4988 = vpush %v3538_v49  ;;  %s6925_s26 = spop %4896 }
 0x40f   : > { %4990 = vpush %v3553_v29  ;;  %v3705_v29 = vrot.slane %v6737_v34, 6  ;;  %v3690_v41 = vpop.permute.xlu0 %3689  ;;  %v2839_v30 = vstv %s6925_s26 }
 0x410   : > { %4992 = vpush %v3569_v36  ;;  %v2841_v10 = vmul.f32 %v2839_v30, %v6873_v19  ;;  %v2842_v9 = vmul.f32 %v2839_v30, %v6943_v24  ;;  %v2795_v36 = vmul.f32 %v2792_v26, %v6982_v57  ;;  %v3798_v30 = vrot.slane %v6967_v56, 1 }
 0x411   : > { %2759 = vrot.lane.b32.xlu0 %v2757_v23, %s7895_s2  ;;  %2738 = vrot.lane.b32.xlu1 %v2736_v13, %s7893_s5  ;;  %4994 = vpush %v3584_v0  ;;  %s6932_s5 = spop %4898  ;;  %v2794_v23 = vmul.f32 %v2792_v26, %v6885_v51 }
 0x412   : > { %v3630_v52 = vpop.permute.xlu1 %3629  ;;  %4996 = vpush %v3600_v45  ;;  %s4901_s30 = spop %4900  ;;  %v2845_v62 = vrot.slane %v2841_v10, 1  ;;  %v2846_v46 = vrot.slane %v2842_v9, 1  ;;  %v2823_v45 = vstv %s6919_s0 }
 0x413   : > { %4998 = vpush %v3615_v8  ;;  %v2681_v8 = vstv %s6848_s4  ;;  %s6941_s2 = spop %4902  ;;  %s7976_s4 = smov 124   ;;  %v2870_v11 = vstv %s4901_s30 }
 0x414   : > { %5000 = vpush %v3630_v52  ;;  %s6950_s29 = spop %4904  ;;  %v2683_v58 = vmul.f32 %v2681_v8, %v6885_v51  ;;  %v2872_v53 = vmul.f32 %v2870_v11, %v6873_v19  ;;  %v2873_v54 = vmul.f32 %v2870_v11, %v6943_v24  ;;  %v2885_v61 = vstv %s6941_s2 }
 0x415   : > { %3751 = vrot.lane.b32.xlu0 %v3736_v25, %s7974_s20  ;;  %2643 = vrot.lane.b32.xlu1 %v2641_v59, %s7974_s20  ;;  %5002 = vpush %v3643_v7  ;;  %v2808_v7 = vstv %s6912_s16  ;;  %s6957_s1 = spop %4906  ;;  %v2901_v42 = vstv %s6950_s29  ;;  %s7979_s29 = smov 123   ;;  %v2825_v8 = vmul.f32 %v2823_v45, %v6885_v51 }
 0x416   : > { %v3659_v0 = vpop.permute.xlu1 %3658  ;;  %v2810_v22 = vmul.f32 %v2808_v7, %v6873_v19  ;;  %v2811_v39 = vmul.f32 %v2808_v7, %v6943_v24  ;;  %s4909_s16 = spop %4908  ;;  %v2876_v16 = vrot.slane %v2872_v53, 1  ;;  %v2877_v49 = vrot.slane %v2873_v54, 1 }
 0x417   : > { %5004 = vpush %v3659_v0  ;;  %v2932_v2 = vstv %s4909_s16  ;;  %s6974_s26 = spop %4910  ;;  %v2903_v43 = vmul.f32 %v2901_v42, %v6873_v19  ;;  %v2904_v40 = vmul.f32 %v2901_v42, %v6943_v24  ;;  %v2798_v7 = vrot.slane %v2794_v23, 1 }
 0x418   : > { %5006 = vpush %v3674_v17  ;;  %v2723_v17 = vstv %s6865_s3  ;;  %v2814_v28 = vrot.slane %v2810_v22, 1  ;;  %v2815_v50 = vrot.slane %v2811_v39, 1  ;;  %s7978_s3 = smov 122   ;;  %v2934_v55 = vmul.f32 %v2932_v2, %v6873_v19  ;;  %s4913_s21 = spop %4912 }
 0x419   : > { %2664 = vrot.lane.b32.xlu0 %v2662_v31, %s7975_s24  ;;  %3720 = vrot.lane.b32.xlu1 %v3705_v29, %s7974_s20  ;;  %5008 = vpush %v3690_v41  ;;  %v2725_v18 = vmul.f32 %v2723_v17, %v6885_v51  ;;  %v2935_v21 = vmul.f32 %v2932_v2, %v6943_v24  ;;  %v2963_v5 = vstv %s4913_s21  ;;  %v2908_v0 = vrot.slane %v2904_v40, 1  ;;  %s7001_s25 = spop %4914 }
 0x41a   : > { %5010 = vpush %v3705_v29  ;;  %v2816_v1 = vsel %vm621_vm3, %v2814_v28, %v2815_v50  ;;  %v2965_v13 = vmul.f32 %v2963_v5, %v6873_v19  ;;  %v2938_v15 = vrot.slane %v2934_v55, 1  ;;  %v2878_v44 = vsel %vm621_vm3, %v2876_v16, %v2877_v49  ;;  %s7008_s0 = spop %4916 }
 0x41b   : > { %v2939_v52 = vrot.slane %v2935_v21, 1  ;;  %v2966_v59 = vmul.f32 %v2963_v5, %v6943_v24  ;;  %v2907_v29 = vrot.slane %v2903_v43, 1  ;;  %v2847_v31 = vsel %vm621_vm3, %v2845_v62, %v2846_v46  ;;  %s7011_s2 = spop %4918 }
 0x41c   : > { %v2854_v41 = vstv %s6932_s5  ;;  %v2969_v22 = vrot.slane %v2965_v13, 1  ;;  %v2887_v53 = vmul.f32 %v2885_v61, %v6885_v51  ;;  %s4921_s5 = spop %4920  ;;  %v2888_v28 = vmul.f32 %v2885_v61, %v6982_v57 }
 0x41d   : > { %2706 = vrot.lane.b32.xlu0 %v2704_v4, %s7976_s4  ;;  %2685 = vrot.lane.b32.xlu1 %v2683_v58, %s7977_s18  ;;  %v2799_v4 = vrot.slane %v2795_v36, 1  ;;  %v2940_v12 = vsel %vm621_vm3, %v2938_v15, %v2939_v52  ;;  %v2826_v58 = vmul.f32 %v2823_v45, %v6982_v57  ;;  %v2970_v39 = vrot.slane %v2966_v59, 1  ;;  %s7030_s30 = spop %4922 }
 0x41e   : > { %v2909_v17 = vsel %vm621_vm3, %v2907_v29, %v2908_v0  ;;  %v2856_v11 = vmul.f32 %v2854_v41, %v6885_v51  ;;  %v2829_v50 = vrot.slane %v2825_v8, 1  ;;  %v2916_v2 = vstv %s6957_s1  ;;  %s4925_s1 = spop %4924 }
 0x41f   : > { %v2800_v54 = vsel %vm621_vm3, %v2798_v7, %v2799_v4  ;;  %v2830_v10 = vrot.slane %v2826_v58, 1  ;;  %v2971_v9 = vsel %vm621_vm3, %v2969_v22, %v2970_v39  ;;  %v3021_v26 = vstv %s4921_s5  ;;  %s7039_s16 = spop %4926 }
 0x420   : > { %v2860_v42 = vrot.slane %v2856_v11, 1  ;;  %v2891_v55 = vrot.slane %v2887_v53, 1  ;;  %v2892_v21 = vrot.slane %v2888_v28, 1  ;;  %v3023_v16 = vmul.f32 %v3021_v26, %v6873_v19  ;;  %s4929_s27 = spop %4928 }
 0x421   : > { %2748 = vrot.lane.b32.xlu0 %v2746_v35, %s7978_s3  ;;  %3782 = vrot.lane.b32.xlu1 %v6967_v56, %s7974_s20  ;;  %v2857_v35 = vmul.f32 %v2854_v41, %v6982_v57  ;;  %v3024_v49 = vmul.f32 %v3021_v26, %v6943_v24  ;;  %v2918_v43 = vmul.f32 %v2916_v2, %v6885_v51  ;;  %v3829_v23 = vrot.slane %v6967_v56, 2 }
 0x422   : > { %v2919_v40 = vmul.f32 %v2916_v2, %v6982_v57  ;;  %v3027_v46 = vrot.slane %v3023_v16, 2  ;;  %v2893_v5 = vsel %vm621_vm3, %v2891_v55, %v2892_v21  ;;  %v2947_v36 = vstv %s6974_s26  ;;  %s7064_s26 = spop %4930 }
 0x423   : > { %v3028_v45 = vrot.slane %v3024_v49, 2  ;;  %v2922_v13 = vrot.slane %v2918_v43, 1  ;;  %v2949_v52 = vmul.f32 %v2947_v36, %v6885_v51  ;;  %v3888_v29 = vrot.slane %v6967_v56, 4  ;;  %s4933_s21 = spop %4932 }
 0x424   : > { %v2923_v15 = vrot.slane %v2919_v40, 1  ;;  %v3005_v0 = vstv %s7011_s2  ;;  %v3083_v41 = vstv %s4929_s27  ;;  %v3857_v4 = vrot.slane %v6967_v56, 3  ;;  %s7078_s2 = spop %4934 }
 0x425   : > { %2817 = vrot.lane.b32.xlu0 %v2816_v1, %s7974_s20  ;;  %2727 = vrot.lane.b32.xlu1 %v2725_v18, %s7979_s29  ;;  %v2861_v18 = vrot.slane %v2857_v35, 1  ;;  %v2831_v1 = vsel %vm621_vm3, %v2829_v50, %v2830_v10  ;;  %v3029_v59 = vsel %vm698_vm4, %v3027_v46, %v3028_v45  ;;  %v3085_v22 = vmul.f32 %v3083_v41, %v6873_v19  ;;  %s4937_s5 = spop %4936 }
 0x426   : > { %v2924_v7 = vsel %vm621_vm3, %v2922_v13, %v2923_v15  ;;  %v3086_v39 = vmul.f32 %v3083_v41, %v6943_v24  ;;  %v3007_v11 = vmul.f32 %v3005_v0, %v6885_v51  ;;  %v3114_v16 = vstv %s4933_s21 }
 0x427   : > { %v2862_v62 = vsel %vm621_vm3, %v2860_v42, %v2861_v18  ;;  %v3089_v28 = vrot.slane %v3085_v22, 2  ;;  %v3919_v18 = vrot.slane %v6967_v56, 5  ;;  %v3098_v40 = vstv %s7064_s26 }
 0x428   : > { %v3090_v50 = vrot.slane %v3086_v39, 2  ;;  %v3011_v55 = vrot.slane %v3007_v11, 2  ;;  %v3116_v45 = vmul.f32 %v3114_v16, %v6873_v19  ;;  %v3145_v13 = vstv %s4937_s5 }
 0x429   : > { %2879 = vrot.lane.b32.xlu0 %v2878_v44, %s7977_s18  ;;  %2848 = vrot.lane.b32.xlu1 %v2847_v31, %s7975_s24  ;;  %v2950_v44 = vmul.f32 %v2947_v36, %v6982_v57  ;;  %v3052_v31 = vstv %s4925_s1  ;;  %v3950_v15 = vrot.slane %v6967_v56, 6 }
 0x42a   : > { %v3054_v61 = vmul.f32 %v3052_v31, %v6873_v19  ;;  %v3055_v8 = vmul.f32 %v3052_v31, %v6943_v24  ;;  %v3091_v49 = vsel %vm698_vm4, %v3089_v28, %v3090_v50  ;;  %v3120_v31 = vrot.slane %v3116_v45, 2 }
 0x42b   : > { %v2954_v58 = vrot.slane %v2950_v44, 1 }
 0x42c   : > { %v3058_v35 = vrot.slane %v3054_v61, 2  ;;  %v3059_v53 = vrot.slane %v3055_v8, 2  ;;  %v3129_v8 = vstv %s7078_s2 }
 0x42d   : > { %2941 = vrot.lane.b32.xlu0 %v2940_v12, %s7979_s29  ;;  %2910 = vrot.lane.b32.xlu1 %v2909_v17, %s7976_s4  ;;  %v2953_v12 = vrot.slane %v2949_v52, 1  ;;  %v3036_v17 = vstv %s7030_s30  ;;  %s7086_s30 = spop %4938  ;;  %v3131_v39 = vmul.f32 %v3129_v8, %v6885_v51 }
 0x42e   : > { %v3038_v2 = vmul.f32 %v3036_v17, %v6885_v51  ;;  %v3039_v26 = vmul.f32 %v3036_v17, %v6982_v57  ;;  %v3060_v42 = vsel %vm698_vm4, %v3058_v35, %v3059_v53  ;;  %s7095_s1 = spop %4940  ;;  %v3132_v35 = vmul.f32 %v3129_v8, %v6982_v57 }
 0x42f   : > { %v2955_v10 = vsel %vm621_vm3, %v2953_v12, %v2954_v58  ;;  %v3148_v12 = vmul.f32 %v3145_v13, %v6943_v24  ;;  %v3160_v28 = vstv %s7086_s30 }
 0x430   : > { %v3043_v46 = vrot.slane %v3039_v26, 2  ;;  %v3162_v50 = vmul.f32 %v3160_v28, %v6885_v51  ;;  %v3135_v26 = vrot.slane %v3131_v39, 2 }
 0x431   : > { %2801 = vrot.lane.b32.xlu0 %v2800_v54, %s7974_s20  ;;  %2972 = vrot.lane.b32.xlu1 %v2971_v9, %s7978_s3  ;;  %v3008_v54 = vmul.f32 %v3005_v0, %v6982_v57  ;;  %v3067_v9 = vstv %s7039_s16  ;;  %v3101_v0 = vmul.f32 %v3098_v40, %v6982_v57  ;;  %s7102_s16 = spop %4942 }
 0x432   : > { %v3070_v43 = vmul.f32 %v3067_v9, %v6982_v57  ;;  %s7105_s27 = spop %4944 }
 0x433   : > { %v3012_v21 = vrot.slane %v3008_v54, 2  ;;  %v3105_v22 = vrot.slane %v3101_v0, 2  ;;  %s4947_s26 = spop %4946  ;;  %v3152_v54 = vrot.slane %v3148_v12, 2 }
 0x434   : > { %v3074_v44 = vrot.slane %v3070_v43, 2  ;;  %s4949_s21 = spop %4948 }
 0x435   : > { %3813 = vrot.lane.b32.xlu0 %v3798_v30, %s7974_s20  ;;  %2832 = vrot.lane.b32.xlu1 %v2831_v1, %s7975_s24  ;;  %v3069_v1 = vmul.f32 %v3067_v9, %v6885_v51  ;;  %v3013_v36 = vsel %vm698_vm4, %v3011_v55, %v3012_v21  ;;  %v3176_v9 = vstv %s7095_s1  ;;  %s7120_s2 = spop %4950  ;;  %v3981_v21 = vrot.slane %v6967_v56, 7 }
 0x436   : > { %s7123_s5 = spop %4952 }
 0x437   : > { %v3073_v52 = vrot.slane %v3069_v1, 2  ;;  %s7130_s30 = spop %4954  ;;  %v3166_v1 = vrot.slane %v3162_v50, 2 }
 0x438   : > { %s7136_s1 = spop %4956 }
 0x439   : > { %2863 = vrot.lane.b32.xlu0 %v2862_v62, %s7977_s18  ;;  %2894 = vrot.lane.b32.xlu1 %v2893_v5, %s7976_s4  ;;  %v3042_v62 = vrot.slane %v3038_v2, 2  ;;  %v3117_v5 = vmul.f32 %v3114_v16, %v6943_v24  ;;  %v3075_v11 = vsel %vm698_vm4, %v3073_v52, %v3074_v44  ;;  %v3218_v16 = vstv %s4947_s26  ;;  %s7145_s26 = spop %4958 }
 0x43a   : > { %v3221_v45 = vmul.f32 %v3218_v16, %v6982_v57  ;;  %s7154_s15 = spop %4960 }
 0x43b   : > { %v3121_v41 = vrot.slane %v3117_v5, 2  ;;  %v3044_v61 = vsel %vm698_vm4, %v3042_v62, %v3043_v46  ;;  %v3234_v62 = vstv %s4949_s21  ;;  %v3220_v46 = vmul.f32 %v3218_v16, %v6885_v51  ;;  %s7160_s21 = spop %4962 }
 0x43c   : > { %v3249_v5 = vstv %s7120_s2  ;;  %v3236_v52 = vmul.f32 %v3234_v62, %v6873_v19  ;;  %v3237_v44 = vmul.f32 %v3234_v62, %v6943_v24 }
 0x43d   : > { %3843 = vrot.lane.b32.xlu0 %v3829_v23, %s7974_s20  ;;  %3030 = vrot.lane.b32.xlu1 %v3029_v59, %s7974_s20  ;;  %v3100_v59 = vmul.f32 %v3098_v40, %v6885_v51  ;;  %v3122_v17 = vsel %vm698_vm4, %v3120_v31, %v3121_v41  ;;  %v3179_v40 = vmul.f32 %v3176_v9, %v6943_v24  ;;  %v3265_v41 = vstv %s7123_s5  ;;  %s7168_s5 = spop %4964 }
 0x43e   : > { %v3251_v31 = vmul.f32 %v3249_v5, %v6885_v51  ;;  %v3224_v8 = vrot.slane %v3220_v46, 3  ;;  %v3252_v12 = vmul.f32 %v3249_v5, %v6982_v57  ;;  %v3241_v39 = vrot.slane %v3237_v44, 3 }
 0x43f   : > { %v3104_v58 = vrot.slane %v3100_v59, 2  ;;  %v7150_v59 = vld [vmem:[%s7970_s6 + $0x30] sm:$0x1]  ;;  %v3183_v0 = vrot.slane %v3179_v40, 2 }
 0x440   : > { %v3256_v50 = vrot.slane %v3252_v12, 3 }
 0x441   : > { %2925 = vrot.lane.b32.xlu0 %v2924_v7, %s7979_s29  ;;  %3903 = vrot.lane.b32.xlu1 %v3888_v29, %s7974_s20  ;;  %v3147_v7 = vmul.f32 %v3145_v13, %v6873_v19  ;;  %v3106_v2 = vsel %vm698_vm4, %v3104_v58, %v3105_v22  ;;  %v3280_v58 = vstv %s7130_s30  ;;  %v3240_v22 = vrot.slane %v3236_v52, 3  ;;  %s7175_s30 = spop %4966 }
 0x442   : > { %v3373_v12 = vstv %s7175_s30 }
 0x443   : > { %v3151_v53 = vrot.slane %v3147_v7, 2  ;;  %v3225_v7 = vrot.slane %v3221_v45, 3  ;;  %v3242_v40 = vsel %vm775_vm5, %v3240_v22, %v3241_v39  ;;  %v3342_v45 = vstv %s7160_s21 }
 0x445   : > { %3872 = vrot.lane.b32.xlu0 %v3857_v4, %s7974_s20  ;;  %2956 = vrot.lane.b32.xlu1 %v2955_v10, %s7978_s3  ;;  %v3163_v10 = vmul.f32 %v3160_v28, %v6982_v57  ;;  %v3153_v55 = vsel %vm698_vm4, %v3151_v53, %v3152_v54  ;;  %v3282_v53 = vmul.f32 %v3280_v58, %v6885_v51  ;;  %v3296_v54 = vstv %s7136_s1  ;;  %s7180_s1 = spop %4968 }
 0x446   : > { %v3299_v16 = vmul.f32 %v3296_v54, %v6943_v24 }
 0x447   : > { %v3167_v43 = vrot.slane %v3163_v10, 2  ;;  %v3283_v10 = vmul.f32 %v3280_v58, %v6982_v57 }
 0x449   : > { %3061 = vrot.lane.b32.xlu0 %v3060_v42, %s7975_s24  ;;  %3092 = vrot.lane.b32.xlu1 %v3091_v49, %s7977_s18  ;;  %v3136_v42 = vrot.slane %v3132_v35, 2  ;;  %v3178_v49 = vmul.f32 %v3176_v9, %v6873_v19  ;;  %v3255_v35 = vrot.slane %v3251_v31, 3  ;;  %v3311_v9 = vstv %s7145_s26  ;;  %s7187_s26 = spop %4970 }
 0x44a   : > { %v3287_v62 = vrot.slane %v3283_v10, 3  ;;  %v3314_v46 = vmul.f32 %v3311_v9, %v6982_v57  ;;  %v3344_v31 = vmul.f32 %v3342_v45, %v6885_v51  ;;  %v3376_v10 = vmul.f32 %v3373_v12, %v6982_v57 }
 0x44b   : > { %v3182_v13 = vrot.slane %v3178_v49, 2  ;;  %v3286_v49 = vrot.slane %v3282_v53, 3  ;;  %v3257_v5 = vsel %vm775_vm5, %v3255_v35, %v3256_v50  ;;  %v3375_v53 = vmul.f32 %v3373_v12, %v6885_v51 }
 0x44c   : > { %v3348_v35 = vrot.slane %v3344_v31, 3 }
 0x44d   : > { %3934 = vrot.lane.b32.xlu0 %v3919_v18, %s7974_s20  ;;  %3014 = vrot.lane.b32.xlu1 %v3013_v36, %s7974_s20  ;;  %v3137_v36 = vsel %vm698_vm4, %v3135_v26, %v3136_v42  ;;  %v3184_v28 = vsel %vm698_vm4, %v3182_v13, %v3183_v0  ;;  %v3303_v13 = vrot.slane %v3299_v16, 3  ;;  %v3288_v58 = vsel %vm775_vm5, %v3286_v49, %v3287_v62 }
 0x44e   : > { %v3379_v49 = vrot.slane %v3375_v53, 3  ;;  %v3380_v62 = vrot.slane %v3376_v10, 3 }
 0x451   : > { %3045 = vrot.lane.b32.xlu0 %v3044_v61, %s7975_s24  ;;  %3965 = vrot.lane.b32.xlu1 %v3950_v15, %s7974_s20  ;;  %v3168_v61 = vsel %vm698_vm4, %v3166_v1, %v3167_v43  ;;  %v3313_v1 = vmul.f32 %v3311_v9, %v6885_v51  ;;  %v3327_v43 = vstv %s7154_s15  ;;  %s7194_s15 = spop %4972 }
 0x452   : > { %v3329_v52 = vmul.f32 %v3327_v43, %v6873_v19  ;;  %v3330_v44 = vmul.f32 %v3327_v43, %v6943_v24  ;;  %s7201_s2 = spop %4974 }
 0x453   : > { %v3317_v0 = vrot.slane %v3313_v1, 3  ;;  %s7208_s21 = spop %4976  ;;  %v3431_v9 = vstv %s7201_s2 }
 0x454   : > { %v3333_v22 = vrot.slane %v3329_v52, 3  ;;  %v3334_v39 = vrot.slane %v3330_v44, 3  ;;  %v3433_v1 = vmul.f32 %v3431_v9, %v6885_v51  ;;  %v3447_v43 = vstv %s7208_s21 }
 0x455   : > { %3123 = vrot.lane.b32.xlu0 %v3122_v17, %s7976_s4  ;;  %3076 = vrot.lane.b32.xlu1 %v3075_v11, %s7977_s18  ;;  %v3267_v17 = vmul.f32 %v3265_v41, %v6873_v19  ;;  %v3268_v11 = vmul.f32 %v3265_v41, %v6943_v24  ;;  %v3358_v41 = vstv %s7168_s5  ;;  %s7215_s5 = spop %4978  ;;  %v3449_v52 = vmul.f32 %v3447_v43, %v6873_v19 }
 0x456   : > { %s7219_s30 = spop %4980  ;;  %v3450_v44 = vmul.f32 %v3447_v43, %v6943_v24 }
 0x457   : > { %v3271_v26 = vrot.slane %v3267_v17, 3  ;;  %v3272_v42 = vrot.slane %v3268_v11, 3  ;;  %v3360_v17 = vmul.f32 %v3358_v41, %v6873_v19  ;;  %v3361_v11 = vmul.f32 %v3358_v41, %v6943_v24 }
 0x458   : > { %v3478_v41 = vstv %s7219_s30 }
 0x459   : > { %3107 = vrot.lane.b32.xlu0 %v3106_v2, %s7976_s4  ;;  %3154 = vrot.lane.b32.xlu1 %v3153_v55, %s7979_s29  ;;  %v3226_v2 = vsel %vm775_vm5, %v3224_v8, %v3225_v7  ;;  %v3298_v55 = vmul.f32 %v3296_v54, %v6873_v19  ;;  %v3318_v8 = vrot.slane %v3314_v46, 3  ;;  %v3345_v7 = vmul.f32 %v3342_v45, %v6982_v57 }
 0x45a   : > { %v3389_v54 = vstv %s7180_s1  ;;  %s7226_s1 = spop %4982  ;;  %v3434_v46 = vmul.f32 %v3431_v9, %v6982_v57  ;;  %v3462_v45 = vstv %s7215_s5 }
 0x45b   : > { %v3349_v50 = vrot.slane %v3345_v7, 3  ;;  %v3392_v16 = vmul.f32 %v3389_v54, %v6943_v24  ;;  %s7233_s2 = spop %4984  ;;  %v3464_v31 = vmul.f32 %v3462_v45, %v6885_v51  ;;  %v3465_v7 = vmul.f32 %v3462_v45, %v6982_v57 }
 0x45c   : > { %s7240_s21 = spop %4986  ;;  %v3493_v12 = vstv %s7226_s1 }
 0x45d   : > { %3996 = vrot.lane.b32.xlu0 %v3981_v21, %s7974_s20  ;;  %3138 = vrot.lane.b32.xlu1 %v3137_v36, %s7979_s29  ;;  %v3302_v36 = vrot.slane %v3298_v55, 3  ;;  %v3391_v55 = vmul.f32 %v3389_v54, %v6873_v19  ;;  %s7245_s5 = spop %4988  ;;  %v3468_v53 = vrot.slane %v3464_v31, 4  ;;  %v3495_v54 = vmul.f32 %v3493_v12, %v6885_v51 }
 0x45e   : > { %s7252_s30 = spop %4990  ;;  %v3469_v9 = vrot.slane %v3465_v7, 4 }
 0x45f   : > { %s7263_s1 = spop %4992 }
 0x461   : > { %3169 = vrot.lane.b32.xlu0 %v3168_v61, %s7978_s3  ;;  %4027 = vrot.lane.b32.xlu1 %v7150_v59, %s7974_s20  ;;  %v3273_v61 = vsel %vm775_vm5, %v3271_v26, %v3272_v42  ;;  %v3364_v26 = vrot.slane %v3360_v17, 3  ;;  %v3365_v42 = vrot.slane %v3361_v11, 3  ;;  %v3480_v17 = vmul.f32 %v3478_v41, %v6873_v19 }
 0x462   : > { %v3481_v11 = vmul.f32 %v3478_v41, %v6943_v24 }
 0x465   : > { %3185 = vrot.lane.b32.xlu0 %v3184_v28, %s7978_s3  ;;  %3227 = vrot.lane.b32.xlu1 %v3226_v2, %s7974_s20  ;;  %v3304_v28 = vsel %vm775_vm5, %v3302_v36, %v3303_v13  ;;  %v3319_v2 = vsel %vm775_vm5, %v3317_v0, %v3318_v8  ;;  %v3395_v36 = vrot.slane %v3391_v55, 3  ;;  %v3396_v13 = vrot.slane %v3392_v16, 3 }
 0x466   : > { %v3437_v0 = vrot.slane %v3433_v1, 4  ;;  %v3438_v8 = vrot.slane %v3434_v46, 4  ;;  %v3484_v55 = vrot.slane %v3480_v17, 4  ;;  %v3540_v1 = vstv %s7245_s5 }
 0x467   : > { %v3397_v10 = vsel %vm775_vm5, %v3395_v36, %v3396_v13 }
 0x469   : > { %3243 = vrot.lane.b32.xlu0 %v3242_v40, %s7974_s20  ;;  %3258 = vrot.lane.b32.xlu1 %v3257_v5, %s7975_s24  ;;  %v3335_v40 = vsel %vm775_vm5, %v3333_v22, %v3334_v39  ;;  %v3350_v5 = vsel %vm775_vm5, %v3348_v35, %v3349_v50  ;;  %v3453_v22 = vrot.slane %v3449_v52, 4  ;;  %v3454_v39 = vrot.slane %v3450_v44, 4 }
 0x46a   : > { %v3555_v52 = vstv %s7252_s30  ;;  %v3470_v44 = vsel %vm852_vm6, %v3468_v53, %v3469_v9 }
 0x46d   : > { %3274 = vrot.lane.b32.xlu0 %v3273_v61, %s7975_s24  ;;  %3289 = vrot.lane.b32.xlu1 %v3288_v58, %s7977_s18  ;;  %v3366_v61 = vsel %vm775_vm5, %v3364_v26, %v3365_v42  ;;  %v3381_v58 = vsel %vm775_vm5, %v3379_v49, %v3380_v62  ;;  %v3524_v26 = vstv %s7240_s21  ;;  %v3439_v42 = vsel %vm852_vm6, %v3437_v0, %v3438_v8 }
 0x46e   : > { %v3499_v62 = vrot.slane %v3495_v54, 4  ;;  %v3526_v46 = vmul.f32 %v3524_v26, %v6885_v51  ;;  %v3527_v13 = vmul.f32 %v3524_v26, %v6982_v57  ;;  %v3542_v0 = vmul.f32 %v3540_v1, %v6873_v19 }
 0x470   : > { %v3530_v7 = vrot.slane %v3526_v46, 4  ;;  %v3531_v17 = vrot.slane %v3527_v13, 4 }
 0x471   : > { %3305 = vrot.lane.b32.xlu0 %v3304_v28, %s7977_s18  ;;  %3320 = vrot.lane.b32.xlu1 %v3319_v2, %s7976_s4  ;;  %v3509_v28 = vstv %s7233_s2  ;;  %v3496_v2 = vmul.f32 %v3493_v12, %v6982_v57  ;;  %s7271_s2 = spop %4994  ;;  %v3557_v12 = vmul.f32 %v3555_v52, %v6885_v51 }
 0x472   : > { %v3511_v16 = vmul.f32 %v3509_v28, %v6873_v19  ;;  %v3512_v49 = vmul.f32 %v3509_v28, %v6943_v24  ;;  %s7276_s21 = spop %4996  ;;  %v3586_v53 = vstv %s7271_s2  ;;  %v3546_v28 = vrot.slane %v3542_v0, 4 }
 0x473   : > { %v3500_v36 = vrot.slane %v3496_v2, 4  ;;  %s7286_s5 = spop %4998  ;;  %v3602_v26 = vstv %s7276_s21  ;;  %v3589_v46 = vmul.f32 %v3586_v53, %v6982_v57 }
 0x474   : > { %v3515_v31 = vrot.slane %v3511_v16, 4  ;;  %v3516_v41 = vrot.slane %v3512_v49, 4  ;;  %s7290_s6 = spop %5000  ;;  %v3588_v16 = vmul.f32 %v3586_v53, %v6885_v51  ;;  %v3604_v13 = vmul.f32 %v3602_v26, %v6873_v19 }
 0x475   : > { %3336 = vrot.lane.b32.xlu0 %v3335_v40, %s7976_s4  ;;  %3351 = vrot.lane.b32.xlu1 %v3350_v5, %s7979_s29  ;;  %v3485_v40 = vrot.slane %v3481_v11, 4  ;;  %v3455_v5 = vsel %vm852_vm6, %v3453_v22, %v3454_v39  ;;  %v3558_v11 = vmul.f32 %v3555_v52, %v6982_v57  ;;  %s7301_s30 = spop %5002  ;;  %v3501_v54 = vsel %vm852_vm6, %v3499_v62, %v3500_v36 }
 0x476   : > { %v3645_v49 = vstv %s7301_s30  ;;  %v3532_v36 = vsel %vm852_vm6, %v3530_v7, %v3531_v17  ;;  %v3605_v52 = vmul.f32 %v3602_v26, %v6943_v24 }
 0x477   : > { %v3486_v39 = vsel %vm852_vm6, %v3484_v55, %v3485_v40  ;;  %v3561_v55 = vrot.slane %v3557_v12, 4  ;;  %v3517_v40 = vsel %vm852_vm6, %v3515_v31, %v3516_v41  ;;  %v3562_v62 = vrot.slane %v3558_v11, 4 }
 0x478   : > { %v3647_v31 = vmul.f32 %v3645_v49, %v6885_v51  ;;  %v3648_v7 = vmul.f32 %v3645_v49, %v6982_v57 }
 0x479   : > { %3367 = vrot.lane.b32.xlu0 %v3366_v61, %s7979_s29  ;;  %3382 = vrot.lane.b32.xlu1 %v3381_v58, %s7978_s3  ;;  %v3543_v61 = vmul.f32 %v3540_v1, %v6943_v24  ;;  %v3571_v58 = vstv %s7263_s1  ;;  %s7311_s1 = spop %5004  ;;  %v3563_v53 = vsel %vm852_vm6, %v3561_v55, %v3562_v62 }
 0x47a   : > { %v3573_v9 = vmul.f32 %v3571_v58, %v6873_v19  ;;  %v3574_v2 = vmul.f32 %v3571_v58, %v6943_v24  ;;  %s7320_s2 = spop %5006  ;;  %v3661_v12 = vstv %s7311_s1 }
 0x47b   : > { %v7254_v35 = vpop.permute.xlu0 %2675  ;;  %v7258_v50 = vpop.permute.xlu1 %2654  ;;  %s7327_s21 = spop %5008  ;;  %v3676_v17 = vstv %s7320_s2 }
 0x47c   : > { %v3578_v0 = vrot.slane %v3574_v2, 4  ;;  %s7333_s30 = spop %5010  ;;  %v3664_v2 = vmul.f32 %v3661_v12, %v6943_v24  ;;  %v3678_v49 = vmul.f32 %v3676_v17, %v6885_v51  ;;  %v3692_v34 = vstv %s7327_s21 }
 0x47d   : > { %3398 = vrot.lane.b32.xlu0 %v3397_v10, %s7978_s3  ;;  %3440 = vrot.lane.b32.xlu1 %v3439_v42, %s7974_s20  ;;  %v3547_v10 = vrot.slane %v3543_v61, 4  ;;  %v3592_v61 = vrot.slane %v3588_v16, 4  ;;  %v3652_v16 = vrot.slane %v3648_v7, 5  ;;  %v3707_v62 = vstv %s7333_s30 }
 0x47e   : > { %v3668_v51 = vrot.slane %v3664_v2, 5 }
 0x47f   : > { %v7273_v43 = vpop.permute.xlu0 %2717  ;;  %v7278_v45 = vpop.permute.xlu1 %2696  ;;  %v3548_v58 = vsel %vm852_vm6, %v3546_v28, %v3547_v10  ;;  %v3651_v28 = vrot.slane %v3647_v31, 5  ;;  %v7338_v10 = vld [vmem:[#allocation4] sm:$0xff]  ;;  %v7356_v31 = vld [vmem:[#allocation3] sm:$0xff] }
 0x481   : > { %3456 = vrot.lane.b32.xlu0 %v3455_v5, %s7974_s20  ;;  %3471 = vrot.lane.b32.xlu1 %v3470_v44, %s7975_s24  ;;  %v3577_v44 = vrot.slane %v3573_v9, 4  ;;  %v3663_v9 = vmul.f32 %v7338_v10, %v3661_v12  ;;  %v3710_v12 = vmul.f32 %v3707_v62, %v6982_v57 }
 0x483   : > { %v7292_v8 = vpop.permute.xlu0 %2759  ;;  %v7296_v22 = vpop.permute.xlu1 %2738 }
 0x485   : > { %3487 = vrot.lane.b32.xlu0 %v3486_v39, %s7975_s24  ;;  %3502 = vrot.lane.b32.xlu1 %v3501_v54, %s7977_s18  ;;  %v3593_v39 = vrot.slane %v3589_v46, 4  ;;  %v3609_v54 = vrot.slane %v3605_v52, 4 }
 0x487   : > { %v3752_v42 = vpop.permute.xlu0 %3751  ;;  %v2644_v1 = vpop.permute.xlu1 %2643 }
 0x488   : > { %v2646_v5 = vadd.f32 %v2644_v1, %v6902_v20  ;;  %v3579_v1 = vsel %vm852_vm6, %v3577_v44, %v3578_v0  ;;  %v3682_v44 = vrot.slane %v3678_v49, 5  ;;  %v3695_v0 = vmul.f32 %v3692_v34, %v6943_v24 }
 0x489   : > { %3518 = vrot.lane.b32.xlu0 %v3517_v40, %s7977_s18  ;;  %3533 = vrot.lane.b32.xlu1 %v3532_v36, %s7976_s4  ;;  %v3679_v40 = vmul.f32 %v3676_v17, %v6982_v57  ;;  %v3694_v36 = vmul.f32 %v7338_v10, %v3692_v34 }
 0x48a   : > { %v2657_v41 = vadd.f32 %v7258_v50, %v2646_v5  ;;  %v3608_v50 = vrot.slane %v3604_v13, 4  ;;  %v3594_v5 = vsel %vm852_vm6, %v3592_v61, %v3593_v39 }
 0x48b   : > { %v2665_v20 = vpop.permute.xlu0 %2664  ;;  %v3721_v19 = vpop.permute.xlu1 %3720  ;;  %v3683_v7 = vrot.slane %v3679_v40, 5 }
 0x48c   : > { %v2667_v11 = vadd.f32 %v2665_v20, %v2657_v41  ;;  %5012 = vpush %v3721_v19  ;;  %v3709_v41 = vmul.f32 %v7356_v31, %v3707_v62  ;;  %v3610_v61 = vsel %vm852_vm6, %v3608_v50, %v3609_v54  ;;  %v3698_v50 = vrot.slane %v3694_v36, 5 }
 0x48d   : > { %3549 = vrot.lane.b32.xlu0 %v3548_v58, %s7976_s4  ;;  %5014 = vpush %v3736_v25  ;;  %3564 = vrot.lane.b32.xlu1 %v3563_v53, %s7979_s29  ;;  %v2779_v58 = vstv %s6900_s23  ;;  %v3699_v54 = vrot.slane %v3695_v0, 5 }
 0x48e   : > { %v2678_v26 = vadd.f32 %v7254_v35, %v2667_v11  ;;  %5016 = vpush %v3752_v42  ;;  %v2765_v35 = vstv %s6893_s17  ;;  %v3667_v42 = vrot.slane %v3663_v9, 5  ;;  %v2782_v49 = vmul.f32 %v2779_v58, %v6943_v24 }
 0x48f   : > { %v2707_v55 = vpop.permute.xlu0 %2706  ;;  %5018 = vpush %v6967_v56  ;;  %v2686_v25 = vpop.permute.xlu1 %2685  ;;  %v2767_v39 = vmul.f32 %v7356_v31, %v2765_v35  ;;  %v2768_v53 = vmul.f32 %v2765_v35, %v6982_v57  ;;  %v3700_v62 = vsel %vm3623_vm9, %v3698_v50, %v3699_v54  ;;  %v2978_v54 = vstv %s7001_s25 }
 0x490   : > { %v2688_v46 = vadd.f32 %v2686_v25, %v2678_v26  ;;  %v3669_v2 = vsel %vm3623_vm9, %v3667_v42, %v3668_v51  ;;  %v3713_v26 = vrot.slane %v3709_v41, 5  ;;  %v2786_v42 = vrot.slane %v2782_v49, 1  ;;  %v7393_v49 = vld [vmem:[#allocation4 + $0x8] sm:$0x3f] }
 0x491   : > { %3580 = vrot.lane.b32.xlu0 %v3579_v1, %s7979_s29  ;;  %3595 = vrot.lane.b32.xlu1 %v3594_v5, %s7978_s3  ;;  %v2771_v25 = vrot.slane %v2767_v39, 1  ;;  %v2772_v1 = vrot.slane %v2768_v53, 1 }
 0x492   : > { %v2699_v13 = vadd.f32 %v7278_v45, %v2688_v46  ;;  %v3653_v45 = vsel %vm3623_vm9, %v3651_v28, %v3652_v16  ;;  %v3714_v28 = vrot.slane %v3710_v12, 5  ;;  %v2781_v16 = vmul.f32 %v7338_v10, %v2779_v58 }
 0x493   : > { %v2749_v52 = vpop.permute.xlu0 %2748  ;;  %v3783_v20 = vpop.permute.xlu1 %3782 }
 0x494   : > { %v2709_v19 = vadd.f32 %v2707_v55, %v2699_v13  ;;  %5020 = vpush %v3783_v20  ;;  %v3715_v5 = vsel %vm3623_vm9, %v3713_v26, %v3714_v28  ;;  %v2785_v35 = vrot.slane %v2781_v16, 1  ;;  %v2980_v26 = vmul.f32 %v7356_v31, %v2978_v54 }
 0x495   : > { %3611 = vrot.lane.b32.xlu0 %v3610_v61, %s7978_s3  ;;  %5022 = vpush %v3798_v30  ;;  %3654 = vrot.lane.b32.xlu1 %v3653_v45, %s7974_s20  ;;  %v3684_v30 = vsel %vm3623_vm9, %v3682_v44, %v3683_v7 }
 0x496   : > { %v2720_v17 = vadd.f32 %v7273_v43, %v2709_v19  ;;  %v2787_v44 = vsel %vm621_vm3, %v2785_v35, %v2786_v42 }
 0x497   : > { %v2818_v11 = vpop.permute.xlu0 %2817  ;;  %v2728_v9 = vpop.permute.xlu1 %2727 }
 0x498   : > { %v2730_v55 = vadd.f32 %v2728_v9, %v2720_v17 }
 0x499   : > { %3670 = vrot.lane.b32.xlu0 %v3669_v2, %s7974_s20  ;;  %3685 = vrot.lane.b32.xlu1 %v3684_v30, %s7975_s24 }
 0x49a   : > { %v2741_v43 = vadd.f32 %v7296_v22, %v2730_v55  ;;  %v2773_v22 = vsel %vm621_vm3, %v2771_v25, %v2772_v1  ;;  %v2992_v55 = vstv %s7008_s0  ;;  %v2984_v1 = vrot.slane %v2980_v26, 2 }
 0x49b   : > { %v2880_v34 = vpop.permute.xlu0 %2879  ;;  %v2849_v40 = vpop.permute.xlu1 %2848  ;;  %v2994_v16 = vmul.f32 %v7338_v10, %v2992_v55  ;;  %vm3837_vm3 = vcmask 1041408  }
 0x49c   : > { %v2751_v46 = vadd.f32 %v2749_v52, %v2741_v43  ;;  %v2995_v43 = vmul.f32 %v7393_v49, %v2992_v55 }
 0x49d   : > { %3701 = vrot.lane.b32.xlu0 %v3700_v62, %s7975_s24  ;;  %3716 = vrot.lane.b32.xlu1 %v3715_v5, %s7977_s18 }
 0x49e   : > { %v2762_v24 = vadd.f32 %v7292_v8, %v2751_v46  ;;  %v2999_v46 = vrot.slane %v2995_v43, 2 }
 0x49f   : > { %v2942_v51 = vpop.permute.xlu0 %2941  ;;  %v2911_v36 = vpop.permute.xlu1 %2910 }
 0x4a0   : > { %v2775_v13 = vadd.f32 %v2773_v22, %v2762_v24 }
 0x4a2   : > { %v2789_v0 = vadd.f32 %v2787_v44, %v2775_v13 }
 0x4a3   : > { %v2802_v41 = vpop.permute.xlu0 %2801  ;;  %v2973_v52 = vpop.permute.xlu1 %2972 }
 0x4a4   : > { %v2804_v20 = vadd.f32 %v2802_v41, %v2789_v0 }
 0x4a6   : > { %v2820_v61 = vadd.f32 %v2818_v11, %v2804_v20  ;;  %v7407_v20 = vld [vmem:[#allocation3 + $0x8] sm:$0x3f] }
 0x4a7   : > { %v3814_v7 = vpop.permute.xlu0 %3813  ;;  %v2833_v12 = vpop.permute.xlu1 %2832 }
 0x4a8   : > { %5024 = vpush %v3814_v7  ;;  %v2835_v19 = vadd.f32 %v2833_v12, %v2820_v61 }
 0x4a9   : > { %5026 = vpush %v3829_v23  ;;  %v2981_v23 = vmul.f32 %v2978_v54, %v6982_v57  ;;  %v2998_v57 = vrot.slane %v2994_v16, 2 }
 0x4aa   : > { %v2851_v8 = vadd.f32 %v2849_v40, %v2835_v19 }
 0x4ab   : > { %v2864_v45 = vpop.permute.xlu0 %2863  ;;  %v2895_v58 = vpop.permute.xlu1 %2894  ;;  %v2985_v40 = vrot.slane %v2981_v23, 2  ;;  %v3000_v22 = vsel %vm698_vm4, %v2998_v57, %v2999_v46 }
 0x4ac   : > { %v2866_v39 = vadd.f32 %v2864_v45, %v2851_v8 }
 0x4ad   : > { %v2986_v42 = vsel %vm698_vm4, %v2984_v1, %v2985_v40 }
 0x4ae   : > { %v2882_v17 = vadd.f32 %v2880_v34, %v2866_v39 }
 0x4af   : > { %v3844_v53 = vpop.permute.xlu0 %3843  ;;  %v3031_v50 = vpop.permute.xlu1 %3030 }
 0x4b0   : > { %5028 = vpush %v3844_v53  ;;  %v2897_v9 = vadd.f32 %v2895_v58, %v2882_v17 }
 0x4b1   : > { %5030 = vpush %v3857_v4 }
 0x4b2   : > { %v2913_v11 = vadd.f32 %v2911_v36, %v2897_v9 }
 0x4b3   : > { %v2926_v2 = vpop.permute.xlu0 %2925  ;;  %v3904_v28 = vpop.permute.xlu1 %3903 }
 0x4b4   : > { %v2928_v30 = vadd.f32 %v2926_v2, %v2913_v11 }
 0x4b6   : > { %v2944_v34 = vadd.f32 %v2942_v51, %v2928_v30 }
 0x4b7   : > { %v3873_v25 = vpop.permute.xlu0 %3872  ;;  %v2957_v4 = vpop.permute.xlu1 %2956 }
 0x4b8   : > { %5032 = vpush %v3873_v25  ;;  %v2959_v62 = vadd.f32 %v2957_v4, %v2944_v34 }
 0x4b9   : > { %5034 = vpush %v3888_v29 }
 0x4ba   : > { %5036 = vpush %v3904_v28  ;;  %v2975_v5 = vadd.f32 %v2973_v52, %v2959_v62 }
 0x4bb   : > { %5038 = vpush %v3919_v18  ;;  %v3062_v35 = vpop.permute.xlu0 %3061  ;;  %v7401_v24 = vpop.permute.xlu1 %3092 }
 0x4bc   : > { %v2988_v51 = vadd.f32 %v2986_v42, %v2975_v5 }
 0x4bd   : > { %s5013_s17 = spop %5012 }
 0x4be   : > { %v3002_v36 = vadd.f32 %v3000_v22, %v2988_v51  ;;  %v3723_v13 = vstv %s5013_s17  ;;  %s5015_s23 = spop %5014 }
 0x4bf   : > { %v3935_v29 = vpop.permute.xlu0 %3934  ;;  %v3725_v44 = vmul.f32 %v7338_v10, %v3723_v13  ;;  %v3726_v0 = vmul.f32 %v7393_v49, %v3723_v13  ;;  %v3738_v41 = vstv %s5015_s23  ;;  %s5017_s25 = spop %5016  ;;  %v3015_v18 = vpop.permute.xlu1 %3014 }
 0x4c0   : > { %5040 = vpush %v3935_v29  ;;  %v3740_v52 = vmul.f32 %v7356_v31, %v3738_v41  ;;  %v3741_v61 = vmul.f32 %v7407_v20, %v3738_v41  ;;  %v3754_v7 = vstv %s5017_s25  ;;  %s5019_s0 = spop %5018  ;;  %v3017_v12 = vadd.f32 %v3015_v18, %v3002_v36 }
 0x4c1   : > { %5042 = vpush %v3950_v15  ;;  %v3729_v19 = vrot.slane %v3725_v44, 5  ;;  %v3730_v8 = vrot.slane %v3726_v0, 5  ;;  %v3756_v45 = vmul.f32 %v7338_v10, %v3754_v7  ;;  %v3757_v58 = vmul.f32 %v7393_v49, %v3754_v7 }
 0x4c2   : > { %v3744_v39 = vrot.slane %v3740_v52, 5  ;;  %v3745_v17 = vrot.slane %v3741_v61, 5  ;;  %v3769_v53 = vstv %s5019_s0  ;;  %v3033_v54 = vadd.f32 %v3031_v50, %v3017_v12 }
 0x4c3   : > { %v3046_v9 = vpop.permute.xlu0 %3045  ;;  %v3760_v11 = vrot.slane %v3756_v45, 5  ;;  %v3761_v2 = vrot.slane %v3757_v58, 5  ;;  %v3771_v26 = vmul.f32 %v7356_v31, %v3769_v53  ;;  %v3772_v23 = vmul.f32 %v7407_v20, %v3769_v53  ;;  %v3966_v28 = vpop.permute.xlu1 %3965 }
 0x4c4   : > { %v3048_v55 = vadd.f32 %v3046_v9, %v3033_v54  ;;  %v3746_v15 = vsel %vm3623_vm9, %v3744_v39, %v3745_v17  ;;  %v3731_v30 = vsel %vm3623_vm9, %v3729_v19, %v3730_v8  ;;  %5044 = vpush %v3966_v28  ;;  %v3191_v18 = vstv %s7102_s16 }
 0x4c5   : > { %v3775_v16 = vrot.slane %v3771_v26, 5  ;;  %v3776_v43 = vrot.slane %v3772_v23, 5  ;;  %3747 = vrot.lane.b32.xlu1 %v3746_v15, %s7976_s4  ;;  %3732 = vrot.lane.b32.xlu0 %v3731_v30, %s7977_s18  ;;  %5046 = vpush %v3981_v21  ;;  %s5021_s1 = spop %5020  ;;  %v3762_v57 = vsel %vm3623_vm9, %v3760_v11, %v3761_v2  ;;  %v3205_v7 = vstv %s7105_s27 }
 0x4c6   : > { %v3064_v50 = vadd.f32 %v3062_v35, %v3048_v55  ;;  %v3785_v34 = vstv %s5021_s1  ;;  %s5023_s2 = spop %5022  ;;  %v3193_v19 = vmul.f32 %v7356_v31, %v3191_v18  ;;  %v3207_v45 = vmul.f32 %v7338_v10, %v3205_v7 }
 0x4c7   : > { %v3124_v25 = vpop.permute.xlu0 %3123  ;;  %v3787_v1 = vmul.f32 %v7338_v10, %v3785_v34  ;;  %v3788_v40 = vmul.f32 %v7393_v49, %v3785_v34  ;;  %v3800_v4 = vstv %s5023_s2  ;;  %v3077_v62 = vpop.permute.xlu1 %3076  ;;  %v3777_v21 = vsel %vm3623_vm9, %v3775_v16, %v3776_v43  ;;  %s4790_s2 = sshll.u32 %s5351_s22, 10 }
 0x4c8   : > { %v3802_v46 = vmul.f32 %v7356_v31, %v3800_v4  ;;  %v3803_v5 = vmul.f32 %v7407_v20, %v3800_v4  ;;  %v3079_v56 = vadd.f32 %v3077_v62, %v3064_v50  ;;  %v3208_v58 = vmul.f32 %v7393_v49, %v3205_v7 }
 0x4c9   : > { %v3791_v35 = vrot.slane %v3787_v1, 5  ;;  %v3792_v42 = vrot.slane %v3788_v40, 5  ;;  %3778 = vrot.lane.b32.xlu1 %v3777_v21, %s7979_s29  ;;  %3763 = vrot.lane.b32.xlu0 %v3762_v57, %s7976_s4  ;;  %v3197_v54 = vrot.slane %v3193_v19, 3  ;;  %v3211_v2 = vrot.slane %v3207_v45, 3 }
 0x4ca   : > { %v3806_v51 = vrot.slane %v3802_v46, 5  ;;  %v3807_v22 = vrot.slane %v3803_v5, 5  ;;  %v3095_v36 = vadd.f32 %v7401_v24, %v3079_v56  ;;  %v3194_v24 = vmul.f32 %v7407_v20, %v3191_v18 }
 0x4cb   : > { %v3108_v13 = vpop.permute.xlu0 %3107  ;;  %v3155_v29 = vpop.permute.xlu1 %3154  ;;  %v3793_v44 = vsel %vm3623_vm9, %v3791_v35, %v3792_v42  ;;  %v3212_v26 = vrot.slane %v3208_v58, 3 }
 0x4cc   : > { %v3110_v0 = vadd.f32 %v3108_v13, %v3095_v36  ;;  %v3808_v41 = vsel %vm3623_vm9, %v3806_v51, %v3807_v22  ;;  %v3198_v9 = vrot.slane %v3194_v24, 3 }
 0x4cd   : > { %3809 = vrot.lane.b32.xlu1 %v3808_v41, %s7978_s3  ;;  %3794 = vrot.lane.b32.xlu0 %v3793_v44, %s7979_s29  ;;  %v3213_v16 = vsel %vm775_vm5, %v3211_v2, %v3212_v26 }
 0x4ce   : > { %v3126_v52 = vadd.f32 %v3124_v25, %v3110_v0  ;;  %v3199_v15 = vsel %vm775_vm5, %v3197_v54, %v3198_v9 }
 0x4cf   : > { %v3997_v61 = vpop.permute.xlu0 %3996  ;;  %v3139_v12 = vpop.permute.xlu1 %3138 }
 0x4d0   : > { %5048 = vpush %v3997_v61  ;;  %v3141_v8 = vadd.f32 %v3139_v12, %v3126_v52 }
 0x4d1   : > { %5050 = vpush %v7150_v59 }
 0x4d2   : > { %v3157_v39 = vadd.f32 %v3155_v29, %v3141_v8  ;;  %v3404_v8 = vstv %s7187_s26 }
 0x4d3   : > { %v3170_v17 = vpop.permute.xlu0 %3169  ;;  %v4028_v53 = vpop.permute.xlu1 %4027  ;;  %v3406_v26 = vmul.f32 %v7356_v31, %v3404_v8 }
 0x4d4   : > { %5052 = vpush %v4028_v53  ;;  %v3172_v11 = vadd.f32 %v3170_v17, %v3157_v39  ;;  %v3418_v17 = vstv %s7194_s15 }
 0x4d7   : > { %v3186_v23 = vpop.permute.xlu0 %3185  ;;  %v3228_v55 = vpop.permute.xlu1 %3227 }
 0x4d8   : > { %v3188_v28 = vadd.f32 %v3186_v23, %v3172_v11  ;;  %v3407_v23 = vmul.f32 %v7407_v20, %v3404_v8 }
 0x4d9   : > { %s5025_s16 = spop %5024 }
 0x4da   : > { %v3201_v59 = vadd.f32 %v3199_v15, %v3188_v28  ;;  %v3816_v30 = vstv %s5025_s16  ;;  %s5027_s27 = spop %5026  ;;  %v7467_v28 = vmul.f32 %v7338_v10, %v3418_v17 }
 0x4db   : > { %v3818_v43 = vmul.f32 %v7338_v10, %v3816_v30  ;;  %v3819_v50 = vmul.f32 %v7393_v49, %v3816_v30  ;;  %v3831_v34 = vstv %s5027_s27  ;;  %v3244_v25 = vpop.permute.xlu0 %3243  ;;  %v3259_v62 = vpop.permute.xlu1 %3258 }
 0x4dc   : > { %v3215_v1 = vadd.f32 %v3213_v16, %v3201_v59  ;;  %v3833_v40 = vmul.f32 %v7356_v31, %v3831_v34  ;;  %v3834_v4 = vmul.f32 %v7407_v20, %v3831_v34  ;;  %v3421_v59 = vmul.f32 %v7393_v49, %v3418_v17 }
 0x4dd   : > { %v3822_v57 = vrot.slane %v3818_v43, 5  ;;  %v3823_v46 = vrot.slane %v3819_v50, 5 }
 0x4de   : > { %v3230_v5 = vadd.f32 %v3228_v55, %v3215_v1  ;;  %v3838_v56 = vrot.slane %v3833_v40, 6  ;;  %v3839_v21 = vrot.slane %v3834_v4, 6  ;;  %v3425_v8 = vrot.slane %v3421_v59, 4 }
 0x4df   : > { %v3275_v35 = vpop.permute.xlu0 %3274  ;;  %v3824_v42 = vsel %vm3623_vm9, %v3822_v57, %v3823_v46  ;;  %v3290_v22 = vpop.permute.xlu1 %3289 }
 0x4e0   : > { %v3246_v51 = vadd.f32 %v3244_v25, %v3230_v5  ;;  %3825 = vrot.lane.b32.xlu0 %v3824_v42, %s7978_s3  ;;  %v7451_v36 = vsel %vm3837_vm3, %v3838_v56, %v3839_v21 }
 0x4e1   : > { %s5029_s21 = spop %5028 }
 0x4e2   : > { %v3261_v13 = vadd.f32 %v3259_v62, %v3246_v51  ;;  %v3846_v29 = vstv %s5029_s21  ;;  %s5031_s30 = spop %5030 }
 0x4e3   : > { %v3848_v44 = vmul.f32 %v7338_v10, %v3846_v29  ;;  %v3849_v0 = vmul.f32 %v7393_v49, %v3846_v29  ;;  %v3859_v41 = vstv %s5031_s30  ;;  %v3306_v18 = vpop.permute.xlu0 %3305  ;;  %v3321_v12 = vpop.permute.xlu1 %3320  ;;  %s7990_s30 = sld [smem:[#allocation46_spill]] }
 0x4e4   : > { %v3277_v52 = vadd.f32 %v3275_v35, %v3261_v13  ;;  %v3861_v61 = vmul.f32 %v7356_v31, %v3859_v41  ;;  %v3862_v7 = vmul.f32 %v7407_v20, %v3859_v41 }
 0x4e5   : > { %v3852_v19 = vrot.slane %v3848_v44, 6  ;;  %v3853_v24 = vrot.slane %v3849_v0, 6 }
 0x4e6   : > { %v3292_v45 = vadd.f32 %v3290_v22, %v3277_v52  ;;  %v3865_v58 = vrot.slane %v3861_v61, 6  ;;  %v3866_v39 = vrot.slane %v3862_v7, 6  ;;  %v3410_v61 = vrot.slane %v3406_v26, 4 }
 0x4e7   : > { %v3337_v53 = vpop.permute.xlu0 %3336  ;;  %v7460_v54 = vsel %vm3837_vm3, %v3852_v19, %v3853_v24  ;;  %v3352_v11 = vpop.permute.xlu1 %3351  ;;  %v3411_v7 = vrot.slane %v3407_v23, 4  ;;  %v3424_v24 = vrot.slane %v7467_v28, 4 }
 0x4e8   : > { %v3308_v9 = vadd.f32 %v3306_v18, %v3292_v45  ;;  %v3867_v2 = vsel %vm3837_vm3, %v3865_v58, %v3866_v39 }
 0x4e9   : > { %3868 = vrot.lane.b32.xlu1 %v3867_v2, %s7974_s20  ;;  %s5033_s17 = spop %5032  ;;  %v3412_v28 = vsel %vm852_vm6, %v3410_v61, %v3411_v7 }
 0x4ea   : > { %v3323_v55 = vadd.f32 %v3321_v12, %v3308_v9  ;;  %v3875_v15 = vstv %s5033_s17  ;;  %s5035_s26 = spop %5034  ;;  %s7777_s17 = scalar_lea.hbm %s7990_s30, %s4790_s2 }
 0x4eb   : > { %v3877_v30 = vmul.f32 %v7338_v10, %v3875_v15  ;;  %v3878_v16 = vmul.f32 %v7393_v49, %v3875_v15  ;;  %v3890_v43 = vstv %s5035_s26  ;;  %s5037_s15 = spop %5036  ;;  %v3368_v50 = vpop.permute.xlu0 %3367  ;;  %v3383_v4 = vpop.permute.xlu1 %3382 }
 0x4ec   : > { %v3339_v34 = vadd.f32 %v3337_v53, %v3323_v55  ;;  %v3892_v25 = vmul.f32 %v7356_v31, %v3890_v43  ;;  %v3893_v1 = vmul.f32 %v7407_v20, %v3890_v43  ;;  %v3906_v40 = vstv %s5037_s15  ;;  %s5039_s23 = spop %5038 }
 0x4ed   : > { %v3881_v62 = vrot.slane %v3877_v30, 6  ;;  %v3882_v57 = vrot.slane %v3878_v16, 6  ;;  %v3908_v46 = vmul.f32 %v7338_v10, %v3906_v40  ;;  %v3909_v5 = vmul.f32 %v7393_v49, %v3906_v40 }
 0x4ee   : > { %v3354_v56 = vadd.f32 %v3352_v11, %v3339_v34  ;;  %v3896_v21 = vrot.slane %v3892_v25, 6  ;;  %v3897_v35 = vrot.slane %v3893_v1, 6  ;;  %v3921_v42 = vstv %s5039_s23  ;;  %s5247_s23 = smov [#allocation5]  }
 0x4ef   : > { %v3912_v51 = vrot.slane %v3908_v46, 6  ;;  %v3913_v22 = vrot.slane %v3909_v5, 6  ;;  %v3923_v13 = vmul.f32 %v7356_v31, %v3921_v42  ;;  %v3924_v29 = vmul.f32 %v7407_v20, %v3921_v42  ;;  %v3399_v44 = vpop.permute.xlu0 %3398  ;;  %v3441_v41 = vpop.permute.xlu1 %3440 }
 0x4f0   : > { %v3370_v0 = vadd.f32 %v3368_v50, %v3354_v56  ;;  %v3898_v18 = vsel %vm3837_vm3, %v3896_v21, %v3897_v35  ;;  %v3883_v52 = vsel %vm3837_vm3, %v3881_v62, %v3882_v57  ;;  %v3426_v34 = vsel %vm852_vm6, %v3424_v24, %v3425_v8 }
 0x4f1   : > { %v3927_v12 = vrot.slane %v3923_v13, 6  ;;  %v3928_v19 = vrot.slane %v3924_v29, 6  ;;  %3899 = vrot.lane.b32.xlu1 %v3898_v18, %s7975_s24  ;;  %3884 = vrot.lane.b32.xlu0 %v3883_v52, %s7974_s20  ;;  %s5041_s25 = spop %5040  ;;  %v3914_v11 = vsel %vm3837_vm3, %v3912_v51, %v3913_v22 }
 0x4f2   : > { %v3385_v45 = vadd.f32 %v3383_v4, %v3370_v0  ;;  %v3937_v58 = vstv %s5041_s25  ;;  %s5043_s0 = spop %5042  ;;  %s5178_s25 = sshll.u32 %s5247_s23, 4  ;;  %s5179_s25 = int_to_ptr.vmem [resolvable:$false] %s5178_s25 }
 0x4f3   : > { %v3939_v39 = vmul.f32 %v7338_v10, %v3937_v58  ;;  %v3940_v17 = vmul.f32 %v7393_v49, %v3937_v58  ;;  %v3952_v53 = vstv %s5043_s0  ;;  %v3457_v9 = vpop.permute.xlu0 %3456  ;;  %v3929_v55 = vsel %vm3837_vm3, %v3927_v12, %v3928_v19  ;;  %v3472_v30 = vpop.permute.xlu1 %3471  ;;  %s5180_s0 = scalar_lea.vmem %s5179_s25, 2048 }
 0x4f4   : > { %v3401_v2 = vadd.f32 %v3399_v44, %v3385_v45  ;;  %v3954_v26 = vmul.f32 %v7356_v31, %v3952_v53  ;;  %v3955_v23 = vmul.f32 %v7407_v20, %v3952_v53 }
 0x4f5   : > { %v3943_v15 = vrot.slane %v3939_v39, 6  ;;  %v3944_v59 = vrot.slane %v3940_v17, 6  ;;  %3930 = vrot.lane.b32.xlu1 %v3929_v55, %s7977_s18  ;;  %3915 = vrot.lane.b32.xlu0 %v3914_v11, %s7975_s24  ;;  %s5045_s20 = spop %5044 }
 0x4f6   : > { %v3414_v16 = vadd.f32 %v3412_v28, %v3401_v2  ;;  %v3958_v43 = vrot.slane %v3954_v26, 6  ;;  %v3959_v50 = vrot.slane %v3955_v23, 6  ;;  %v3968_v25 = vstv %s5045_s20  ;;  %s5047_s1 = spop %5046 }
 0x4f7   : > { %v3488_v1 = vpop.permute.xlu0 %3487  ;;  %v3945_v40 = vsel %vm3837_vm3, %v3943_v15, %v3944_v59  ;;  %v3970_v62 = vmul.f32 %v7338_v10, %v3968_v25  ;;  %v3971_v57 = vmul.f32 %v7393_v49, %v3968_v25  ;;  %v3983_v46 = vstv %s5047_s1  ;;  %v3503_v29 = vpop.permute.xlu1 %3502 }
 0x4f8   : > { %v3428_v4 = vadd.f32 %v3426_v34, %v3414_v16  ;;  %v3985_v5 = vmul.f32 %v7356_v31, %v3983_v46  ;;  %v3986_v56 = vmul.f32 %v7407_v20, %v3983_v46  ;;  %v3960_v21 = vsel %vm3837_vm3, %v3958_v43, %v3959_v50 }
 0x4f9   : > { %3946 = vrot.lane.b32.xlu0 %v3945_v40, %s7977_s18  ;;  %v3974_v42 = vrot.slane %v3970_v62, 6  ;;  %v3975_v51 = vrot.slane %v3971_v57, 6  ;;  %3961 = vrot.lane.b32.xlu1 %v3960_v21, %s7976_s4  ;;  %v3617_v2 = vstv %s7286_s5  ;;  %v3632_v28 = vstv %s7290_s6 }
 0x4fa   : > { %v3443_v35 = vadd.f32 %v3441_v41, %v3428_v4  ;;  %v3989_v22 = vrot.slane %v3985_v5, 6  ;;  %v3990_v13 = vrot.slane %v3986_v56, 6  ;;  %v3619_v25 = vmul.f32 %v7356_v31, %v3617_v2 }
 0x4fb   : > { %v3976_v0 = vsel %vm3837_vm3, %v3974_v42, %v3975_v51  ;;  %v3519_v18 = vpop.permute.xlu0 %3518  ;;  %v3534_v7 = vpop.permute.xlu1 %3533  ;;  %v3634_v46 = vmul.f32 %v7338_v10, %v3632_v28  ;;  %v3635_v5 = vmul.f32 %v7393_v49, %v3632_v28 }
 0x4fc   : > { %v3459_v44 = vadd.f32 %v3457_v9, %v3443_v35  ;;  %v3991_v52 = vsel %vm3837_vm3, %v3989_v22, %v3990_v13  ;;  %v3624_v35 = vrot.slane %v3619_v25, 5 }
 0x4fd   : > { %3977 = vrot.lane.b32.xlu0 %v3976_v0, %s7976_s4  ;;  %3992 = vrot.lane.b32.xlu1 %v3991_v52, %s7979_s29  ;;  %v3639_v22 = vrot.slane %v3635_v5, 5 }
 0x4fe   : > { %v3474_v61 = vadd.f32 %v3472_v30, %v3459_v44 }
 0x4ff   : > { %v3550_v24 = vpop.permute.xlu0 %3549  ;;  %v3565_v15 = vpop.permute.xlu1 %3564 }
 0x500   : > { %v3490_v41 = vadd.f32 %v3488_v1, %v3474_v61  ;;  %v3620_v1 = vmul.f32 %v7407_v20, %v3617_v2 }
 0x501   : > { %s5049_s18 = spop %5048 }
 0x502   : > { %v3505_v12 = vadd.f32 %v3503_v29, %v3490_v41  ;;  %v3999_v19 = vstv %s5049_s18  ;;  %s5051_s24 = spop %5050  ;;  %v3625_v42 = vrot.slane %v3620_v1, 5 }
 0x503   : > { %v4001_v8 = vmul.f32 %v7338_v10, %v3999_v19  ;;  %v4002_v45 = vmul.f32 %v7393_v49, %v3999_v19  ;;  %v4014_v58 = vstv %s5051_s24  ;;  %v3581_v40 = vpop.permute.xlu0 %3580  ;;  %v3596_v51 = vpop.permute.xlu1 %3595  ;;  %s485_s24 = sand.u32 1, %s5228_s19  }
 0x504   : > { %v3521_v39 = vadd.f32 %v3519_v18, %v3505_v12  ;;  %v4016_v17 = vmul.f32 %v7356_v31, %v4014_v58  ;;  %v4017_v53 = vmul.f32 %v7407_v20, %v4014_v58  ;;  %v3638_v20 = vrot.slane %v3634_v46, 5  ;;  %s7791_s26 = scalar_lea.sflag [#allocation6], %s485_s24 }
 0x505   : > { %v4005_v9 = vrot.slane %v4001_v8, 6  ;;  %v4006_v11 = vrot.slane %v4002_v45, 6  ;;  %s5053_s4 = spop %5052  ;;  %v3626_v44 = vsel %vm3623_vm9, %v3624_v35, %v3625_v42 }
 0x506   : > { %v3536_v26 = vadd.f32 %v3534_v7, %v3521_v39  ;;  %v4020_v23 = vrot.slane %v4016_v17, 6  ;;  %v4021_v55 = vrot.slane %v4017_v53, 6  ;;  %v4030_v59 = vstv %s5053_s4 }
 0x507   : > { %v4007_v30 = vsel %vm3837_vm3, %v4005_v9, %v4006_v11  ;;  %v4032_v43 = vmul.f32 %v7338_v10, %v4030_v59  ;;  %v4033_v50 = vmul.f32 %v7393_v49, %v4030_v59  ;;  %v3612_v13 = vpop.permute.xlu0 %3611  ;;  %v3640_v10 = vsel %vm3623_vm9, %v3638_v20, %v3639_v22  ;;  %v3655_v49 = vpop.permute.xlu1 %3654 }
 0x508   : > { %v3552_v16 = vadd.f32 %v3550_v24, %v3536_v26  ;;  %v4022_v34 = vsel %vm3837_vm3, %v4020_v23, %v4021_v55  ;;  %4008 = vrot.lane.b32.xlu0 %v4007_v30, %s7979_s29 }
 0x509   : > { %4023 = vrot.lane.b32.xlu1 %v4022_v34, %s7978_s3  ;;  %v4036_v62 = vrot.slane %v4032_v43, 6  ;;  %v4037_v57 = vrot.slane %v4033_v50, 6 }
 0x50a   : > { %v3567_v4 = vadd.f32 %v3565_v15, %v3552_v16 }
 0x50b   : > { %v4038_v21 = vsel %vm3837_vm3, %v4036_v62, %v4037_v57  ;;  %v3671_v61 = vpop.permute.xlu0 %3670  ;;  %v3686_v7 = vpop.permute.xlu1 %3685 }
 0x50c   : > { %v3583_v56 = vadd.f32 %v3581_v40, %v3567_v4  ;;  %4039 = vrot.lane.b32.xlu0 %v4038_v21, %s7978_s3  ;;  %s4755_s3 = sshll.u32 %s485_s24, 6 }
 0x50d   : > { %s487_s16 = scalar_lea.vmem [#allocation5], %s4755_s3 }
 0x50e   : > { %v3598_v31 = vadd.f32 %v3596_v51, %v3583_v56  ;;  %s4689_s27 = sshll.u32 %s487_s16, 4  ;;  %s7779_s27 = int_to_ptr.vmem [resolvable:$true] %s4689_s27 }
 0x50f   : > { %v3702_v19 = vpop.permute.xlu0 %3701  ;;  %v3717_v8 = vpop.permute.xlu1 %3716  ;;  %s5174_s15 = scalar_lea.vmem %s7779_s27, 1024  ;;  %p5181_p0 = scmp.lt.s32.totalorder %s7779_s27, %s5179_s25 }
 0x510   : > { %v3614_v29 = vadd.f32 %v3612_v13, %v3598_v31  ;;  %p5175_p11 = scmp.ne.s32.totalorder %s7779_s27, %s5174_s15  ;;  %p5182_p1 = scmp.lt.s32.totalorder %s5180_s0, %s5174_s15 }
 0x512   : > { %v3628_v0 = vadd.f32 %v3626_v44, %v3614_v29  ;;  %p5176_p12 = pnand %p5175_p11, %p5368_p5  ;;  %p5183_p2 = por %p5182_p1, %p5181_p0 }
 0x514   : > { %v3642_v18 = vadd.f32 %v3640_v10, %v3628_v0  ;;  %p5177_p13 = pneg %p5176_p12 }
 0x516   : > { %v3657_v52 = vadd.f32 %v3655_v49, %v3642_v18  ;;  %p5184_p3 = pnand %p5183_p2, %p5177_p13 }
 0x518   : > { %v3673_v41 = vadd.f32 %v3671_v61, %v3657_v52  ;;  %v5104_v52 = vld [vmem:[%s7839_s7] sm:$0xff]  }
 0x519   : > { %4821 = vmatprep.subr.bf16.mxu1 %v5104_v52 }
 0x51a   : > { %v3688_v12 = vadd.f32 %v3686_v7, %v3673_v41  ;;  %4822 = vmatpush3.bf16.msra.mxu1 %v5104_v52 }
 0x51c   : > { %v3704_v24 = vadd.f32 %v3702_v19, %v3688_v12  ;;  %v7980_v12 = vld [vmem:[#allocation18_spill] sm:$0xff] }
 0x51e   : > { %v3719_v58 = vadd.f32 %v3717_v8, %v3704_v24  ;;  %v7981_v24 = vld [vmem:[#allocation17_spill] sm:$0xff] }
 0x537   : > { %v3733_v45 = vpop.permute.xlu0 %3732  ;;  %v3748_v17 = vpop.permute.xlu1 %3747 }
 0x538   : > { %v3735_v39 = vadd.f32 %v3733_v45, %v3719_v58  ;;  %v7982_v45 = vld [vmem:[#allocation20_spill] sm:$0xff] }
 0x53a   : > { %v3750_v53 = vadd.f32 %v3748_v17, %v3735_v39  ;;  %v7983_v39 = vld [vmem:[#allocation19_spill] sm:$0xff] }
 0x53b   : > { %v3764_v9 = vpop.permute.xlu0 %3763  ;;  %v3779_v2 = vpop.permute.xlu1 %3778 }
 0x53c   : > { %v3766_v11 = vadd.f32 %v3764_v9, %v3750_v53 }
 0x53e   : > { %v3781_v26 = vadd.f32 %v3779_v2, %v3766_v11 }
 0x53f   : > { %v3795_v23 = vpop.permute.xlu0 %3794  ;;  %v3810_v28 = vpop.permute.xlu1 %3809 }
 0x540   : > { %v3797_v55 = vadd.f32 %v3795_v23, %v3781_v26 }
 0x542   : > { %v3812_v15 = vadd.f32 %v3810_v28, %v3797_v55 }
 0x552   : > { %v3826_v59 = vpop.permute.xlu0 %3825 }
 0x553   : > { %v3828_v30 = vadd.f32 %v3826_v59, %v3812_v15 }
 0x555   : > { %v3842_v16 = vadd.f32 %v7451_v36, %v3828_v30 }
 0x557   : > { %v3856_v43 = vadd.f32 %v7460_v54, %v3842_v16 }
 0x55b   : > { %v3869_v50 = vpop.permute.xlu1 %3868 }
 0x55c   : > { %v3871_v34 = vadd.f32 %v3869_v50, %v3856_v43 }
 0x563   : > { %v3885_v25 = vpop.permute.xlu0 %3884  ;;  %v3900_v1 = vpop.permute.xlu1 %3899 }
 0x564   : > { %v3887_v40 = vadd.f32 %v3885_v25, %v3871_v34 }
 0x566   : > { %v3902_v4 = vadd.f32 %v3900_v1, %v3887_v40 }
 0x567   : > { %v3916_v62 = vpop.permute.xlu0 %3915  ;;  %v3931_v46 = vpop.permute.xlu1 %3930 }
 0x568   : > { %v3918_v57 = vadd.f32 %v3916_v62, %v3902_v4 }
 0x56a   : > { %v3933_v5 = vadd.f32 %v3931_v46, %v3918_v57 }
 0x56b   : > { %v3947_v56 = vpop.permute.xlu0 %3946  ;;  %v3962_v35 = vpop.permute.xlu1 %3961 }
 0x56c   : > { %v3949_v21 = vadd.f32 %v3947_v56, %v3933_v5 }
 0x56e   : > { %v3964_v42 = vadd.f32 %v3962_v35, %v3949_v21 }
 0x56f   : > { %v3978_v51 = vpop.permute.xlu0 %3977  ;;  %v3993_v20 = vpop.permute.xlu1 %3992 }
 0x570   : > { %v3980_v31 = vadd.f32 %v3978_v51, %v3964_v42 }
 0x572   : > { %v3995_v36 = vadd.f32 %v3993_v20, %v3980_v31 }
 0x57a   : > { %v4009_v22 = vpop.permute.xlu0 %4008 }
 0x57b   : > { %v4011_v54 = vadd.f32 %v4009_v22, %v3995_v36  ;;  %v4024_v13 = vpop.permute.xlu1 %4023 }
 0x57d   : > { %v4026_v29 = vadd.f32 %v4024_v13, %v4011_v54 }
 0x57e   : > { %v4040_v44 = vpop.permute.xlu0 %4039 }
 0x57f   : > { %v4042_v0 = vadd.f32 %v4040_v44, %v4026_v29 }
 0x581   : > { %v4765_v10 = vmul.f32 -1.442695, %v4042_v0 }
 0x583   : > { %5113 = vpow2.f32 %v4765_v10 }
 0x58d   : > { %v5114_v18 = vpop.eup %5113 }
 0x58e   : > { %v4046_v49 = vadd.f32 1.0, %v5114_v18 }
 0x590   : > { %5115 = vrcp.f32 %v4046_v49 }
 0x59a   : > { %v5116_v61 = vpop.eup %5115 }
 0x59b   : > { %v4059_v41 = vrot.slane %v5116_v61, %v7962_v37  ;;  %v4052_v7 = vrot.slane %v5116_v61, %v7961_v47  ;;  %v4073_v19 = vrot.slane %v5116_v61, %v7980_v12  ;;  %v4066_v8 = vrot.slane %v5116_v61, %v7981_v24 }
 0x59c   : > { %v4087_v58 = vrot.slane %v5116_v61, %v7982_v45  ;;  %v4080_v17 = vrot.slane %v5116_v61, %v7983_v39  ;;  %v4101_v53 = vrot.slane %v5116_v61, %v7960_v48  ;;  %v4094_v37 = vrot.slane %v5116_v61, %v7959_v60 }
 0x59d   : > { %4061 = vbcast.lane.b32.xlu0 %v4059_v41, 256  ;;  %4054 = vbcast.lane.b32.xlu1 %v4052_v7, 256 }
 0x5a1   : > { %4075 = vbcast.lane.b32.xlu0 %v4073_v19, 256  ;;  %4068 = vbcast.lane.b32.xlu1 %v4066_v8, 256 }
 0x5a5   : > { %4089 = vbcast.lane.b32.xlu0 %v4087_v58, 256  ;;  %4082 = vbcast.lane.b32.xlu1 %v4080_v17, 256 }
 0x5a9   : > { %4103 = vbcast.lane.b32.xlu0 %v4101_v53, 256  ;;  %4096 = vbcast.lane.b32.xlu1 %v4094_v37, 256 }
 0x60f   : > { %v4062_v9 = vpop.permute.xlu0 %4061  ;;  %v4055_v11 = vpop.permute.xlu1 %4054 }
 0x610   : > { %v4106_v2 = vmul.f32 %v4062_v9, %v6645_v14  ;;  %v4105_v26 = vmul.f32 %v4055_v11, %v6648_v3 }
 0x612   : > { %v4113_v23 = vpack.c.bf16 %v4106_v2, %v4105_v26 }
 0x613   : > { %v4076_v55 = vpop.permute.xlu0 %4075  ;;  %v4069_v28 = vpop.permute.xlu1 %4068 }
 0x614   : > { %v4108_v15 = vmul.f32 %v4076_v55, %v6665_v27  ;;  %v4107_v59 = vmul.f32 %v4069_v28, %v6655_v6  ;;  %4823 = vmatprep.mubr.msk.bf16.mxu1 %vm502_vm1, %v4113_v23 }
 0x616   : > { %v4114_v48 = vpack.c.bf16 %v4108_v15, %v4107_v59 }
 0x617   : > { %v4090_v30 = vpop.permute.xlu0 %4089  ;;  %v4083_v60 = vpop.permute.xlu1 %4082 }
 0x618   : > { %v4110_v16 = vmul.f32 %v4090_v30, %v6662_v33  ;;  %v4109_v43 = vmul.f32 %v4083_v60, %v6675_v63  ;;  %4824 = vmatmul.mubr.msk.bf16.vlgmr.msra.gmra.mrb[4].mxu1 %vm502_vm1, %v4114_v48  ;;  %v4766_v33 = vld [vmem:[%s7840_s8] ss:$0 sm:$0xff] }
 0x61a   : > { %v4115_v14 = vpack.c.bf16 %v4110_v16, %v4109_v43 }
 0x61b   : > { %v4104_v3 = vpop.permute.xlu0 %4103  ;;  %v4097_v50 = vpop.permute.xlu1 %4096 }
 0x61c   : > { %v4112_v34 = vmul.f32 %v4104_v3, %v6672_v32  ;;  %v4111_v27 = vmul.f32 %v4097_v50, %v6688_v38  ;;  %4827 = vmatprep.mubr.msk.bf16.mxu1 %vm502_vm1, %v4115_v14 }
 0x61e   : > { %v4116_v6 = vpack.c.bf16 %v4112_v34, %v4111_v27 }
 0x620   : > { %4828 = vmatmul.mubr.msk.bf16.gmra.mrb[8].mxu1 %vm502_vm1, %v4116_v6 }
 0x6eb   : > { %v4825_v25 = vpop.f32.mrb[4].mxu1 }
 0x6ec   : > { %v4187_v63 = vadd.f32 %v4825_v25, %v4766_v33  ;;  %v4178_v1 = vpop.f32.mrb[5].mxu1 }
 0x6ed   : > { %v7553_v40 = vadd.f32 %v4766_v33, %v4178_v1  ;;  %v4826_v4 = vpop.f32.mrb[6].mxu1 }
 0x6ee   : > { %v7555_v62 = vmul.f32 0.70710677, %v4187_v63  ;;  %v7557_v32 = vadd.f32 %v4826_v4, %v4766_v33  ;;  %v4181_v38 = vpop.f32.mrb[7].mxu1  ;;  %v7604_v30 = vmul.f32 0.5, %v4187_v63 }
 0x6ef   : > { %v7560_v57 = vmul.f32 0.70710677, %v7553_v40  ;;  %v7562_v46 = vadd.f32 %v4766_v33, %v4181_v38 }
 0x6f0   : > { %v4227_v5 = vand.u32 2147483647, %v7555_v62  ;;  %v7566_v56 = vmul.f32 0.70710677, %v7557_v32  ;;  %vm4387_vm4 = vcmp.ge.f32.partialorder %v7555_v62, 0.0 }
 0x6f1   : > { %v4225_v21 = vand.u32 2147483647, %v7560_v57  ;;  %v7570_v35 = vmul.f32 0.70710677, %v7562_v46  ;;  %vm4385_vm5 = vcmp.ge.f32.partialorder %v7560_v57, 0.0 }
 0x6f2   : > { %v4235_v42 = vmul.f32 0.3275911, %v4227_v5  ;;  %v4228_v51 = vand.u32 2147483647, %v7566_v56  ;;  %v4339_v19 = vsub.f32 0.0, %v4227_v5  ;;  %vm4388_vm6 = vcmp.ge.f32.partialorder %v7566_v56, 0.0 }
 0x6f3   : > { %v4233_v31 = vmul.f32 0.3275911, %v4225_v21  ;;  %v4226_v20 = vand.u32 2147483647, %v7570_v35  ;;  %v4829_v54 = vpop.f32.mrb[8].mxu1  ;;  %v4337_v45 = vsub.f32 0.0, %v4225_v21 }
 0x6f4   : > { %v4243_v36 = vadd.f32 1.0, %v4235_v42  ;;  %v4236_v22 = vmul.f32 0.3275911, %v4228_v51  ;;  %v4194_v44 = vpop.f32.mrb[9].mxu1  ;;  %v7574_v52 = vadd.f32 %v4829_v54, %v4766_v33  ;;  %v4340_v39 = vsub.f32 0.0, %v4228_v51 }
 0x6f5   : > { %v4241_v13 = vadd.f32 1.0, %v4233_v31  ;;  %v4234_v29 = vmul.f32 0.3275911, %v4226_v20  ;;  %v4830_v10 = vpop.f32.mrb[10].mxu1  ;;  %v7576_v61 = vadd.f32 %v4766_v33, %v4194_v44  ;;  %v4347_v11 = vmul.f32 %v4339_v19, %v4227_v5 }
 0x6f6   : > { %5117 = vrcp.f32 %v4243_v36  ;;  %v4244_v0 = vadd.f32 1.0, %v4236_v22  ;;  %v4197_v18 = vpop.f32.mrb[11].mxu1  ;;  %v7578_v41 = vadd.f32 %v4830_v10, %v4766_v33  ;;  %v7581_v7 = vmul.f32 0.70710677, %v7574_v52 }
 0x6f7   : > { %5119 = vrcp.f32 %v4241_v13  ;;  %v4242_v49 = vadd.f32 1.0, %v4234_v29  ;;  %v7583_v12 = vadd.f32 %v4766_v33, %v4197_v18  ;;  %v7586_v24 = vmul.f32 0.70710677, %v7576_v61 }
 0x6f8   : > { %5121 = vrcp.f32 %v4244_v0  ;;  %v7589_v8 = vmul.f32 0.70710677, %v7578_v41  ;;  %v4231_v58 = vand.u32 2147483647, %v7581_v7  ;;  %v4345_v55 = vmul.f32 %v4337_v45, %v4225_v21 }
 0x6f9   : > { %5123 = vrcp.f32 %v4242_v49  ;;  %v4229_v17 = vand.u32 2147483647, %v7586_v24  ;;  %v7595_v9 = vmul.f32 0.70710677, %v7583_v12  ;;  %v4338_v28 = vsub.f32 0.0, %v4226_v20 }
 0x6fa   : > { %v4232_v53 = vand.u32 2147483647, %v7589_v8  ;;  %v4239_v37 = vmul.f32 0.3275911, %v4231_v58  ;;  %v4348_v16 = vmul.f32 %v4340_v39, %v4228_v51  ;;  %v4343_v3 = vsub.f32 0.0, %v4231_v58 }
 0x6fb   : > { %v4237_v2 = vmul.f32 0.3275911, %v4229_v17  ;;  %v7600_v59 = vand.u32 2147483647, %v7595_v9  ;;  %v4357_v27 = vmul.f32 1.442695, %v4347_v11  ;;  %v4346_v63 = vmul.f32 %v4338_v28, %v4226_v20 }
 0x6fc   : > { %v4240_v26 = vmul.f32 0.3275911, %v4232_v53  ;;  %v4247_v15 = vadd.f32 1.0, %v4239_v37  ;;  %v4353_v1 = vmul.f32 1.442695, %v4345_v55  ;;  %v4341_v4 = vsub.f32 0.0, %v4229_v17 }
 0x6fd   : > { %v4245_v43 = vadd.f32 1.0, %v4237_v2  ;;  %v4238_v6 = vmul.f32 0.3275911, %v7600_v59  ;;  %v4359_v21 = vmul.f32 1.442695, %v4348_v16  ;;  %v4351_v36 = vmul.f32 %v4343_v3, %v4231_v58 }
 0x6fe   : > { %5125 = vrcp.f32 %v4247_v15  ;;  %v4248_v50 = vadd.f32 1.0, %v4240_v26  ;;  %v4344_v22 = vsub.f32 0.0, %v4232_v53  ;;  %v4355_v44 = vmul.f32 1.442695, %v4346_v63 }
 0x6ff   : > { %5127 = vrcp.f32 %v4245_v43  ;;  %v4246_v42 = vadd.f32 1.0, %v4238_v6  ;;  %v4349_v0 = vmul.f32 %v4341_v4, %v4229_v17  ;;  %v7620_v19 = vmul.f32 0.5, %v7553_v40 }
 0x700   : > { %v7597_v23 = vpop.eup %5117  ;;  %5129 = vrcp.f32 %v4248_v50  ;;  %v4365_v58 = vmul.f32 1.442695, %v4351_v36  ;;  %v4352_v39 = vmul.f32 %v4344_v22, %v4232_v53  ;;  %v4342_v28 = vsub.f32 0.0, %v7600_v59 }
 0x701   : > { %v7602_v48 = vpop.eup %5119  ;;  %v4267_v60 = vmul.f32 1.0614054, %v7597_v23  ;;  %5131 = vpow2.f32 %v4357_v27  ;;  %v4361_v55 = vmul.f32 1.442695, %v4349_v0  ;;  %vm4386_vm10 = vcmp.ge.f32.partialorder %v7570_v35, 0.0 }
 0x702   : > { %v4265_v14 = vmul.f32 1.0614054, %v7602_v48  ;;  %v7609_v33 = vpop.eup %5121  ;;  %5133 = vrcp.f32 %v4246_v42  ;;  %v4367_v3 = vmul.f32 1.442695, %v4352_v39  ;;  %v4350_v4 = vmul.f32 %v4342_v28, %v7600_v59 }
 0x703   : > { %v4275_v34 = vadd.f32 -1.4531521, %v4267_v60  ;;  %v4268_v5 = vmul.f32 1.0614054, %v7609_v33  ;;  %v7613_v51 = vpop.eup %5123  ;;  %5135 = vpow2.f32 %v4353_v1  ;;  %v4210_v35 = vmul.f32 0.5, %v7562_v46 }
 0x704   : > { %v4273_v25 = vadd.f32 -1.4531521, %v4265_v14  ;;  %v4266_v29 = vmul.f32 1.0614054, %v7613_v51  ;;  %5137 = vpow2.f32 %v4359_v21  ;;  %vm4389_vm12 = vcmp.ge.f32.partialorder %v7586_v24, 0.0 }
 0x705   : > { %v4283_v38 = vmul.f32 %v7597_v23, %v4275_v34  ;;  %v4276_v13 = vadd.f32 -1.4531521, %v4268_v5  ;;  %5139 = vpow2.f32 %v4355_v44  ;;  %vm4391_vm13 = vcmp.ge.f32.partialorder %v7581_v7, 0.0 }
 0x706   : > { %v4281_v31 = vmul.f32 %v7602_v48, %v4273_v25  ;;  %v4274_v49 = vadd.f32 -1.4531521, %v4266_v29  ;;  %5141 = vpow2.f32 %v4365_v58  ;;  %vm4392_vm14 = vcmp.ge.f32.partialorder %v7589_v8, 0.0 }
 0x707   : > { %v4291_v54 = vadd.f32 1.4214138, %v4283_v38  ;;  %v4284_v18 = vmul.f32 %v7609_v33, %v4276_v13  ;;  %5143 = vpow2.f32 %v4361_v55  ;;  %vm4390_vm15 = vcmp.ge.f32.partialorder %v7595_v9, 0.0 }
 0x708   : > { %v4289_v20 = vadd.f32 1.4214138, %v4281_v31  ;;  %v4282_v2 = vmul.f32 %v7613_v51, %v4274_v49  ;;  %v7624_v17 = vpop.eup %5125  ;;  %5145 = vpow2.f32 %v4367_v3 }
 0x709   : > { %v4299_v10 = vmul.f32 %v7597_v23, %v4291_v54  ;;  %v4292_v11 = vadd.f32 1.4214138, %v4284_v18  ;;  %v7627_v15 = vpop.eup %5127  ;;  %v4271_v53 = vmul.f32 1.0614054, %v7624_v17 }
 0x70a   : > { %v4297_v45 = vmul.f32 %v7602_v48, %v4289_v20  ;;  %v4290_v16 = vadd.f32 1.4214138, %v4282_v2  ;;  %v4269_v14 = vmul.f32 1.0614054, %v7627_v15  ;;  %v7635_v25 = vpop.eup %5129 }
 0x70b   : > { %v4307_v37 = vadd.f32 -0.28449672, %v4299_v10  ;;  %v4300_v60 = vmul.f32 %v7609_v33, %v4292_v11  ;;  %v4279_v6 = vadd.f32 -1.4531521, %v4271_v53  ;;  %v5132_v38 = vpop.eup %5131  ;;  %v4272_v59 = vmul.f32 1.0614054, %v7635_v25 }
 0x70c   : > { %v4305_v26 = vadd.f32 -0.28449672, %v4297_v45  ;;  %v4298_v27 = vmul.f32 %v7613_v51, %v4290_v16  ;;  %v4277_v63 = vadd.f32 -1.4531521, %v4269_v14  ;;  %v7643_v36 = vpop.eup %5133 }
 0x70d   : > { %v4315_v40 = vmul.f32 %v7597_v23, %v4307_v37  ;;  %v4308_v34 = vadd.f32 -0.28449672, %v4300_v60  ;;  %v4287_v31 = vmul.f32 %v7624_v17, %v4279_v6  ;;  %v5136_v13 = vpop.eup %5135  ;;  %v4280_v18 = vadd.f32 -1.4531521, %v4272_v59 }
 0x70e   : > { %v4313_v43 = vmul.f32 %v7602_v48, %v4305_v26  ;;  %v4306_v42 = vadd.f32 -0.28449672, %v4298_v27  ;;  %v4285_v54 = vmul.f32 %v7627_v15, %v4277_v63  ;;  %v4270_v49 = vmul.f32 1.0614054, %v7643_v36  ;;  %v5138_v45 = vpop.eup %5137 }
 0x70f   : > { %v4323_v50 = vadd.f32 0.2548296, %v4315_v40  ;;  %v4316_v21 = vmul.f32 %v7609_v33, %v4308_v34  ;;  %v4295_v44 = vadd.f32 1.4214138, %v4287_v31  ;;  %v5140_v11 = vpop.eup %5139  ;;  %v4288_v55 = vmul.f32 %v7635_v25, %v4280_v18 }
 0x710   : > { %v4321_v1 = vadd.f32 0.2548296, %v4313_v43  ;;  %v4314_v20 = vmul.f32 %v7613_v51, %v4306_v42  ;;  %v4293_v10 = vadd.f32 1.4214138, %v4285_v54  ;;  %v4278_v28 = vadd.f32 -1.4531521, %v4270_v49  ;;  %v5142_v43 = vpop.eup %5141 }
 0x711   : > { %v4331_v5 = vmul.f32 %v7597_v23, %v4323_v50  ;;  %v4324_v29 = vadd.f32 0.2548296, %v4316_v21  ;;  %v4303_v37 = vmul.f32 %v7624_v17, %v4295_v44  ;;  %v4296_v3 = vadd.f32 1.4214138, %v4288_v55  ;;  %v5144_v63 = vpop.eup %5143 }
 0x712   : > { %v4329_v22 = vmul.f32 %v7602_v48, %v4321_v1  ;;  %v4322_v39 = vadd.f32 0.2548296, %v4314_v20  ;;  %v4301_v26 = vmul.f32 %v7627_v15, %v4293_v10  ;;  %v4286_v50 = vmul.f32 %v7643_v36, %v4278_v28  ;;  %v5146_v59 = vpop.eup %5145 }
 0x713   : > { %v4371_v23 = vmul.f32 %v5132_v38, %v4331_v5  ;;  %v4332_v48 = vmul.f32 %v7609_v33, %v4324_v29  ;;  %v4311_v53 = vadd.f32 -0.28449672, %v4303_v37  ;;  %v4363_v1 = vmul.f32 1.442695, %v4350_v4 }
 0x714   : > { %v4369_v0 = vmul.f32 %v5136_v13, %v4329_v22  ;;  %v4330_v16 = vmul.f32 %v7613_v51, %v4322_v39  ;;  %v4309_v33 = vadd.f32 -0.28449672, %v4301_v26  ;;  %v4304_v21 = vmul.f32 %v7635_v25, %v4296_v3 }
 0x715   : > { %v4379_v58 = vsub.f32 1.0, %v4371_v23  ;;  %v4372_v60 = vmul.f32 %v5138_v45, %v4332_v48  ;;  %v4319_v6 = vmul.f32 %v7624_v17, %v4311_v53  ;;  %v4294_v29 = vadd.f32 1.4214138, %v4286_v50 }
 0x716   : > { %v4377_v2 = vsub.f32 1.0, %v4369_v0  ;;  %v4370_v27 = vmul.f32 %v5140_v11, %v4330_v16  ;;  %v4317_v51 = vmul.f32 %v7627_v15, %v4309_v33  ;;  %v4312_v23 = vadd.f32 -0.28449672, %v4304_v21 }
 0x717   : > { %v4395_v40 = vsub.f32 0.0, %v4379_v58  ;;  %v4380_v34 = vsub.f32 1.0, %v4372_v60  ;;  %v4327_v54 = vadd.f32 0.2548296, %v4319_v6  ;;  %5147 = vpow2.f32 %v4363_v1 }
 0x718   : > { %v4393_v14 = vsub.f32 0.0, %v4377_v2  ;;  %v4378_v22 = vsub.f32 1.0, %v4370_v27  ;;  %v4325_v13 = vadd.f32 0.2548296, %v4317_v51  ;;  %v4320_v0 = vmul.f32 %v7635_v25, %v4312_v23 }
 0x719   : > { %v4403_v38 = vsel %vm4387_vm4, %v4379_v58, %v4395_v40  ;;  %v4396_v31 = vsub.f32 0.0, %v4380_v34  ;;  %v4335_v20 = vmul.f32 %v7624_v17, %v4327_v54  ;;  %v4302_v45 = vmul.f32 %v7643_v36, %v4294_v29 }
 0x71a   : > { %v4401_v5 = vsel %vm4385_vm5, %v4377_v2, %v4393_v14  ;;  %v4411_v4 = vadd.f32 1.0, %v4403_v38  ;;  %v4394_v62 = vsub.f32 0.0, %v4378_v22  ;;  %v4333_v44 = vmul.f32 %v7627_v15, %v4325_v13 }
 0x71b   : > { %v4409_v42 = vadd.f32 1.0, %v4401_v5  ;;  %v4404_v10 = vsel %vm4388_vm6, %v4380_v34, %v4396_v31  ;;  %v4375_v49 = vmul.f32 %v5142_v43, %v4335_v20  ;;  %v4328_v39 = vadd.f32 0.2548296, %v4320_v0 }
 0x71c   : > { %v4402_v18 = vsel %vm4386_vm10, %v4378_v22, %v4394_v62  ;;  %v4373_v48 = vmul.f32 %v5144_v63, %v4333_v44  ;;  %v7676_v17 = vmul.f32 %v4411_v4, %v7604_v30  ;;  %v4310_v15 = vadd.f32 -0.28449672, %v4302_v45 }
 0x71d   : > { %v7667_v57 = vmul.f32 %v4409_v42, %v7620_v19  ;;  %v4410_v58 = vadd.f32 1.0, %v4402_v18  ;;  %v4383_v19 = vsub.f32 1.0, %v4375_v49  ;;  %v4412_v11 = vadd.f32 1.0, %v4404_v10 }
 0x71e   : > { %v4381_v2 = vsub.f32 1.0, %v4373_v48  ;;  %v4212_v26 = vmul.f32 0.5, %v7557_v32  ;;  %v4336_v46 = vmul.f32 %v7635_v25, %v4328_v39  ;;  %v4318_v55 = vmul.f32 %v7643_v36, %v4310_v15 }
 0x71f   : > { %v4425_v37 = vmul.f32 %v7667_v57, %v7667_v57  ;;  %v7680_v56 = vmul.f32 %v4410_v58, %v4210_v35  ;;  %v4213_v28 = vmul.f32 0.5, %v7576_v61  ;;  %v4427_v60 = vmul.f32 %v7676_v17, %v7676_v17 }
 0x720   : > { %v4397_v40 = vsub.f32 0.0, %v4381_v2  ;;  %v4399_v16 = vsub.f32 0.0, %v4383_v19  ;;  %v4376_v53 = vmul.f32 %v5146_v59, %v4336_v46  ;;  %v4326_v43 = vadd.f32 0.2548296, %v4318_v55 }
 0x721   : > { %v4426_v30 = vmul.f32 %v7680_v56, %v7680_v56  ;;  %v4434_v32 = vsel %vm4433_vm11, %v4425_v37, 0.0  ;;  %v7692_v14 = vmul.f32 %v4412_v11, %v4212_v26  ;;  %v5148_v24 = vpop.eup %5147  ;;  %v4437_v38 = vsel %vm4433_vm11, %v4427_v60, 0.0  ;;  %v5106_v60 = vld [vmem:[%s7843_s11 + $0x8] sm:$0xff]  }
 0x722   : > { %v4405_v33 = vsel %vm4389_vm12, %v4381_v2, %v4397_v40  ;;  %v4384_v34 = vsub.f32 1.0, %v4376_v53  ;;  %v4334_v61 = vmul.f32 %v7643_v36, %v4326_v43  ;;  %v4407_v27 = vsel %vm4391_vm13, %v4383_v19, %v4399_v16  ;;  %v5105_v40 = vld [vmem:[%s7843_s11] sm:$0xff]   ;;  %v5107_v16 = vld [vmem:[%s7843_s11 + $0x10] sm:$0xff]   ;;  %v5108_v53 = vld [vmem:[%s7843_s11 + $0x18] sm:$0xff]  }
 0x723   : > { %v4435_v25 = vsel %vm4433_vm11, %v4426_v30, 0.0  ;;  %v4413_v50 = vadd.f32 1.0, %v4405_v33  ;;  %v4428_v5 = vmul.f32 %v7692_v14, %v7692_v14  ;;  %v4415_v31 = vadd.f32 1.0, %v4407_v27  ;;  %4850 = vmatprep.subr.bf16.mxu1 %v5105_v40  ;;  %4831 = vmatprep.subr.bf16.mxu0 %v5105_v40  ;;  %v4772_v27 = vld [vmem:[%s7842_s10] ss:$0 sm:$0xff] }
 0x724   : > { %v4436_v3 = vadd.f32 %v4435_v25, %v4434_v32  ;;  %v4400_v1 = vsub.f32 0.0, %v4384_v34  ;;  %v4374_v63 = vmul.f32 %v5148_v24, %v4334_v61  ;;  %v4215_v54 = vmul.f32 0.5, %v7574_v52  ;;  %4854 = vmatpush3.bf16.msra.mxu1 %v5105_v40  ;;  %4832 = vmatpush3.bf16.msra.mxu0 %v5105_v40 }
 0x725   : > { %v7697_v6 = vmul.f32 %v4413_v50, %v4213_v28  ;;  %v4439_v22 = vsel %vm4433_vm11, %v4428_v5, 0.0  ;;  %v4216_v23 = vmul.f32 0.5, %v7578_v41  ;;  %v4214_v62 = vmul.f32 0.5, %v7583_v12  ;;  %4851 = vmatprep.subr.bf16.mxu1 %v5106_v60  ;;  %4833 = vmatprep.subr.bf16.mxu0 %v5106_v60 }
 0x726   : > { %v4438_v51 = vadd.f32 %v4437_v38, %v4436_v3  ;;  %v4408_v21 = vsel %vm4392_vm14, %v4384_v34, %v4400_v1  ;;  %v4382_v42 = vsub.f32 1.0, %v4374_v63  ;;  %v7709_v8 = vmul.f32 %v4415_v31, %v4215_v54  ;;  %v4469_v3 = vld [vmem:[%s7841_s9] sm:$0x1] }
 0x727   : > { %v4429_v36 = vmul.f32 %v7697_v6, %v7697_v6  ;;  %v4416_v59 = vadd.f32 1.0, %v4408_v21 }
 0x728   : > { %v4398_v7 = vsub.f32 0.0, %v4382_v42  ;;  %v4440_v13 = vadd.f32 %v4439_v22, %v4438_v51  ;;  %v4431_v52 = vmul.f32 %v7709_v8, %v7709_v8  ;;  %4855 = vmatpush3.bf16.msra.mxu1 %v5106_v60  ;;  %4834 = vmatpush3.bf16.msra.mxu0 %v5106_v60  ;;  %v7984_v60 = vld [vmem:[#allocation25_spill] sm:$0xff] }
 0x729   : > { %v4441_v4 = vsel %vm4433_vm11, %v4429_v36, 0.0  ;;  %v7713_v44 = vmul.f32 %v4416_v59, %v4216_v23  ;;  %4852 = vmatprep.subr.bf16.mxu1 %v5107_v16  ;;  %4835 = vmatprep.subr.bf16.mxu0 %v5107_v16 }
 0x72a   : > { %v4406_v29 = vsel %vm4390_vm15, %v4382_v42, %v4398_v7  ;;  %v4442_v10 = vadd.f32 %v4441_v4, %v4440_v13  ;;  %v4445_v45 = vsel %vm4433_vm11, %v4431_v52, 0.0 }
 0x72b   : > { %v4414_v20 = vadd.f32 1.0, %v4406_v29  ;;  %v4432_v9 = vmul.f32 %v7713_v44, %v7713_v44 }
 0x72c   : > { %4856 = vmatpush3.bf16.msra.mxu1 %v5107_v16  ;;  %4836 = vmatpush3.bf16.msra.mxu0 %v5107_v16 }
 0x72d   : > { %v4422_v0 = vmul.f32 %v4414_v20, %v4214_v62  ;;  %v4447_v12 = vsel %vm4433_vm11, %v4432_v9, 0.0  ;;  %4853 = vmatprep.subr.bf16.mxu1 %v5108_v53  ;;  %4837 = vmatprep.subr.bf16.mxu0 %v5108_v53 }
 0x72f   : > { %v4430_v18 = vmul.f32 %v4422_v0, %v4422_v0 }
 0x730   : > { %4857 = vmatpush3.bf16.msra.mxu1 %v5108_v53  ;;  %4838 = vmatpush3.bf16.msra.mxu0 %v5108_v53  ;;  %v7985_v53 = vld [vmem:[#allocation29_spill] sm:$0xff] }
 0x731   : > { %v4443_v41 = vsel %vm4433_vm11, %v4430_v18, 0.0 }
 0x732   : > { %v4444_v49 = vadd.f32 %v4443_v41, %v4442_v10  ;;  %v4783_v10 = vld [vmem:[%s7846_s14] ss:$0 sm:$0xff] }
 0x734   : > { %v4446_v35 = vadd.f32 %v4445_v45, %v4444_v49 }
 0x736   : > { %v4448_v58 = vadd.f32 %v4447_v12, %v4446_v35 }
 0x738   : > { %v4449_v48 = vrot.slane %v4448_v58, 4 }
 0x73a   : > { %v4450_v19 = vadd.f32 %v4449_v48, %v4448_v58 }
 0x73c   : > { %v4451_v39 = vrot.slane %v4450_v19, 2 }
 0x73e   : > { %v4452_v15 = vadd.f32 %v4451_v39, %v4450_v19 }
 0x740   : > { %v4453_v37 = vrot.slane %v4452_v15, 1 }
 0x742   : > { %v4454_v11 = vadd.f32 %v4453_v37, %v4452_v15 }
 0x744   : > { %5149 = vrsqrt.f32 %v4454_v11  ;;  %vm4457_vm0 = vcmp.eq.f32.partialorder %v4454_v11, inf  ;;  %v4460_v46 = vand.u32 2147483648, %v4454_v11  ;;  %vm4459_vm2 = vcmp.eq.f32.partialorder %v4454_v11, 0.0 }
 0x74e   : > { %v5150_v2 = vpop.eup %5149 }
 0x74f   : > { %v4456_v26 = vmul.f32 %v5150_v2, %v4454_v11 }
 0x751   : > { %v4458_v55 = vsel %vm4457_vm0, %v4454_v11, %v4456_v26 }
 0x752   : > { %v4461_v30 = vsel %vm4459_vm2, %v4460_v46, %v4458_v55 }
 0x753   : > { %v4462_v28 = vsel %vm4433_vm11, %v4461_v30, 0.0 }
 0x754   : > { %4463 = vadd.xlane.f32.xlu1 %v4462_v28 }
 0x7e1   : > { %v4464_v43 = vpop.xlane.xlu1 %4463 }
 0x7e2   : > { %v4465_v32 = vmul.f32 0.015625, %v4464_v43 }
 0x7e4   : > { %v4466_v25 = vadd.f32 1e-06, %v4465_v32 }
 0x7e6   : > { %5151 = vrcp.f32 %v4466_v25 }
 0x7f0   : > { %v5152_v33 = vpop.eup %5151 }
 0x7f1   : > { %v4468_v50 = vmul.f32 %v5152_v33, %v4461_v30  ;;  %v7986_v33 = vld [vmem:[#allocation23_spill] sm:$0xff] }
 0x7f3   : > { %v4470_v34 = vmul.f32 %v4469_v3, %v4468_v50  ;;  %v7987_v50 = vld [vmem:[#allocation27_spill] sm:$0xff] }
 0x7f5   : > { %v4471_v61 = vadd.f32 1.0, %v4470_v34 }
 0x7f7   : > { %v4476_v24 = vrot.slane %v4471_v61, %v7961_v47 }
 0x7f9   : > { %v4478_v1 = vmul.f32 %v4476_v24, %v7667_v57  ;;  %v4479_v63 = vmul.f32 %v4476_v24, %v7680_v56  ;;  %v4482_v38 = vmul.f32 %v4476_v24, %v7697_v6  ;;  %v4483_v5 = vmul.f32 %v4476_v24, %v4422_v0 }
 0x7fa   : > { %v4480_v51 = vmul.f32 %v4476_v24, %v7676_v17  ;;  %v4481_v21 = vmul.f32 %v4476_v24, %v7692_v14  ;;  %v4484_v42 = vmul.f32 %v4476_v24, %v7709_v8  ;;  %v4485_v31 = vmul.f32 %v4476_v24, %v7713_v44  ;;  %v4781_v14 = vld [vmem:[%s7844_s12] ss:$0 sm:$0xff] }
 0x7fb   : > { %v4493_v47 = vadd.f32 %v4772_v27, %v4478_v1  ;;  %v4494_v36 = vadd.f32 %v4772_v27, %v4479_v63  ;;  %v4497_v7 = vadd.f32 %v4772_v27, %v4482_v38  ;;  %v4498_v22 = vadd.f32 %v4772_v27, %v4483_v5  ;;  %v4782_v8 = vld [vmem:[%s7845_s13] ss:$0 sm:$0xff]  ;;  %v7991_v5 = vld [vmem:[#allocation24_spill] sm:$0xff] }
 0x7fc   : > { %v4495_v54 = vadd.f32 %v4772_v27, %v4480_v51  ;;  %v4496_v57 = vadd.f32 %v4772_v27, %v4481_v21  ;;  %v4499_v59 = vadd.f32 %v4772_v27, %v4484_v42  ;;  %v4500_v56 = vadd.f32 %v4772_v27, %v4485_v31  ;;  %v7988_v27 = vld [vmem:[#allocation26_spill] sm:$0xff]  ;;  %v7992_v21 = vld [vmem:[#allocation28_spill] sm:$0xff] }
 0x7fd   : > { %v4501_v13 = vpack.c.bf16 %v4494_v36, %v4493_v47  ;;  %v4503_v6 = vpack.c.bf16 %v4498_v22, %v4497_v7  ;;  %v7989_v63 = vld [vmem:[#allocation30_spill] sm:$0xff] }
 0x7fe   : > { %v4502_v23 = vpack.c.bf16 %v4496_v57, %v4495_v54  ;;  %v4504_v17 = vpack.c.bf16 %v4500_v56, %v4499_v59 }
 0x7ff   : > { %4839 = vmatprep.mubr.msk.bf16.mxu0 %vm4433_vm11, %v4501_v13  ;;  %4843 = vmatprep.mubr.msk.bf16.mxu1 %vm4433_vm11, %v4503_v6 }
 0x800   : > { %4840 = vmatmul.mubr.msk.bf16.vlgmr.msra.gmra.mrb[4].mxu0 %vm4433_vm11, %v4502_v23  ;;  %4844 = vmatmul.mubr.msk.bf16.vlgmr.msra.gmra.mrb[12].mxu1 %vm4433_vm11, %v4504_v17 }
 0x8d3   : > { %v4841_v29 = vpop.f32.mrb[4].mxu0  ;;  %v4845_v4 = vpop.f32.mrb[12].mxu1 }
 0x8d4   : > { %v4623_v62 = vmul.f32 %v4841_v29, %v4781_v14  ;;  %v4627_v20 = vmul.f32 %v4845_v4, %v4781_v14  ;;  %v4583_v44 = vpop.f32.mrb[5].mxu0  ;;  %v4599_v0 = vpop.f32.mrb[13].mxu1 }
 0x8d5   : > { %v4621_v52 = vmul.f32 %v4781_v14, %v4583_v44  ;;  %v4625_v18 = vmul.f32 %v4781_v14, %v4599_v0  ;;  %v4842_v9 = vpop.f32.mrb[6].mxu0  ;;  %v4846_v41 = vpop.f32.mrb[14].mxu1 }
 0x8d6   : > { %v4638_v49 = vadd.f32 %v4782_v8, %v4623_v62  ;;  %v4642_v45 = vadd.f32 %v4782_v8, %v4627_v20  ;;  %v4624_v35 = vmul.f32 %v4842_v9, %v4781_v14  ;;  %v4628_v12 = vmul.f32 %v4846_v41, %v4781_v14  ;;  %v4586_v58 = vpop.f32.mrb[7].mxu0  ;;  %v4602_v48 = vpop.f32.mrb[15].mxu1 }
 0x8d7   : > { %v4636_v19 = vadd.f32 %v4782_v8, %v4621_v52  ;;  %v4640_v39 = vadd.f32 %v4782_v8, %v4625_v18  ;;  %v4622_v15 = vmul.f32 %v4781_v14, %v4586_v58  ;;  %v4626_v37 = vmul.f32 %v4781_v14, %v4602_v48 }
 0x8d8   : > { %v4653_v11 = vmul.f32 %v4783_v10, %v4638_v49  ;;  %v4657_v2 = vmul.f32 %v4783_v10, %v4642_v45  ;;  %v4639_v26 = vadd.f32 %v4782_v8, %v4624_v35  ;;  %v4643_v46 = vadd.f32 %v4782_v8, %v4628_v12 }
 0x8d9   : > { %v4651_v55 = vmul.f32 %v4783_v10, %v4636_v19  ;;  %v4655_v30 = vmul.f32 %v4783_v10, %v4640_v39  ;;  %v4637_v28 = vadd.f32 %v4782_v8, %v4622_v15  ;;  %v4641_v40 = vadd.f32 %v4782_v8, %v4626_v37 }
 0x8da   : > { %v4661_v16 = vadd.f32 %v4653_v11, %v7984_v60  ;;  %v4665_v43 = vadd.f32 %v4657_v2, %v7985_v53  ;;  %v4654_v32 = vmul.f32 %v4783_v10, %v4639_v26  ;;  %v4658_v25 = vmul.f32 %v4783_v10, %v4643_v46 }
 0x8db   : > { %v4659_v3 = vadd.f32 %v4651_v55, %v7986_v33  ;;  %v4663_v34 = vadd.f32 %v4655_v30, %v7987_v50  ;;  %v4652_v61 = vmul.f32 %v4783_v10, %v4637_v28  ;;  %v4656_v24 = vmul.f32 %v4783_v10, %v4641_v40 }
 0x8dc   : > { %4669 = vst.msk [vmem:[%s487_s16 + $0x10] sm:$0xff] %vm502_vm1, %v4661_v16  ;;  %4673 = vst.msk [vmem:[%s487_s16 + $0x30] sm:$0xff] %vm502_vm1, %v4665_v43  ;;  %v4662_v1 = vadd.f32 %v4654_v32, %v7988_v27  ;;  %v4666_v38 = vadd.f32 %v4658_v25, %v7989_v63 }
 0x8dd   : > { %4667 = vst.msk [vmem:[%s487_s16] sm:$0xff] %vm502_vm1, %v4659_v3  ;;  %4671 = vst.msk [vmem:[%s487_s16 + $0x20] sm:$0xff] %vm502_vm1, %v4663_v34  ;;  %v4660_v51 = vadd.f32 %v4652_v61, %v7991_v5  ;;  %v4664_v42 = vadd.f32 %v4656_v24, %v7992_v21 }
 0x8de   : > { %4670 = vst.msk [vmem:[%s487_s16 + $0x18] sm:$0xff] %vm502_vm1, %v4662_v1  ;;  %4674 = vst.msk [vmem:[%s487_s16 + $0x38] sm:$0xff] %vm502_vm1, %v4666_v38 }
 0x8df   : > { %4668 = vst.msk [vmem:[%s487_s16 + $0x8] sm:$0xff] %vm502_vm1, %v4660_v51  ;;  %4672 = vst.msk [vmem:[%s487_s16 + $0x28] sm:$0xff] %vm502_vm1, %v4664_v42 }
 0x8e0   : > { %5187 = shalt.err (!%p5184_p3)
}
 0x8e1   : > { %s5188_s20 = scalar_lea.hbm %s7777_s17, 1024  ;;  %s5192_s24 = scalar_lea.hbm %s7990_s30, 2048 }
 0x8e2   : > { %p5189_p4 = scmp.ne.s32.totalorder %s7777_s17, %s5188_s20  ;;  %p5193_p9 = scmp.lt.u32.totalorder %s7777_s17, %s7990_s30 }
 0x8e3   : > { %p5194_p10 = scmp.lt.u32.totalorder %s5192_s24, %s5188_s20  ;;  %p5196_p12 = scmp.lt.u32.totalorder %s5188_s20, %s7777_s17 }
 0x8e4   : > { %p5190_p7 = pnand %p5189_p4, %p5368_p5 }
 0x8e5   : > { %p5195_p11 = por %p5194_p10, %p5193_p9 }
 0x8e6   : > { %p5191_p8 = pneg %p5190_p7 }
 0x8e7   : > { %p5197_p13 = por %p5196_p12, %p5195_p11 }
 0x8e9   : > { %p5198_p0 = pnand %p5197_p13, %p5191_p8 }
 0x8eb   : > { %5201 = shalt.err (!%p5198_p0)
}
 0x8ec   : > { %s5248_s3 = smov 128   ;;  %s5249_s29 = smov 8  }
 0x8ed   : > { %5054 = dma.vmem_to_hbm [thread:$0]  (%p5368_p5), %s7779_s27, 1024, %s7777_s17, %s7791_s26, %s5248_s3, %s5248_s3, %s5249_s29  }
 0x8ee PF: > { %s7993_s5 = sld [smem:[#allocation10_spill]]  ;;  %s7994_s2 = sld [smem:[#allocation8_spill]] }
 0x8f4   : > { %p5060_p1 = scmp.ge.s32.totalorder %s7993_s5, 2  ;;  %s4704_s22 = sand.u32 1, %s7994_s2  }
 0x8f5   : > { %s4705_s21 = scalar_lea.sflag [#allocation6], %s4704_s22 }
 0x8f6   : > { %p5057_p2 = pnand %p5060_p1, %p5372_p6 }
 0x8f8   : > { %5219 = dma.done.wait (!%p5057_p2), %s4705_s21, 1024  }
 0x8f9   : > { %5221 = vsyncadd (!%p5057_p2), %s4705_s21, 4294966272  ;;  %s7996_s21 = sld [smem:[#allocation11_spill]]  ;;  %s7997_s15 = sld [smem:[#allocation9_spill]] }
 0x8fa   : > { %s7998_s20 = sld [smem:[#allocation12_spill]]  ;;  %s7999_s18 = smov %s5228_s19 }
 0x8ff   : > { %p25_p3 = scmp.ge.s32.totalorder %s7996_s21, 4   ;;  %s8000_s19 = smov %s7997_s15 }
 0x901   :  { %27 = sbr.rel (!%p25_p3) target bundleno = 12 (0xc), region = 116 }
 0x908   :  { %4710 = vsyncpa [#allocation6], 1 }
 0x909   :  { %4712 = vsyncpa [#allocation6 + $0x1], 1 }

</bundles_post_ra>
